<compile_context>
chip_gen: v5e
topology: v5e:2x2
jax: 0.10.0
libtpu: 0.0.40
codegen_flags: <defaults>
</compile_context>

<pallas_src>
import jax
import jax.numpy as jnp
import numpy as np
from jax import lax
from jax.experimental import pallas as pl
from jax.experimental.pallas import tpu as pltpu

S_BLK = 8      # sublane rows per compute slab
LANES = 128    # lane width


def _no_trade_rnn_kernel(p_ref, h0_ref, r_ref, o_ref, hx_c, hy_c, rxp_c, ryp_c):
    """NoTradeRegionRNN2 recurrence, one (batch-tile, T-chunk) grid step.

    p_ref : SMEM f32[14]            = [ac, bd, (off, abs, add) x {lbx, ubx, lby, uby}]
    h0_ref: VMEM f32[2, 8, 128]     initial hidden per asset (inputs[:, 0, :])
    r_ref : VMEM f32[2, TK, 8, 128] returns chunk (row t = returns[k*TK + t])
    o_ref : VMEM f32[2, TK, 8, 128] hidden sequence per asset
    hx_c/hy_c  : VMEM f32[8, 128]   hidden-state carry across T chunks
    rxp_c/ryp_c: VMEM f32[8, 128]   last returns row of the previous T chunk
    """
    k = pl.program_id(1)
    TK = r_ref.shape[1]

    # Pre-fused scalar constants (SMEM reads, hoisted out of the serial loop).
    ac, bd = p_ref[0], p_ref[1]
    lbx_off, lbx_abs, lbx_add = p_ref[2], p_ref[3], p_ref[4]
    ubx_off, ubx_abs, ubx_add = p_ref[5], p_ref[6], p_ref[7]
    lby_off, lby_abs, lby_add = p_ref[8], p_ref[9], p_ref[10]
    uby_off, uby_abs, uby_add = p_ref[11], p_ref[12], p_ref[13]

    one = jnp.float32(1.0)
    two = jnp.float32(2.0)

    def relu(v):
        return jnp.maximum(v, 0.0)

    def bound(a, slope, off, absv, add):
        g = (a - off) * slope
        return -relu(-relu(g) + absv) + add

    def step(t, carry):
        # rxp/ryp hold returns[g-1] for global step g = k*TK + t.
        hx, hy, rxp, ryp = carry                         # each (8, 128)
        tx = hx * rxp
        ty = hy * ryp
        # adjust_pi: h * (1 + r) / (1 + sum(h * r)); reuse tx/ty, EUP recip + 1 NR.
        denom = one + tx + ty
        r0 = pl.reciprocal(denom, approx=True)
        inv = r0 * (two - denom * r0)                    # Newton refinement
        adj_x = (hx + tx) * inv
        adj_y = (hy + ty) * inv
        # No-trade-region bounds (rotated Corner box, pre-fused scalars).
        lbx = bound(adj_y, bd, lbx_off, lbx_abs, lbx_add)
        ubx = bound(adj_y, bd, ubx_off, ubx_abs, ubx_add)
        lby = bound(adj_x, ac, lby_off, lby_abs, lby_add)
        uby = bound(adj_x, ac, uby_off, uby_abs, uby_add)
        # Recurrence with WealthRNN2 fixed weights folded in
        # (input_param=0, hidden_param=1, fc1=fc2=-1).
        hx_new = -relu(-relu(adj_x - lbx) + ubx - lbx) + ubx
        hy_new = -relu(-relu(adj_y - lby) + uby - lby) + uby
        o_ref[0, t] = hx_new
        o_ref[1, t] = hy_new
        # returns[g] -> used by step t+1 (or by the next T chunk's first step).
        rxn = r_ref[0, t]
        ryn = r_ref[1, t]
        return hx_new, hy_new, rxn, ryn

    def run(lo, carry):
        u = max(1, min(8, TK - lo))
        hx_f, hy_f, rxp_f, ryp_f = lax.fori_loop(lo, TK, step, carry, unroll=u)
        hx_c[...] = hx_f
        hy_c[...] = hy_f
        rxp_c[...] = rxp_f
        ryp_c[...] = ryp_f

    @pl.when(k == 0)
    def _():
        # Global step 0: hidden = inputs[:, 0, :] (no recurrence).
        h0x = h0_ref[0]
        h0y = h0_ref[1]
        o_ref[0, 0] = h0x
        o_ref[1, 0] = h0y
        run(1, (h0x, h0y, r_ref[0, 0], r_ref[1, 0]))

    @pl.when(k != 0)
    def _():
        run(0, (hx_c[...], hy_c[...], rxp_c[...], ryp_c[...]))


def wealth_rnn2_forward(inputs, target, returns_partition, rotate_w, *, tk=256):
    """WealthRNN2.forward (RNN part).

    inputs, returns_partition: (dim, seq, batch) float32
    target: (dim,) float32
    rotate_w: (dim, dim) float32  (rnn.rotate_param.weight)
    Returns (output, hidden): output is (dim, seq, batch), hidden is (dim, 1, batch).
    """
    D, T, B = inputs.shape
    assert D == 2, "NoTradeRegionRNN2's Corner/ac/bd construction assumes dim_size == 2"
    f32 = jnp.float32

    # --- scalar pre-compute / fusion (tiny, plain-JAX glue -> SMEM scalars) ---
    mat2 = jnp.array([[-1.0, 0.0, 1.0, 0.0],
                      [0.0, -1.0, 0.0, 1.0]], dtype=f32)
    C = (rotate_w @ mat2).T + target[None, :]                               # (4, 2)
    ac = (rotate_w[1, 0] + rotate_w[1, 1]) / (rotate_w[0, 0] + rotate_w[0, 1])
    bd = (rotate_w[0, 0] - rotate_w[0, 1]) / (rotate_w[1, 0] - rotate_w[1, 1])
    bd_ge = (bd >= 0).astype(f32); bd_lt = 1.0 - bd_ge
    ac_ge = (ac >= 0).astype(f32); ac_lt = 1.0 - ac_ge
    params = jnp.stack([
        ac, bd,
        # lower_bound_x
        C[0, 1] * bd_ge + C[1, 1] * bd_lt, jnp.abs(C[1, 0] - C[0, 0]),
        C[1, 0] * bd_ge + C[0, 0] * bd_lt,
        # upper_bound_x
        C[3, 1] * bd_ge + C[2, 1] * bd_lt, jnp.abs(C[2, 0] - C[3, 0]),
        C[2, 0] * bd_ge + C[3, 0] * bd_lt,
        # lower_bound_y
        C[0, 0] * ac_ge + C[3, 0] * ac_lt, jnp.abs(C[0, 1] - C[3, 1]),
        C[3, 1] * ac_ge + C[0, 1] * ac_lt,
        # upper_bound_y
        C[1, 0] * ac_ge + C[2, 0] * ac_lt, jnp.abs(C[1, 1] - C[2, 1]),
        C[2, 1] * ac_ge + C[1, 1] * ac_lt,
    ]).astype(f32)                                                           # (14,)

    # --- layout: batch packed into (S_total, 128) sublane x lane slabs ---
    slab = S_BLK * LANES                                   # 1024 batch elems / slab
    B_pad = -(-B // slab) * slab
    S_total = B_pad // LANES                               # multiple of 8
    NB = S_total // S_BLK                                  # batch tiles (parallel axis)

    TK = max(1, min(T, int(tk), 1024))
    NK = -(-T // TK)
    T_pad = NK * TK

    pad_b = B_pad - B
    pad_t = T_pad - T

    inputs = inputs.astype(f32)
    rp = returns_partition.astype(f32)

    # Only inputs[:, 0, :] is live (input_param weight == 0).
    h0 = jnp.pad(inputs[:, 0, :], ((0, 0), (0, pad_b))).reshape(2, S_total, LANES)
    # Returns stay un-shifted; the kernel consumes returns[t-1] via a carried row.
    r = jnp.pad(rp, ((0, 0), (0, pad_t), (0, pad_b))).reshape(2, T_pad, S_total, LANES)

    grid_spec = pltpu.PrefetchScalarGridSpec(
        num_scalar_prefetch=1,                   # params -> SMEM
        grid=(NB, NK),                           # (batch tiles, T chunks): T innermost!
        in_specs=[
            pl.BlockSpec((2, S_BLK, LANES), lambda b, k, p: (0, b, 0)),        # h0
            pl.BlockSpec((2, TK, S_BLK, LANES), lambda b, k, p: (0, k, b, 0)), # returns
        ],
        out_specs=pl.BlockSpec((2, TK, S_BLK, LANES), lambda b, k, p: (0, k, b, 0)),
        scratch_shapes=[
            pltpu.VMEM((S_BLK, LANES), f32),     # hx carry
            pltpu.VMEM((S_BLK, LANES), f32),     # hy carry
            pltpu.VMEM((S_BLK, LANES), f32),     # previous returns row (x)
            pltpu.VMEM((S_BLK, LANES), f32),     # previous returns row (y)
        ],
    )

    # VMEM: in + out (2, TK, 8, 128) f32 blocks, double-buffered, + slack.
    block_bytes = 2 * TK * S_BLK * LANES * 4
    vmem_limit = max(4 * block_bytes + (2 << 20), 16 << 20)

    out = pl.pallas_call(
        _no_trade_rnn_kernel,
        out_shape=jax.ShapeDtypeStruct((2, T_pad, S_total, LANES), f32),
        grid_spec=grid_spec,
        compiler_params=pltpu.CompilerParams(
            dimension_semantics=("parallel", "arbitrary"),
            vmem_limit_bytes=int(vmem_limit)),
    )(params, h0, r)

    # (2, T_pad, S_total, 128) is already dim-major; free reshape + slice off padding.
    output = out[:, :T].reshape(2, T_pad if False else T, B_pad)[:, :, :B] \
        if False else out[:, :T].reshape(2, T, B_pad)[:, :, :B]
    hidden = output[:, T - 1:T, :]                       # (dim, 1, batch)
    # TODO(synk): WealthRNN2.forward also builds output2 = prod(FTA.cal_return(...) + 1, 0);
    # FTA is an undefined external dependency in the reference source, so it is not reproduced.
    return output, hidden


def _reference(inputs, target, returns_partition, rotate_w):
    """Pure-JAX reference mirroring the PyTorch semantics (for validation)."""
    D, T, B = inputs.shape
    mat2 = jnp.array([[-1.0, 0.0, 1.0, 0.0], [0.0, -1.0, 0.0, 1.0]], jnp.float32)
    C = (rotate_w @ mat2).T + target[None, :]
    ac = (rotate_w[1, 0] + rotate_w[1, 1]) / (rotate_w[0, 0] + rotate_w[0, 1])
    bd = (rotate_w[0, 0] - rotate_w[0, 1]) / (rotate_w[1, 0] - rotate_w[1, 1])
    relu = lambda v: jnp.maximum(v, 0.0)
    bd_ge = (bd >= 0).astype(jnp.float32); bd_lt = 1.0 - bd_ge
    ac_ge = (ac >= 0).astype(jnp.float32); ac_lt = 1.0 - ac_ge
    w_in, w_h, w_fc1, w_fc2 = 0.0, 1.0, -1.0, -1.0

    def bounds(adj):
        ax, ay = adj[0], adj[1]
        g = (ay - C[0, 1] * bd_ge - C[1, 1] * bd_lt) * bd
        lbx = -relu(-relu(g) + jnp.abs(C[1, 0] - C[0, 0])) + C[1, 0] * bd_ge + C[0, 0] * bd_lt
        g = (ay - C[3, 1] * bd_ge - C[2, 1] * bd_lt) * bd
        ubx = -relu(-relu(g) + jnp.abs(C[2, 0] - C[3, 0])) + C[2, 0] * bd_ge + C[3, 0] * bd_lt
        g = (ax - C[0, 0] * ac_ge - C[3, 0] * ac_lt) * ac
        lby = -relu(-relu(g) + jnp.abs(C[0, 1] - C[3, 1])) + C[3, 1] * ac_ge + C[0, 1] * ac_lt
        g = (ax - C[1, 0] * ac_ge - C[2, 0] * ac_lt) * ac
        uby = -relu(-relu(g) + jnp.abs(C[1, 1] - C[2, 1])) + C[2, 1] * ac_ge + C[1, 1] * ac_lt
        return jnp.stack([lbx, lby]), jnp.stack([ubx, uby])

    h = inputs[:, 0, :]
    outs = [h]
    for t in range(1, T):
        r = returns_partition[:, t - 1, :]
        adj = h * (1.0 + r) / (1.0 + jnp.sum(h * r, axis=0, keepdims=True))
        lb, ub = bounds(adj)
        ing = w_in * inputs[:, t, :] + w_h * adj - lb
        ing2 = w_fc1 * relu(ing) + ub - lb
        h = w_fc2 * relu(ing2) + ub
        outs.append(h)
    return jnp.stack(outs, axis=1)


if __name__ == "__main__":
    # dim_size=2 (two assets), input_size=hidden_size=1 (implied), seq=8, batch=8.
    D, T, B = 2, 8, 8
    key = jax.random.PRNGKey(0)
    k1, k2, k3 = jax.random.split(key, 3)
    inputs = jax.random.uniform(k1, (D, T, B), jnp.float32, 0.1, 0.6)
    returns_partition = 0.05 * jax.random.normal(k2, (D, T, B), jnp.float32)
    target = jax.random.uniform(k3, (D,), jnp.float32, 0.2, 0.5)
    # Deterministic rnn.rotate_param.weight (the only non-constant parameter of the forward).
    rotate_w = jnp.array([[0.7, -0.2], [0.3, 0.9]], jnp.float32)

    output, hidden = wealth_rnn2_forward(inputs, target, returns_partition, rotate_w)
    output = jax.block_until_ready(output)

    ref = _reference(inputs, target, returns_partition, rotate_w)
    np.testing.assert_allclose(np.asarray(output), np.asarray(ref), rtol=1e-5, atol=1e-5)
    print("KERNEL_OK")
</pallas_src>

<mosaic_0001>
module attributes {stable_mosaic.version = 11 : i64} {
  func.func @_no_trade_rnn_kernel(%arg0: i32, %arg1: i32, %arg2: memref<14xf32, #tpu.memory_space<smem>>, %arg3: memref<2x8x128xf32, #tpu.memory_space<vmem>>, %arg4: memref<2x8x8x128xf32, #tpu.memory_space<vmem>>, %arg5: memref<2x8x8x128xf32, #tpu.memory_space<vmem>>, %arg6: memref<8x128xf32, #tpu.memory_space<vmem>>, %arg7: memref<8x128xf32, #tpu.memory_space<vmem>>, %arg8: memref<8x128xf32, #tpu.memory_space<vmem>>, %arg9: memref<8x128xf32, #tpu.memory_space<vmem>>) attributes {dimension_semantics = [#tpu.dimension_semantics<parallel>, #tpu.dimension_semantics<arbitrary>], iteration_bounds = array<i64: 1, 1>, scalar_prefetch = 1 : i64, scratch_operands = 4 : i64, tpu.core_type = #tpu.core_type<tc>, window_params = [{transform_indices = @transform_0, window_bounds = array<i64: 2, 8, 128>}, {transform_indices = @transform_1, window_bounds = array<i64: 2, 8, 8, 128>}, {transform_indices = @transform_2, window_bounds = array<i64: 2, 8, 8, 128>}]} {
    %c0 = arith.constant 0 : index
    %0 = memref.load %arg2[%c0] : memref<14xf32, #tpu.memory_space<smem>>
    %c1 = arith.constant 1 : index
    %1 = memref.load %arg2[%c1] : memref<14xf32, #tpu.memory_space<smem>>
    %c2 = arith.constant 2 : index
    %2 = memref.load %arg2[%c2] : memref<14xf32, #tpu.memory_space<smem>>
    %c3 = arith.constant 3 : index
    %3 = memref.load %arg2[%c3] : memref<14xf32, #tpu.memory_space<smem>>
    %c4 = arith.constant 4 : index
    %4 = memref.load %arg2[%c4] : memref<14xf32, #tpu.memory_space<smem>>
    %c5 = arith.constant 5 : index
    %5 = memref.load %arg2[%c5] : memref<14xf32, #tpu.memory_space<smem>>
    %c6 = arith.constant 6 : index
    %6 = memref.load %arg2[%c6] : memref<14xf32, #tpu.memory_space<smem>>
    %c7 = arith.constant 7 : index
    %7 = memref.load %arg2[%c7] : memref<14xf32, #tpu.memory_space<smem>>
    %c8 = arith.constant 8 : index
    %8 = memref.load %arg2[%c8] : memref<14xf32, #tpu.memory_space<smem>>
    %c9 = arith.constant 9 : index
    %9 = memref.load %arg2[%c9] : memref<14xf32, #tpu.memory_space<smem>>
    %c10 = arith.constant 10 : index
    %10 = memref.load %arg2[%c10] : memref<14xf32, #tpu.memory_space<smem>>
    %c11 = arith.constant 11 : index
    %11 = memref.load %arg2[%c11] : memref<14xf32, #tpu.memory_space<smem>>
    %c12 = arith.constant 12 : index
    %12 = memref.load %arg2[%c12] : memref<14xf32, #tpu.memory_space<smem>>
    %c13 = arith.constant 13 : index
    %13 = memref.load %arg2[%c13] : memref<14xf32, #tpu.memory_space<smem>>
    %c0_i32 = arith.constant 0 : i32
    %14 = arith.cmpi eq, %arg1, %c0_i32 : i32
    %15 = arith.extui %14 : i1 to i32
    %cst = arith.constant 1.000000e+00 : f32
    %cst_0 = arith.constant 2.000000e+00 : f32
    %c0_i32_1 = arith.constant 0 : i32
    %16 = arith.cmpi ne, %15, %c0_i32_1 : i32
    scf.if %16 {
      %c0_6 = arith.constant 0 : index
      %c0_7 = arith.constant 0 : index
      %c0_8 = arith.constant 0 : index
      %20 = vector.load %arg3[%c0_6, %c0_7, %c0_8] : memref<2x8x128xf32, #tpu.memory_space<vmem>>, vector<1x8x128xf32>
      %21 = vector.shape_cast %20 : vector<1x8x128xf32> to vector<8x128xf32>
      %c1_9 = arith.constant 1 : index
      %c0_10 = arith.constant 0 : index
      %c0_11 = arith.constant 0 : index
      %22 = vector.load %arg3[%c1_9, %c0_10, %c0_11] : memref<2x8x128xf32, #tpu.memory_space<vmem>>, vector<1x8x128xf32>
      %23 = vector.shape_cast %22 : vector<1x8x128xf32> to vector<8x128xf32>
      %c0_12 = arith.constant 0 : index
      %c0_13 = arith.constant 0 : index
      %c0_14 = arith.constant 0 : index
      %c0_15 = arith.constant 0 : index
      %24 = vector.load %arg5[%c0_12, %c0_13, %c0_14, %c0_15] : memref<2x8x8x128xf32, #tpu.memory_space<vmem>>, vector<1x1x8x128xf32>
      %25 = vector.shape_cast %24 : vector<1x1x8x128xf32> to vector<8x128xf32>
      %26 = vector.shape_cast %21 : vector<8x128xf32> to vector<1x1x8x128xf32>
      tpu.vector_store %arg5[%c0_12, %c0_13, %c0_14, %c0_15], %26 {strides = array<i32>} : memref<2x8x8x128xf32, #tpu.memory_space<vmem>>, vector<1x1x8x128xf32>,
      %c1_16 = arith.constant 1 : index
      %c0_17 = arith.constant 0 : index
      %c0_18 = arith.constant 0 : index
      %c0_19 = arith.constant 0 : index
      %27 = vector.load %arg5[%c1_16, %c0_17, %c0_18, %c0_19] : memref<2x8x8x128xf32, #tpu.memory_space<vmem>>, vector<1x1x8x128xf32>
      %28 = vector.shape_cast %27 : vector<1x1x8x128xf32> to vector<8x128xf32>
      %29 = vector.shape_cast %23 : vector<8x128xf32> to vector<1x1x8x128xf32>
      tpu.vector_store %arg5[%c1_16, %c0_17, %c0_18, %c0_19], %29 {strides = array<i32>} : memref<2x8x8x128xf32, #tpu.memory_space<vmem>>, vector<1x1x8x128xf32>,
      %c0_20 = arith.constant 0 : index
      %c0_21 = arith.constant 0 : index
      %c0_22 = arith.constant 0 : index
      %c0_23 = arith.constant 0 : index
      %30 = vector.load %arg4[%c0_20, %c0_21, %c0_22, %c0_23] : memref<2x8x8x128xf32, #tpu.memory_space<vmem>>, vector<1x1x8x128xf32>
      %31 = vector.shape_cast %30 : vector<1x1x8x128xf32> to vector<8x128xf32>
      %c1_24 = arith.constant 1 : index
      %c0_25 = arith.constant 0 : index
      %c0_26 = arith.constant 0 : index
      %c0_27 = arith.constant 0 : index
      %32 = vector.load %arg4[%c1_24, %c0_25, %c0_26, %c0_27] : memref<2x8x8x128xf32, #tpu.memory_space<vmem>>, vector<1x1x8x128xf32>
      %33 = vector.shape_cast %32 : vector<1x1x8x128xf32> to vector<8x128xf32>
      %c1_i32 = arith.constant 1 : i32
      %34 = arith.mulf %21, %31 : vector<8x128xf32>
      %35 = arith.mulf %23, %33 : vector<8x128xf32>
      %36 = vector.broadcast %cst : f32 to vector<8x128xf32>
      %37 = arith.addf %36, %34 : vector<8x128xf32>
      %38 = arith.addf %37, %35 : vector<8x128xf32>
      %39 = tpu.reciprocal %38 {approx = true} : vector<8x128xf32> -> vector<8x128xf32>
      %40 = arith.mulf %38, %39 : vector<8x128xf32>
      %41 = vector.broadcast %cst_0 : f32 to vector<8x128xf32>
      %42 = arith.subf %41, %40 : vector<8x128xf32>
      %43 = arith.mulf %39, %42 : vector<8x128xf32>
      %44 = arith.addf %21, %34 : vector<8x128xf32>
      %45 = arith.mulf %44, %43 : vector<8x128xf32>
      %46 = arith.addf %23, %35 : vector<8x128xf32>
      %47 = arith.mulf %46, %43 : vector<8x128xf32>
      %48 = vector.broadcast %2 : f32 to vector<8x128xf32>
      %49 = arith.subf %47, %48 : vector<8x128xf32>
      %50 = vector.broadcast %1 : f32 to vector<8x128xf32>
      %51 = arith.mulf %49, %50 : vector<8x128xf32>
      %cst_28 = arith.constant 0.000000e+00 : f32
      %52 = vector.broadcast %cst_28 : f32 to vector<8x128xf32>
      %53 = arith.maximumf %51, %52 : vector<8x128xf32>
      %cst_29 = arith.constant 0.000000e+00 : f32
      %54 = vector.broadcast %cst_29 : f32 to vector<8x128xf32>
      %55 = arith.subf %54, %53 : vector<8x128xf32>
      %56 = vector.broadcast %3 : f32 to vector<8x128xf32>
      %57 = arith.addf %55, %56 : vector<8x128xf32>
      %cst_30 = arith.constant 0.000000e+00 : f32
      %58 = vector.broadcast %cst_30 : f32 to vector<8x128xf32>
      %59 = arith.maximumf %57, %58 : vector<8x128xf32>
      %cst_31 = arith.constant 0.000000e+00 : f32
      %60 = vector.broadcast %cst_31 : f32 to vector<8x128xf32>
      %61 = arith.subf %60, %59 : vector<8x128xf32>
      %62 = vector.broadcast %4 : f32 to vector<8x128xf32>
      %63 = arith.addf %61, %62 : vector<8x128xf32>
      %64 = vector.broadcast %5 : f32 to vector<8x128xf32>
      %65 = arith.subf %47, %64 : vector<8x128xf32>
      %66 = vector.broadcast %1 : f32 to vector<8x128xf32>
      %67 = arith.mulf %65, %66 : vector<8x128xf32>
      %cst_32 = arith.constant 0.000000e+00 : f32
      %68 = vector.broadcast %cst_32 : f32 to vector<8x128xf32>
      %69 = arith.maximumf %67, %68 : vector<8x128xf32>
      %cst_33 = arith.constant 0.000000e+00 : f32
      %70 = vector.broadcast %cst_33 : f32 to vector<8x128xf32>
      %71 = arith.subf %70, %69 : vector<8x128xf32>
      %72 = vector.broadcast %6 : f32 to vector<8x128xf32>
      %73 = arith.addf %71, %72 : vector<8x128xf32>
      %cst_34 = arith.constant 0.000000e+00 : f32
      %74 = vector.broadcast %cst_34 : f32 to vector<8x128xf32>
      %75 = arith.maximumf %73, %74 : vector<8x128xf32>
      %cst_35 = arith.constant 0.000000e+00 : f32
      %76 = vector.broadcast %cst_35 : f32 to vector<8x128xf32>
      %77 = arith.subf %76, %75 : vector<8x128xf32>
      %78 = vector.broadcast %7 : f32 to vector<8x128xf32>
      %79 = arith.addf %77, %78 : vector<8x128xf32>
      %80 = vector.broadcast %8 : f32 to vector<8x128xf32>
      %81 = arith.subf %45, %80 : vector<8x128xf32>
      %82 = vector.broadcast %0 : f32 to vector<8x128xf32>
      %83 = arith.mulf %81, %82 : vector<8x128xf32>
      %cst_36 = arith.constant 0.000000e+00 : f32
      %84 = vector.broadcast %cst_36 : f32 to vector<8x128xf32>
      %85 = arith.maximumf %83, %84 : vector<8x128xf32>
      %cst_37 = arith.constant 0.000000e+00 : f32
      %86 = vector.broadcast %cst_37 : f32 to vector<8x128xf32>
      %87 = arith.subf %86, %85 : vector<8x128xf32>
      %88 = vector.broadcast %9 : f32 to vector<8x128xf32>
      %89 = arith.addf %87, %88 : vector<8x128xf32>
      %cst_38 = arith.constant 0.000000e+00 : f32
      %90 = vector.broadcast %cst_38 : f32 to vector<8x128xf32>
      %91 = arith.maximumf %89, %90 : vector<8x128xf32>
      %cst_39 = arith.constant 0.000000e+00 : f32
      %92 = vector.broadcast %cst_39 : f32 to vector<8x128xf32>
      %93 = arith.subf %92, %91 : vector<8x128xf32>
      %94 = vector.broadcast %10 : f32 to vector<8x128xf32>
      %95 = arith.addf %93, %94 : vector<8x128xf32>
      %96 = vector.broadcast %11 : f32 to vector<8x128xf32>
      %97 = arith.subf %45, %96 : vector<8x128xf32>
      %98 = vector.broadcast %0 : f32 to vector<8x128xf32>
      %99 = arith.mulf %97, %98 : vector<8x128xf32>
      %cst_40 = arith.constant 0.000000e+00 : f32
      %100 = vector.broadcast %cst_40 : f32 to vector<8x128xf32>
      %101 = arith.maximumf %99, %100 : vector<8x128xf32>
      %cst_41 = arith.constant 0.000000e+00 : f32
      %102 = vector.broadcast %cst_41 : f32 to vector<8x128xf32>
      %103 = arith.subf %102, %101 : vector<8x128xf32>
      %104 = vector.broadcast %12 : f32 to vector<8x128xf32>
      %105 = arith.addf %103, %104 : vector<8x128xf32>
      %cst_42 = arith.constant 0.000000e+00 : f32
      %106 = vector.broadcast %cst_42 : f32 to vector<8x128xf32>
      %107 = arith.maximumf %105, %106 : vector<8x128xf32>
      %cst_43 = arith.constant 0.000000e+00 : f32
      %108 = vector.broadcast %cst_43 : f32 to vector<8x128xf32>
      %109 = arith.subf %108, %107 : vector<8x128xf32>
      %110 = vector.broadcast %13 : f32 to vector<8x128xf32>
      %111 = arith.addf %109, %110 : vector<8x128xf32>
      %112 = arith.subf %45, %63 : vector<8x128xf32>
      %cst_44 = arith.constant 0.000000e+00 : f32
      %113 = vector.broadcast %cst_44 : f32 to vector<8x128xf32>
      %114 = arith.maximumf %112, %113 : vector<8x128xf32>
      %cst_45 = arith.constant 0.000000e+00 : f32
      %115 = vector.broadcast %cst_45 : f32 to vector<8x128xf32>
      %116 = arith.subf %115, %114 : vector<8x128xf32>
      %117 = arith.addf %116, %79 : vector<8x128xf32>
      %118 = arith.subf %117, %63 : vector<8x128xf32>
      %cst_46 = arith.constant 0.000000e+00 : f32
      %119 = vector.broadcast %cst_46 : f32 to vector<8x128xf32>
      %120 = arith.maximumf %118, %119 : vector<8x128xf32>
      %cst_47 = arith.constant 0.000000e+00 : f32
      %121 = vector.broadcast %cst_47 : f32 to vector<8x128xf32>
      %122 = arith.subf %121, %120 : vector<8x128xf32>
      %123 = arith.addf %122, %79 : vector<8x128xf32>
      %124 = arith.subf %47, %95 : vector<8x128xf32>
      %cst_48 = arith.constant 0.000000e+00 : f32
      %125 = vector.broadcast %cst_48 : f32 to vector<8x128xf32>
      %126 = arith.maximumf %124, %125 : vector<8x128xf32>
      %cst_49 = arith.constant 0.000000e+00 : f32
      %127 = vector.broadcast %cst_49 : f32 to vector<8x128xf32>
      %128 = arith.subf %127, %126 : vector<8x128xf32>
      %129 = arith.addf %128, %111 : vector<8x128xf32>
      %130 = arith.subf %129, %95 : vector<8x128xf32>
      %cst_50 = arith.constant 0.000000e+00 : f32
      %131 = vector.broadcast %cst_50 : f32 to vector<8x128xf32>
      %132 = arith.maximumf %130, %131 : vector<8x128xf32>
      %cst_51 = arith.constant 0.000000e+00 : f32
      %133 = vector.broadcast %cst_51 : f32 to vector<8x128xf32>
      %134 = arith.subf %133, %132 : vector<8x128xf32>
      %135 = arith.addf %134, %111 : vector<8x128xf32>
      %c0_52 = arith.constant 0 : index
      %136 = arith.index_cast %c1_i32 : i32 to index
      %c0_53 = arith.constant 0 : index
      %c0_54 = arith.constant 0 : index
      %137 = vector.load %arg5[%c0_52, %136, %c0_53, %c0_54] : memref<2x8x8x128xf32, #tpu.memory_space<vmem>>, vector<1x1x8x128xf32>
      %138 = vector.shape_cast %137 : vector<1x1x8x128xf32> to vector<8x128xf32>
      %139 = vector.shape_cast %123 : vector<8x128xf32> to vector<1x1x8x128xf32>
      tpu.vector_store %arg5[%c0_52, %136, %c0_53, %c0_54], %139 {strides = array<i32>} : memref<2x8x8x128xf32, #tpu.memory_space<vmem>>, vector<1x1x8x128xf32>,
      %c1_55 = arith.constant 1 : index
      %140 = arith.index_cast %c1_i32 : i32 to index
      %c0_56 = arith.constant 0 : index
      %c0_57 = arith.constant 0 : index
      %141 = vector.load %arg5[%c1_55, %140, %c0_56, %c0_57] : memref<2x8x8x128xf32, #tpu.memory_space<vmem>>, vector<1x1x8x128xf32>
      %142 = vector.shape_cast %141 : vector<1x1x8x128xf32> to vector<8x128xf32>
      %143 = vector.shape_cast %135 : vector<8x128xf32> to vector<1x1x8x128xf32>
      tpu.vector_store %arg5[%c1_55, %140, %c0_56, %c0_57], %143 {strides = array<i32>} : memref<2x8x8x128xf32, #tpu.memory_space<vmem>>, vector<1x1x8x128xf32>,
      %c0_58 = arith.constant 0 : index
      %144 = arith.index_cast %c1_i32 : i32 to index
      %c0_59 = arith.constant 0 : index
      %c0_60 = arith.constant 0 : index
      %145 = vector.load %arg4[%c0_58, %144, %c0_59, %c0_60] : memref<2x8x8x128xf32, #tpu.memory_space<vmem>>, vector<1x1x8x128xf32>
      %146 = vector.shape_cast %145 : vector<1x1x8x128xf32> to vector<8x128xf32>
      %c1_61 = arith.constant 1 : index
      %147 = arith.index_cast %c1_i32 : i32 to index
      %c0_62 = arith.constant 0 : index
      %c0_63 = arith.constant 0 : index
      %148 = vector.load %arg4[%c1_61, %147, %c0_62, %c0_63] : memref<2x8x8x128xf32, #tpu.memory_space<vmem>>, vector<1x1x8x128xf32>
      %149 = vector.shape_cast %148 : vector<1x1x8x128xf32> to vector<8x128xf32>
      %c2_i32 = arith.constant 2 : i32
      %150 = arith.mulf %123, %146 : vector<8x128xf32>
      %151 = arith.mulf %135, %149 : vector<8x128xf32>
      %152 = vector.broadcast %cst : f32 to vector<8x128xf32>
      %153 = arith.addf %152, %150 : vector<8x128xf32>
      %154 = arith.addf %153, %151 : vector<8x128xf32>
      %155 = tpu.reciprocal %154 {approx = true} : vector<8x128xf32> -> vector<8x128xf32>
      %156 = arith.mulf %154, %155 : vector<8x128xf32>
      %157 = vector.broadcast %cst_0 : f32 to vector<8x128xf32>
      %158 = arith.subf %157, %156 : vector<8x128xf32>
      %159 = arith.mulf %155, %158 : vector<8x128xf32>
      %160 = arith.addf %123, %150 : vector<8x128xf32>
      %161 = arith.mulf %160, %159 : vector<8x128xf32>
      %162 = arith.addf %135, %151 : vector<8x128xf32>
      %163 = arith.mulf %162, %159 : vector<8x128xf32>
      %164 = vector.broadcast %2 : f32 to vector<8x128xf32>
      %165 = arith.subf %163, %164 : vector<8x128xf32>
      %166 = vector.broadcast %1 : f32 to vector<8x128xf32>
      %167 = arith.mulf %165, %166 : vector<8x128xf32>
      %cst_64 = arith.constant 0.000000e+00 : f32
      %168 = vector.broadcast %cst_64 : f32 to vector<8x128xf32>
      %169 = arith.maximumf %167, %168 : vector<8x128xf32>
      %cst_65 = arith.constant 0.000000e+00 : f32
      %170 = vector.broadcast %cst_65 : f32 to vector<8x128xf32>
      %171 = arith.subf %170, %169 : vector<8x128xf32>
      %172 = vector.broadcast %3 : f32 to vector<8x128xf32>
      %173 = arith.addf %171, %172 : vector<8x128xf32>
      %cst_66 = arith.constant 0.000000e+00 : f32
      %174 = vector.broadcast %cst_66 : f32 to vector<8x128xf32>
      %175 = arith.maximumf %173, %174 : vector<8x128xf32>
      %cst_67 = arith.constant 0.000000e+00 : f32
      %176 = vector.broadcast %cst_67 : f32 to vector<8x128xf32>
      %177 = arith.subf %176, %175 : vector<8x128xf32>
      %178 = vector.broadcast %4 : f32 to vector<8x128xf32>
      %179 = arith.addf %177, %178 : vector<8x128xf32>
      %180 = vector.broadcast %5 : f32 to vector<8x128xf32>
      %181 = arith.subf %163, %180 : vector<8x128xf32>
      %182 = vector.broadcast %1 : f32 to vector<8x128xf32>
      %183 = arith.mulf %181, %182 : vector<8x128xf32>
      %cst_68 = arith.constant 0.000000e+00 : f32
      %184 = vector.broadcast %cst_68 : f32 to vector<8x128xf32>
      %185 = arith.maximumf %183, %184 : vector<8x128xf32>
      %cst_69 = arith.constant 0.000000e+00 : f32
      %186 = vector.broadcast %cst_69 : f32 to vector<8x128xf32>
      %187 = arith.subf %186, %185 : vector<8x128xf32>
      %188 = vector.broadcast %6 : f32 to vector<8x128xf32>
      %189 = arith.addf %187, %188 : vector<8x128xf32>
      %cst_70 = arith.constant 0.000000e+00 : f32
      %190 = vector.broadcast %cst_70 : f32 to vector<8x128xf32>
      %191 = arith.maximumf %189, %190 : vector<8x128xf32>
      %cst_71 = arith.constant 0.000000e+00 : f32
      %192 = vector.broadcast %cst_71 : f32 to vector<8x128xf32>
      %193 = arith.subf %192, %191 : vector<8x128xf32>
      %194 = vector.broadcast %7 : f32 to vector<8x128xf32>
      %195 = arith.addf %193, %194 : vector<8x128xf32>
      %196 = vector.broadcast %8 : f32 to vector<8x128xf32>
      %197 = arith.subf %161, %196 : vector<8x128xf32>
      %198 = vector.broadcast %0 : f32 to vector<8x128xf32>
      %199 = arith.mulf %197, %198 : vector<8x128xf32>
      %cst_72 = arith.constant 0.000000e+00 : f32
      %200 = vector.broadcast %cst_72 : f32 to vector<8x128xf32>
      %201 = arith.maximumf %199, %200 : vector<8x128xf32>
      %cst_73 = arith.constant 0.000000e+00 : f32
      %202 = vector.broadcast %cst_73 : f32 to vector<8x128xf32>
      %203 = arith.subf %202, %201 : vector<8x128xf32>
      %204 = vector.broadcast %9 : f32 to vector<8x128xf32>
      %205 = arith.addf %203, %204 : vector<8x128xf32>
      %cst_74 = arith.constant 0.000000e+00 : f32
      %206 = vector.broadcast %cst_74 : f32 to vector<8x128xf32>
      %207 = arith.maximumf %205, %206 : vector<8x128xf32>
      %cst_75 = arith.constant 0.000000e+00 : f32
      %208 = vector.broadcast %cst_75 : f32 to vector<8x128xf32>
      %209 = arith.subf %208, %207 : vector<8x128xf32>
      %210 = vector.broadcast %10 : f32 to vector<8x128xf32>
      %211 = arith.addf %209, %210 : vector<8x128xf32>
      %212 = vector.broadcast %11 : f32 to vector<8x128xf32>
      %213 = arith.subf %161, %212 : vector<8x128xf32>
      %214 = vector.broadcast %0 : f32 to vector<8x128xf32>
      %215 = arith.mulf %213, %214 : vector<8x128xf32>
      %cst_76 = arith.constant 0.000000e+00 : f32
      %216 = vector.broadcast %cst_76 : f32 to vector<8x128xf32>
      %217 = arith.maximumf %215, %216 : vector<8x128xf32>
      %cst_77 = arith.constant 0.000000e+00 : f32
      %218 = vector.broadcast %cst_77 : f32 to vector<8x128xf32>
      %219 = arith.subf %218, %217 : vector<8x128xf32>
      %220 = vector.broadcast %12 : f32 to vector<8x128xf32>
      %221 = arith.addf %219, %220 : vector<8x128xf32>
      %cst_78 = arith.constant 0.000000e+00 : f32
      %222 = vector.broadcast %cst_78 : f32 to vector<8x128xf32>
      %223 = arith.maximumf %221, %222 : vector<8x128xf32>
      %cst_79 = arith.constant 0.000000e+00 : f32
      %224 = vector.broadcast %cst_79 : f32 to vector<8x128xf32>
      %225 = arith.subf %224, %223 : vector<8x128xf32>
      %226 = vector.broadcast %13 : f32 to vector<8x128xf32>
      %227 = arith.addf %225, %226 : vector<8x128xf32>
      %228 = arith.subf %161, %179 : vector<8x128xf32>
      %cst_80 = arith.constant 0.000000e+00 : f32
      %229 = vector.broadcast %cst_80 : f32 to vector<8x128xf32>
      %230 = arith.maximumf %228, %229 : vector<8x128xf32>
      %cst_81 = arith.constant 0.000000e+00 : f32
      %231 = vector.broadcast %cst_81 : f32 to vector<8x128xf32>
      %232 = arith.subf %231, %230 : vector<8x128xf32>
      %233 = arith.addf %232, %195 : vector<8x128xf32>
      %234 = arith.subf %233, %179 : vector<8x128xf32>
      %cst_82 = arith.constant 0.000000e+00 : f32
      %235 = vector.broadcast %cst_82 : f32 to vector<8x128xf32>
      %236 = arith.maximumf %234, %235 : vector<8x128xf32>
      %cst_83 = arith.constant 0.000000e+00 : f32
      %237 = vector.broadcast %cst_83 : f32 to vector<8x128xf32>
      %238 = arith.subf %237, %236 : vector<8x128xf32>
      %239 = arith.addf %238, %195 : vector<8x128xf32>
      %240 = arith.subf %163, %211 : vector<8x128xf32>
      %cst_84 = arith.constant 0.000000e+00 : f32
      %241 = vector.broadcast %cst_84 : f32 to vector<8x128xf32>
      %242 = arith.maximumf %240, %241 : vector<8x128xf32>
      %cst_85 = arith.constant 0.000000e+00 : f32
      %243 = vector.broadcast %cst_85 : f32 to vector<8x128xf32>
      %244 = arith.subf %243, %242 : vector<8x128xf32>
      %245 = arith.addf %244, %227 : vector<8x128xf32>
      %246 = arith.subf %245, %211 : vector<8x128xf32>
      %cst_86 = arith.constant 0.000000e+00 : f32
      %247 = vector.broadcast %cst_86 : f32 to vector<8x128xf32>
      %248 = arith.maximumf %246, %247 : vector<8x128xf32>
      %cst_87 = arith.constant 0.000000e+00 : f32
      %249 = vector.broadcast %cst_87 : f32 to vector<8x128xf32>
      %250 = arith.subf %249, %248 : vector<8x128xf32>
      %251 = arith.addf %250, %227 : vector<8x128xf32>
      %c0_88 = arith.constant 0 : index
      %252 = arith.index_cast %c2_i32 : i32 to index
      %c0_89 = arith.constant 0 : index
      %c0_90 = arith.constant 0 : index
      %253 = vector.load %arg5[%c0_88, %252, %c0_89, %c0_90] : memref<2x8x8x128xf32, #tpu.memory_space<vmem>>, vector<1x1x8x128xf32>
      %254 = vector.shape_cast %253 : vector<1x1x8x128xf32> to vector<8x128xf32>
      %255 = vector.shape_cast %239 : vector<8x128xf32> to vector<1x1x8x128xf32>
      tpu.vector_store %arg5[%c0_88, %252, %c0_89, %c0_90], %255 {strides = array<i32>} : memref<2x8x8x128xf32, #tpu.memory_space<vmem>>, vector<1x1x8x128xf32>,
      %c1_91 = arith.constant 1 : index
      %256 = arith.index_cast %c2_i32 : i32 to index
      %c0_92 = arith.constant 0 : index
      %c0_93 = arith.constant 0 : index
      %257 = vector.load %arg5[%c1_91, %256, %c0_92, %c0_93] : memref<2x8x8x128xf32, #tpu.memory_space<vmem>>, vector<1x1x8x128xf32>
      %258 = vector.shape_cast %257 : vector<1x1x8x128xf32> to vector<8x128xf32>
      %259 = vector.shape_cast %251 : vector<8x128xf32> to vector<1x1x8x128xf32>
      tpu.vector_store %arg5[%c1_91, %256, %c0_92, %c0_93], %259 {strides = array<i32>} : memref<2x8x8x128xf32, #tpu.memory_space<vmem>>, vector<1x1x8x128xf32>,
      %c0_94 = arith.constant 0 : index
      %260 = arith.index_cast %c2_i32 : i32 to index
      %c0_95 = arith.constant 0 : index
      %c0_96 = arith.constant 0 : index
      %261 = vector.load %arg4[%c0_94, %260, %c0_95, %c0_96] : memref<2x8x8x128xf32, #tpu.memory_space<vmem>>, vector<1x1x8x128xf32>
      %262 = vector.shape_cast %261 : vector<1x1x8x128xf32> to vector<8x128xf32>
      %c1_97 = arith.constant 1 : index
      %263 = arith.index_cast %c2_i32 : i32 to index
      %c0_98 = arith.constant 0 : index
      %c0_99 = arith.constant 0 : index
      %264 = vector.load %arg4[%c1_97, %263, %c0_98, %c0_99] : memref<2x8x8x128xf32, #tpu.memory_space<vmem>>, vector<1x1x8x128xf32>
      %265 = vector.shape_cast %264 : vector<1x1x8x128xf32> to vector<8x128xf32>
      %c3_i32 = arith.constant 3 : i32
      %266 = arith.mulf %239, %262 : vector<8x128xf32>
      %267 = arith.mulf %251, %265 : vector<8x128xf32>
      %268 = vector.broadcast %cst : f32 to vector<8x128xf32>
      %269 = arith.addf %268, %266 : vector<8x128xf32>
      %270 = arith.addf %269, %267 : vector<8x128xf32>
      %271 = tpu.reciprocal %270 {approx = true} : vector<8x128xf32> -> vector<8x128xf32>
      %272 = arith.mulf %270, %271 : vector<8x128xf32>
      %273 = vector.broadcast %cst_0 : f32 to vector<8x128xf32>
      %274 = arith.subf %273, %272 : vector<8x128xf32>
      %275 = arith.mulf %271, %274 : vector<8x128xf32>
      %276 = arith.addf %239, %266 : vector<8x128xf32>
      %277 = arith.mulf %276, %275 : vector<8x128xf32>
      %278 = arith.addf %251, %267 : vector<8x128xf32>
      %279 = arith.mulf %278, %275 : vector<8x128xf32>
      %280 = vector.broadcast %2 : f32 to vector<8x128xf32>
      %281 = arith.subf %279, %280 : vector<8x128xf32>
      %282 = vector.broadcast %1 : f32 to vector<8x128xf32>
      %283 = arith.mulf %281, %282 : vector<8x128xf32>
      %cst_100 = arith.constant 0.000000e+00 : f32
      %284 = vector.broadcast %cst_100 : f32 to vector<8x128xf32>
      %285 = arith.maximumf %283, %284 : vector<8x128xf32>
      %cst_101 = arith.constant 0.000000e+00 : f32
      %286 = vector.broadcast %cst_101 : f32 to vector<8x128xf32>
      %287 = arith.subf %286, %285 : vector<8x128xf32>
      %288 = vector.broadcast %3 : f32 to vector<8x128xf32>
      %289 = arith.addf %287, %288 : vector<8x128xf32>
      %cst_102 = arith.constant 0.000000e+00 : f32
      %290 = vector.broadcast %cst_102 : f32 to vector<8x128xf32>
      %291 = arith.maximumf %289, %290 : vector<8x128xf32>
      %cst_103 = arith.constant 0.000000e+00 : f32
      %292 = vector.broadcast %cst_103 : f32 to vector<8x128xf32>
      %293 = arith.subf %292, %291 : vector<8x128xf32>
      %294 = vector.broadcast %4 : f32 to vector<8x128xf32>
      %295 = arith.addf %293, %294 : vector<8x128xf32>
      %296 = vector.broadcast %5 : f32 to vector<8x128xf32>
      %297 = arith.subf %279, %296 : vector<8x128xf32>
      %298 = vector.broadcast %1 : f32 to vector<8x128xf32>
      %299 = arith.mulf %297, %298 : vector<8x128xf32>
      %cst_104 = arith.constant 0.000000e+00 : f32
      %300 = vector.broadcast %cst_104 : f32 to vector<8x128xf32>
      %301 = arith.maximumf %299, %300 : vector<8x128xf32>
      %cst_105 = arith.constant 0.000000e+00 : f32
      %302 = vector.broadcast %cst_105 : f32 to vector<8x128xf32>
      %303 = arith.subf %302, %301 : vector<8x128xf32>
      %304 = vector.broadcast %6 : f32 to vector<8x128xf32>
      %305 = arith.addf %303, %304 : vector<8x128xf32>
      %cst_106 = arith.constant 0.000000e+00 : f32
      %306 = vector.broadcast %cst_106 : f32 to vector<8x128xf32>
      %307 = arith.maximumf %305, %306 : vector<8x128xf32>
      %cst_107 = arith.constant 0.000000e+00 : f32
      %308 = vector.broadcast %cst_107 : f32 to vector<8x128xf32>
      %309 = arith.subf %308, %307 : vector<8x128xf32>
      %310 = vector.broadcast %7 : f32 to vector<8x128xf32>
      %311 = arith.addf %309, %310 : vector<8x128xf32>
      %312 = vector.broadcast %8 : f32 to vector<8x128xf32>
      %313 = arith.subf %277, %312 : vector<8x128xf32>
      %314 = vector.broadcast %0 : f32 to vector<8x128xf32>
      %315 = arith.mulf %313, %314 : vector<8x128xf32>
      %cst_108 = arith.constant 0.000000e+00 : f32
      %316 = vector.broadcast %cst_108 : f32 to vector<8x128xf32>
      %317 = arith.maximumf %315, %316 : vector<8x128xf32>
      %cst_109 = arith.constant 0.000000e+00 : f32
      %318 = vector.broadcast %cst_109 : f32 to vector<8x128xf32>
      %319 = arith.subf %318, %317 : vector<8x128xf32>
      %320 = vector.broadcast %9 : f32 to vector<8x128xf32>
      %321 = arith.addf %319, %320 : vector<8x128xf32>
      %cst_110 = arith.constant 0.000000e+00 : f32
      %322 = vector.broadcast %cst_110 : f32 to vector<8x128xf32>
      %323 = arith.maximumf %321, %322 : vector<8x128xf32>
      %cst_111 = arith.constant 0.000000e+00 : f32
      %324 = vector.broadcast %cst_111 : f32 to vector<8x128xf32>
      %325 = arith.subf %324, %323 : vector<8x128xf32>
      %326 = vector.broadcast %10 : f32 to vector<8x128xf32>
      %327 = arith.addf %325, %326 : vector<8x128xf32>
      %328 = vector.broadcast %11 : f32 to vector<8x128xf32>
      %329 = arith.subf %277, %328 : vector<8x128xf32>
      %330 = vector.broadcast %0 : f32 to vector<8x128xf32>
      %331 = arith.mulf %329, %330 : vector<8x128xf32>
      %cst_112 = arith.constant 0.000000e+00 : f32
      %332 = vector.broadcast %cst_112 : f32 to vector<8x128xf32>
      %333 = arith.maximumf %331, %332 : vector<8x128xf32>
      %cst_113 = arith.constant 0.000000e+00 : f32
      %334 = vector.broadcast %cst_113 : f32 to vector<8x128xf32>
      %335 = arith.subf %334, %333 : vector<8x128xf32>
      %336 = vector.broadcast %12 : f32 to vector<8x128xf32>
      %337 = arith.addf %335, %336 : vector<8x128xf32>
      %cst_114 = arith.constant 0.000000e+00 : f32
      %338 = vector.broadcast %cst_114 : f32 to vector<8x128xf32>
      %339 = arith.maximumf %337, %338 : vector<8x128xf32>
      %cst_115 = arith.constant 0.000000e+00 : f32
      %340 = vector.broadcast %cst_115 : f32 to vector<8x128xf32>
      %341 = arith.subf %340, %339 : vector<8x128xf32>
      %342 = vector.broadcast %13 : f32 to vector<8x128xf32>
      %343 = arith.addf %341, %342 : vector<8x128xf32>
      %344 = arith.subf %277, %295 : vector<8x128xf32>
      %cst_116 = arith.constant 0.000000e+00 : f32
      %345 = vector.broadcast %cst_116 : f32 to vector<8x128xf32>
      %346 = arith.maximumf %344, %345 : vector<8x128xf32>
      %cst_117 = arith.constant 0.000000e+00 : f32
      %347 = vector.broadcast %cst_117 : f32 to vector<8x128xf32>
      %348 = arith.subf %347, %346 : vector<8x128xf32>
      %349 = arith.addf %348, %311 : vector<8x128xf32>
      %350 = arith.subf %349, %295 : vector<8x128xf32>
      %cst_118 = arith.constant 0.000000e+00 : f32
      %351 = vector.broadcast %cst_118 : f32 to vector<8x128xf32>
      %352 = arith.maximumf %350, %351 : vector<8x128xf32>
      %cst_119 = arith.constant 0.000000e+00 : f32
      %353 = vector.broadcast %cst_119 : f32 to vector<8x128xf32>
      %354 = arith.subf %353, %352 : vector<8x128xf32>
      %355 = arith.addf %354, %311 : vector<8x128xf32>
      %356 = arith.subf %279, %327 : vector<8x128xf32>
      %cst_120 = arith.constant 0.000000e+00 : f32
      %357 = vector.broadcast %cst_120 : f32 to vector<8x128xf32>
      %358 = arith.maximumf %356, %357 : vector<8x128xf32>
      %cst_121 = arith.constant 0.000000e+00 : f32
      %359 = vector.broadcast %cst_121 : f32 to vector<8x128xf32>
      %360 = arith.subf %359, %358 : vector<8x128xf32>
      %361 = arith.addf %360, %343 : vector<8x128xf32>
      %362 = arith.subf %361, %327 : vector<8x128xf32>
      %cst_122 = arith.constant 0.000000e+00 : f32
      %363 = vector.broadcast %cst_122 : f32 to vector<8x128xf32>
      %364 = arith.maximumf %362, %363 : vector<8x128xf32>
      %cst_123 = arith.constant 0.000000e+00 : f32
      %365 = vector.broadcast %cst_123 : f32 to vector<8x128xf32>
      %366 = arith.subf %365, %364 : vector<8x128xf32>
      %367 = arith.addf %366, %343 : vector<8x128xf32>
      %c0_124 = arith.constant 0 : index
      %368 = arith.index_cast %c3_i32 : i32 to index
      %c0_125 = arith.constant 0 : index
      %c0_126 = arith.constant 0 : index
      %369 = vector.load %arg5[%c0_124, %368, %c0_125, %c0_126] : memref<2x8x8x128xf32, #tpu.memory_space<vmem>>, vector<1x1x8x128xf32>
      %370 = vector.shape_cast %369 : vector<1x1x8x128xf32> to vector<8x128xf32>
      %371 = vector.shape_cast %355 : vector<8x128xf32> to vector<1x1x8x128xf32>
      tpu.vector_store %arg5[%c0_124, %368, %c0_125, %c0_126], %371 {strides = array<i32>} : memref<2x8x8x128xf32, #tpu.memory_space<vmem>>, vector<1x1x8x128xf32>,
      %c1_127 = arith.constant 1 : index
      %372 = arith.index_cast %c3_i32 : i32 to index
      %c0_128 = arith.constant 0 : index
      %c0_129 = arith.constant 0 : index
      %373 = vector.load %arg5[%c1_127, %372, %c0_128, %c0_129] : memref<2x8x8x128xf32, #tpu.memory_space<vmem>>, vector<1x1x8x128xf32>
      %374 = vector.shape_cast %373 : vector<1x1x8x128xf32> to vector<8x128xf32>
      %375 = vector.shape_cast %367 : vector<8x128xf32> to vector<1x1x8x128xf32>
      tpu.vector_store %arg5[%c1_127, %372, %c0_128, %c0_129], %375 {strides = array<i32>} : memref<2x8x8x128xf32, #tpu.memory_space<vmem>>, vector<1x1x8x128xf32>,
      %c0_130 = arith.constant 0 : index
      %376 = arith.index_cast %c3_i32 : i32 to index
      %c0_131 = arith.constant 0 : index
      %c0_132 = arith.constant 0 : index
      %377 = vector.load %arg4[%c0_130, %376, %c0_131, %c0_132] : memref<2x8x8x128xf32, #tpu.memory_space<vmem>>, vector<1x1x8x128xf32>
      %378 = vector.shape_cast %377 : vector<1x1x8x128xf32> to vector<8x128xf32>
      %c1_133 = arith.constant 1 : index
      %379 = arith.index_cast %c3_i32 : i32 to index
      %c0_134 = arith.constant 0 : index
      %c0_135 = arith.constant 0 : index
      %380 = vector.load %arg4[%c1_133, %379, %c0_134, %c0_135] : memref<2x8x8x128xf32, #tpu.memory_space<vmem>>, vector<1x1x8x128xf32>
      %381 = vector.shape_cast %380 : vector<1x1x8x128xf32> to vector<8x128xf32>
      %c4_i32 = arith.constant 4 : i32
      %382 = arith.mulf %355, %378 : vector<8x128xf32>
      %383 = arith.mulf %367, %381 : vector<8x128xf32>
      %384 = vector.broadcast %cst : f32 to vector<8x128xf32>
      %385 = arith.addf %384, %382 : vector<8x128xf32>
      %386 = arith.addf %385, %383 : vector<8x128xf32>
      %387 = tpu.reciprocal %386 {approx = true} : vector<8x128xf32> -> vector<8x128xf32>
      %388 = arith.mulf %386, %387 : vector<8x128xf32>
      %389 = vector.broadcast %cst_0 : f32 to vector<8x128xf32>
      %390 = arith.subf %389, %388 : vector<8x128xf32>
      %391 = arith.mulf %387, %390 : vector<8x128xf32>
      %392 = arith.addf %355, %382 : vector<8x128xf32>
      %393 = arith.mulf %392, %391 : vector<8x128xf32>
      %394 = arith.addf %367, %383 : vector<8x128xf32>
      %395 = arith.mulf %394, %391 : vector<8x128xf32>
      %396 = vector.broadcast %2 : f32 to vector<8x128xf32>
      %397 = arith.subf %395, %396 : vector<8x128xf32>
      %398 = vector.broadcast %1 : f32 to vector<8x128xf32>
      %399 = arith.mulf %397, %398 : vector<8x128xf32>
      %cst_136 = arith.constant 0.000000e+00 : f32
      %400 = vector.broadcast %cst_136 : f32 to vector<8x128xf32>
      %401 = arith.maximumf %399, %400 : vector<8x128xf32>
      %cst_137 = arith.constant 0.000000e+00 : f32
      %402 = vector.broadcast %cst_137 : f32 to vector<8x128xf32>
      %403 = arith.subf %402, %401 : vector<8x128xf32>
      %404 = vector.broadcast %3 : f32 to vector<8x128xf32>
      %405 = arith.addf %403, %404 : vector<8x128xf32>
      %cst_138 = arith.constant 0.000000e+00 : f32
      %406 = vector.broadcast %cst_138 : f32 to vector<8x128xf32>
      %407 = arith.maximumf %405, %406 : vector<8x128xf32>
      %cst_139 = arith.constant 0.000000e+00 : f32
      %408 = vector.broadcast %cst_139 : f32 to vector<8x128xf32>
      %409 = arith.subf %408, %407 : vector<8x128xf32>
      %410 = vector.broadcast %4 : f32 to vector<8x128xf32>
      %411 = arith.addf %409, %410 : vector<8x128xf32>
      %412 = vector.broadcast %5 : f32 to vector<8x128xf32>
      %413 = arith.subf %395, %412 : vector<8x128xf32>
      %414 = vector.broadcast %1 : f32 to vector<8x128xf32>
      %415 = arith.mulf %413, %414 : vector<8x128xf32>
      %cst_140 = arith.constant 0.000000e+00 : f32
      %416 = vector.broadcast %cst_140 : f32 to vector<8x128xf32>
      %417 = arith.maximumf %415, %416 : vector<8x128xf32>
      %cst_141 = arith.constant 0.000000e+00 : f32
      %418 = vector.broadcast %cst_141 : f32 to vector<8x128xf32>
      %419 = arith.subf %418, %417 : vector<8x128xf32>
      %420 = vector.broadcast %6 : f32 to vector<8x128xf32>
      %421 = arith.addf %419, %420 : vector<8x128xf32>
      %cst_142 = arith.constant 0.000000e+00 : f32
      %422 = vector.broadcast %cst_142 : f32 to vector<8x128xf32>
      %423 = arith.maximumf %421, %422 : vector<8x128xf32>
      %cst_143 = arith.constant 0.000000e+00 : f32
      %424 = vector.broadcast %cst_143 : f32 to vector<8x128xf32>
      %425 = arith.subf %424, %423 : vector<8x128xf32>
      %426 = vector.broadcast %7 : f32 to vector<8x128xf32>
      %427 = arith.addf %425, %426 : vector<8x128xf32>
      %428 = vector.broadcast %8 : f32 to vector<8x128xf32>
      %429 = arith.subf %393, %428 : vector<8x128xf32>
      %430 = vector.broadcast %0 : f32 to vector<8x128xf32>
      %431 = arith.mulf %429, %430 : vector<8x128xf32>
      %cst_144 = arith.constant 0.000000e+00 : f32
      %432 = vector.broadcast %cst_144 : f32 to vector<8x128xf32>
      %433 = arith.maximumf %431, %432 : vector<8x128xf32>
      %cst_145 = arith.constant 0.000000e+00 : f32
      %434 = vector.broadcast %cst_145 : f32 to vector<8x128xf32>
      %435 = arith.subf %434, %433 : vector<8x128xf32>
      %436 = vector.broadcast %9 : f32 to vector<8x128xf32>
      %437 = arith.addf %435, %436 : vector<8x128xf32>
      %cst_146 = arith.constant 0.000000e+00 : f32
      %438 = vector.broadcast %cst_146 : f32 to vector<8x128xf32>
      %439 = arith.maximumf %437, %438 : vector<8x128xf32>
      %cst_147 = arith.constant 0.000000e+00 : f32
      %440 = vector.broadcast %cst_147 : f32 to vector<8x128xf32>
      %441 = arith.subf %440, %439 : vector<8x128xf32>
      %442 = vector.broadcast %10 : f32 to vector<8x128xf32>
      %443 = arith.addf %441, %442 : vector<8x128xf32>
      %444 = vector.broadcast %11 : f32 to vector<8x128xf32>
      %445 = arith.subf %393, %444 : vector<8x128xf32>
      %446 = vector.broadcast %0 : f32 to vector<8x128xf32>
      %447 = arith.mulf %445, %446 : vector<8x128xf32>
      %cst_148 = arith.constant 0.000000e+00 : f32
      %448 = vector.broadcast %cst_148 : f32 to vector<8x128xf32>
      %449 = arith.maximumf %447, %448 : vector<8x128xf32>
      %cst_149 = arith.constant 0.000000e+00 : f32
      %450 = vector.broadcast %cst_149 : f32 to vector<8x128xf32>
      %451 = arith.subf %450, %449 : vector<8x128xf32>
      %452 = vector.broadcast %12 : f32 to vector<8x128xf32>
      %453 = arith.addf %451, %452 : vector<8x128xf32>
      %cst_150 = arith.constant 0.000000e+00 : f32
      %454 = vector.broadcast %cst_150 : f32 to vector<8x128xf32>
      %455 = arith.maximumf %453, %454 : vector<8x128xf32>
      %cst_151 = arith.constant 0.000000e+00 : f32
      %456 = vector.broadcast %cst_151 : f32 to vector<8x128xf32>
      %457 = arith.subf %456, %455 : vector<8x128xf32>
      %458 = vector.broadcast %13 : f32 to vector<8x128xf32>
      %459 = arith.addf %457, %458 : vector<8x128xf32>
      %460 = arith.subf %393, %411 : vector<8x128xf32>
      %cst_152 = arith.constant 0.000000e+00 : f32
      %461 = vector.broadcast %cst_152 : f32 to vector<8x128xf32>
      %462 = arith.maximumf %460, %461 : vector<8x128xf32>
      %cst_153 = arith.constant 0.000000e+00 : f32
      %463 = vector.broadcast %cst_153 : f32 to vector<8x128xf32>
      %464 = arith.subf %463, %462 : vector<8x128xf32>
      %465 = arith.addf %464, %427 : vector<8x128xf32>
      %466 = arith.subf %465, %411 : vector<8x128xf32>
      %cst_154 = arith.constant 0.000000e+00 : f32
      %467 = vector.broadcast %cst_154 : f32 to vector<8x128xf32>
      %468 = arith.maximumf %466, %467 : vector<8x128xf32>
      %cst_155 = arith.constant 0.000000e+00 : f32
      %469 = vector.broadcast %cst_155 : f32 to vector<8x128xf32>
      %470 = arith.subf %469, %468 : vector<8x128xf32>
      %471 = arith.addf %470, %427 : vector<8x128xf32>
      %472 = arith.subf %395, %443 : vector<8x128xf32>
      %cst_156 = arith.constant 0.000000e+00 : f32
      %473 = vector.broadcast %cst_156 : f32 to vector<8x128xf32>
      %474 = arith.maximumf %472, %473 : vector<8x128xf32>
      %cst_157 = arith.constant 0.000000e+00 : f32
      %475 = vector.broadcast %cst_157 : f32 to vector<8x128xf32>
      %476 = arith.subf %475, %474 : vector<8x128xf32>
      %477 = arith.addf %476, %459 : vector<8x128xf32>
      %478 = arith.subf %477, %443 : vector<8x128xf32>
      %cst_158 = arith.constant 0.000000e+00 : f32
      %479 = vector.broadcast %cst_158 : f32 to vector<8x128xf32>
      %480 = arith.maximumf %478, %479 : vector<8x128xf32>
      %cst_159 = arith.constant 0.000000e+00 : f32
      %481 = vector.broadcast %cst_159 : f32 to vector<8x128xf32>
      %482 = arith.subf %481, %480 : vector<8x128xf32>
      %483 = arith.addf %482, %459 : vector<8x128xf32>
      %c0_160 = arith.constant 0 : index
      %484 = arith.index_cast %c4_i32 : i32 to index
      %c0_161 = arith.constant 0 : index
      %c0_162 = arith.constant 0 : index
      %485 = vector.load %arg5[%c0_160, %484, %c0_161, %c0_162] : memref<2x8x8x128xf32, #tpu.memory_space<vmem>>, vector<1x1x8x128xf32>
      %486 = vector.shape_cast %485 : vector<1x1x8x128xf32> to vector<8x128xf32>
      %487 = vector.shape_cast %471 : vector<8x128xf32> to vector<1x1x8x128xf32>
      tpu.vector_store %arg5[%c0_160, %484, %c0_161, %c0_162], %487 {strides = array<i32>} : memref<2x8x8x128xf32, #tpu.memory_space<vmem>>, vector<1x1x8x128xf32>,
      %c1_163 = arith.constant 1 : index
      %488 = arith.index_cast %c4_i32 : i32 to index
      %c0_164 = arith.constant 0 : index
      %c0_165 = arith.constant 0 : index
      %489 = vector.load %arg5[%c1_163, %488, %c0_164, %c0_165] : memref<2x8x8x128xf32, #tpu.memory_space<vmem>>, vector<1x1x8x128xf32>
      %490 = vector.shape_cast %489 : vector<1x1x8x128xf32> to vector<8x128xf32>
      %491 = vector.shape_cast %483 : vector<8x128xf32> to vector<1x1x8x128xf32>
      tpu.vector_store %arg5[%c1_163, %488, %c0_164, %c0_165], %491 {strides = array<i32>} : memref<2x8x8x128xf32, #tpu.memory_space<vmem>>, vector<1x1x8x128xf32>,
      %c0_166 = arith.constant 0 : index
      %492 = arith.index_cast %c4_i32 : i32 to index
      %c0_167 = arith.constant 0 : index
      %c0_168 = arith.constant 0 : index
      %493 = vector.load %arg4[%c0_166, %492, %c0_167, %c0_168] : memref<2x8x8x128xf32, #tpu.memory_space<vmem>>, vector<1x1x8x128xf32>
      %494 = vector.shape_cast %493 : vector<1x1x8x128xf32> to vector<8x128xf32>
      %c1_169 = arith.constant 1 : index
      %495 = arith.index_cast %c4_i32 : i32 to index
      %c0_170 = arith.constant 0 : index
      %c0_171 = arith.constant 0 : index
      %496 = vector.load %arg4[%c1_169, %495, %c0_170, %c0_171] : memref<2x8x8x128xf32, #tpu.memory_space<vmem>>, vector<1x1x8x128xf32>
      %497 = vector.shape_cast %496 : vector<1x1x8x128xf32> to vector<8x128xf32>
      %c5_i32 = arith.constant 5 : i32
      %498 = arith.mulf %471, %494 : vector<8x128xf32>
      %499 = arith.mulf %483, %497 : vector<8x128xf32>
      %500 = vector.broadcast %cst : f32 to vector<8x128xf32>
      %501 = arith.addf %500, %498 : vector<8x128xf32>
      %502 = arith.addf %501, %499 : vector<8x128xf32>
      %503 = tpu.reciprocal %502 {approx = true} : vector<8x128xf32> -> vector<8x128xf32>
      %504 = arith.mulf %502, %503 : vector<8x128xf32>
      %505 = vector.broadcast %cst_0 : f32 to vector<8x128xf32>
      %506 = arith.subf %505, %504 : vector<8x128xf32>
      %507 = arith.mulf %503, %506 : vector<8x128xf32>
      %508 = arith.addf %471, %498 : vector<8x128xf32>
      %509 = arith.mulf %508, %507 : vector<8x128xf32>
      %510 = arith.addf %483, %499 : vector<8x128xf32>
      %511 = arith.mulf %510, %507 : vector<8x128xf32>
      %512 = vector.broadcast %2 : f32 to vector<8x128xf32>
      %513 = arith.subf %511, %512 : vector<8x128xf32>
      %514 = vector.broadcast %1 : f32 to vector<8x128xf32>
      %515 = arith.mulf %513, %514 : vector<8x128xf32>
      %cst_172 = arith.constant 0.000000e+00 : f32
      %516 = vector.broadcast %cst_172 : f32 to vector<8x128xf32>
      %517 = arith.maximumf %515, %516 : vector<8x128xf32>
      %cst_173 = arith.constant 0.000000e+00 : f32
      %518 = vector.broadcast %cst_173 : f32 to vector<8x128xf32>
      %519 = arith.subf %518, %517 : vector<8x128xf32>
      %520 = vector.broadcast %3 : f32 to vector<8x128xf32>
      %521 = arith.addf %519, %520 : vector<8x128xf32>
      %cst_174 = arith.constant 0.000000e+00 : f32
      %522 = vector.broadcast %cst_174 : f32 to vector<8x128xf32>
      %523 = arith.maximumf %521, %522 : vector<8x128xf32>
      %cst_175 = arith.constant 0.000000e+00 : f32
      %524 = vector.broadcast %cst_175 : f32 to vector<8x128xf32>
      %525 = arith.subf %524, %523 : vector<8x128xf32>
      %526 = vector.broadcast %4 : f32 to vector<8x128xf32>
      %527 = arith.addf %525, %526 : vector<8x128xf32>
      %528 = vector.broadcast %5 : f32 to vector<8x128xf32>
      %529 = arith.subf %511, %528 : vector<8x128xf32>
      %530 = vector.broadcast %1 : f32 to vector<8x128xf32>
      %531 = arith.mulf %529, %530 : vector<8x128xf32>
      %cst_176 = arith.constant 0.000000e+00 : f32
      %532 = vector.broadcast %cst_176 : f32 to vector<8x128xf32>
      %533 = arith.maximumf %531, %532 : vector<8x128xf32>
      %cst_177 = arith.constant 0.000000e+00 : f32
      %534 = vector.broadcast %cst_177 : f32 to vector<8x128xf32>
      %535 = arith.subf %534, %533 : vector<8x128xf32>
      %536 = vector.broadcast %6 : f32 to vector<8x128xf32>
      %537 = arith.addf %535, %536 : vector<8x128xf32>
      %cst_178 = arith.constant 0.000000e+00 : f32
      %538 = vector.broadcast %cst_178 : f32 to vector<8x128xf32>
      %539 = arith.maximumf %537, %538 : vector<8x128xf32>
      %cst_179 = arith.constant 0.000000e+00 : f32
      %540 = vector.broadcast %cst_179 : f32 to vector<8x128xf32>
      %541 = arith.subf %540, %539 : vector<8x128xf32>
      %542 = vector.broadcast %7 : f32 to vector<8x128xf32>
      %543 = arith.addf %541, %542 : vector<8x128xf32>
      %544 = vector.broadcast %8 : f32 to vector<8x128xf32>
      %545 = arith.subf %509, %544 : vector<8x128xf32>
      %546 = vector.broadcast %0 : f32 to vector<8x128xf32>
      %547 = arith.mulf %545, %546 : vector<8x128xf32>
      %cst_180 = arith.constant 0.000000e+00 : f32
      %548 = vector.broadcast %cst_180 : f32 to vector<8x128xf32>
      %549 = arith.maximumf %547, %548 : vector<8x128xf32>
      %cst_181 = arith.constant 0.000000e+00 : f32
      %550 = vector.broadcast %cst_181 : f32 to vector<8x128xf32>
      %551 = arith.subf %550, %549 : vector<8x128xf32>
      %552 = vector.broadcast %9 : f32 to vector<8x128xf32>
      %553 = arith.addf %551, %552 : vector<8x128xf32>
      %cst_182 = arith.constant 0.000000e+00 : f32
      %554 = vector.broadcast %cst_182 : f32 to vector<8x128xf32>
      %555 = arith.maximumf %553, %554 : vector<8x128xf32>
      %cst_183 = arith.constant 0.000000e+00 : f32
      %556 = vector.broadcast %cst_183 : f32 to vector<8x128xf32>
      %557 = arith.subf %556, %555 : vector<8x128xf32>
      %558 = vector.broadcast %10 : f32 to vector<8x128xf32>
      %559 = arith.addf %557, %558 : vector<8x128xf32>
      %560 = vector.broadcast %11 : f32 to vector<8x128xf32>
      %561 = arith.subf %509, %560 : vector<8x128xf32>
      %562 = vector.broadcast %0 : f32 to vector<8x128xf32>
      %563 = arith.mulf %561, %562 : vector<8x128xf32>
      %cst_184 = arith.constant 0.000000e+00 : f32
      %564 = vector.broadcast %cst_184 : f32 to vector<8x128xf32>
      %565 = arith.maximumf %563, %564 : vector<8x128xf32>
      %cst_185 = arith.constant 0.000000e+00 : f32
      %566 = vector.broadcast %cst_185 : f32 to vector<8x128xf32>
      %567 = arith.subf %566, %565 : vector<8x128xf32>
      %568 = vector.broadcast %12 : f32 to vector<8x128xf32>
      %569 = arith.addf %567, %568 : vector<8x128xf32>
      %cst_186 = arith.constant 0.000000e+00 : f32
      %570 = vector.broadcast %cst_186 : f32 to vector<8x128xf32>
      %571 = arith.maximumf %569, %570 : vector<8x128xf32>
      %cst_187 = arith.constant 0.000000e+00 : f32
      %572 = vector.broadcast %cst_187 : f32 to vector<8x128xf32>
      %573 = arith.subf %572, %571 : vector<8x128xf32>
      %574 = vector.broadcast %13 : f32 to vector<8x128xf32>
      %575 = arith.addf %573, %574 : vector<8x128xf32>
      %576 = arith.subf %509, %527 : vector<8x128xf32>
      %cst_188 = arith.constant 0.000000e+00 : f32
      %577 = vector.broadcast %cst_188 : f32 to vector<8x128xf32>
      %578 = arith.maximumf %576, %577 : vector<8x128xf32>
      %cst_189 = arith.constant 0.000000e+00 : f32
      %579 = vector.broadcast %cst_189 : f32 to vector<8x128xf32>
      %580 = arith.subf %579, %578 : vector<8x128xf32>
      %581 = arith.addf %580, %543 : vector<8x128xf32>
      %582 = arith.subf %581, %527 : vector<8x128xf32>
      %cst_190 = arith.constant 0.000000e+00 : f32
      %583 = vector.broadcast %cst_190 : f32 to vector<8x128xf32>
      %584 = arith.maximumf %582, %583 : vector<8x128xf32>
      %cst_191 = arith.constant 0.000000e+00 : f32
      %585 = vector.broadcast %cst_191 : f32 to vector<8x128xf32>
      %586 = arith.subf %585, %584 : vector<8x128xf32>
      %587 = arith.addf %586, %543 : vector<8x128xf32>
      %588 = arith.subf %511, %559 : vector<8x128xf32>
      %cst_192 = arith.constant 0.000000e+00 : f32
      %589 = vector.broadcast %cst_192 : f32 to vector<8x128xf32>
      %590 = arith.maximumf %588, %589 : vector<8x128xf32>
      %cst_193 = arith.constant 0.000000e+00 : f32
      %591 = vector.broadcast %cst_193 : f32 to vector<8x128xf32>
      %592 = arith.subf %591, %590 : vector<8x128xf32>
      %593 = arith.addf %592, %575 : vector<8x128xf32>
      %594 = arith.subf %593, %559 : vector<8x128xf32>
      %cst_194 = arith.constant 0.000000e+00 : f32
      %595 = vector.broadcast %cst_194 : f32 to vector<8x128xf32>
      %596 = arith.maximumf %594, %595 : vector<8x128xf32>
      %cst_195 = arith.constant 0.000000e+00 : f32
      %597 = vector.broadcast %cst_195 : f32 to vector<8x128xf32>
      %598 = arith.subf %597, %596 : vector<8x128xf32>
      %599 = arith.addf %598, %575 : vector<8x128xf32>
      %c0_196 = arith.constant 0 : index
      %600 = arith.index_cast %c5_i32 : i32 to index
      %c0_197 = arith.constant 0 : index
      %c0_198 = arith.constant 0 : index
      %601 = vector.load %arg5[%c0_196, %600, %c0_197, %c0_198] : memref<2x8x8x128xf32, #tpu.memory_space<vmem>>, vector<1x1x8x128xf32>
      %602 = vector.shape_cast %601 : vector<1x1x8x128xf32> to vector<8x128xf32>
      %603 = vector.shape_cast %587 : vector<8x128xf32> to vector<1x1x8x128xf32>
      tpu.vector_store %arg5[%c0_196, %600, %c0_197, %c0_198], %603 {strides = array<i32>} : memref<2x8x8x128xf32, #tpu.memory_space<vmem>>, vector<1x1x8x128xf32>,
      %c1_199 = arith.constant 1 : index
      %604 = arith.index_cast %c5_i32 : i32 to index
      %c0_200 = arith.constant 0 : index
      %c0_201 = arith.constant 0 : index
      %605 = vector.load %arg5[%c1_199, %604, %c0_200, %c0_201] : memref<2x8x8x128xf32, #tpu.memory_space<vmem>>, vector<1x1x8x128xf32>
      %606 = vector.shape_cast %605 : vector<1x1x8x128xf32> to vector<8x128xf32>
      %607 = vector.shape_cast %599 : vector<8x128xf32> to vector<1x1x8x128xf32>
      tpu.vector_store %arg5[%c1_199, %604, %c0_200, %c0_201], %607 {strides = array<i32>} : memref<2x8x8x128xf32, #tpu.memory_space<vmem>>, vector<1x1x8x128xf32>,
      %c0_202 = arith.constant 0 : index
      %608 = arith.index_cast %c5_i32 : i32 to index
      %c0_203 = arith.constant 0 : index
      %c0_204 = arith.constant 0 : index
      %609 = vector.load %arg4[%c0_202, %608, %c0_203, %c0_204] : memref<2x8x8x128xf32, #tpu.memory_space<vmem>>, vector<1x1x8x128xf32>
      %610 = vector.shape_cast %609 : vector<1x1x8x128xf32> to vector<8x128xf32>
      %c1_205 = arith.constant 1 : index
      %611 = arith.index_cast %c5_i32 : i32 to index
      %c0_206 = arith.constant 0 : index
      %c0_207 = arith.constant 0 : index
      %612 = vector.load %arg4[%c1_205, %611, %c0_206, %c0_207] : memref<2x8x8x128xf32, #tpu.memory_space<vmem>>, vector<1x1x8x128xf32>
      %613 = vector.shape_cast %612 : vector<1x1x8x128xf32> to vector<8x128xf32>
      %c6_i32 = arith.constant 6 : i32
      %614 = arith.mulf %587, %610 : vector<8x128xf32>
      %615 = arith.mulf %599, %613 : vector<8x128xf32>
      %616 = vector.broadcast %cst : f32 to vector<8x128xf32>
      %617 = arith.addf %616, %614 : vector<8x128xf32>
      %618 = arith.addf %617, %615 : vector<8x128xf32>
      %619 = tpu.reciprocal %618 {approx = true} : vector<8x128xf32> -> vector<8x128xf32>
      %620 = arith.mulf %618, %619 : vector<8x128xf32>
      %621 = vector.broadcast %cst_0 : f32 to vector<8x128xf32>
      %622 = arith.subf %621, %620 : vector<8x128xf32>
      %623 = arith.mulf %619, %622 : vector<8x128xf32>
      %624 = arith.addf %587, %614 : vector<8x128xf32>
      %625 = arith.mulf %624, %623 : vector<8x128xf32>
      %626 = arith.addf %599, %615 : vector<8x128xf32>
      %627 = arith.mulf %626, %623 : vector<8x128xf32>
      %628 = vector.broadcast %2 : f32 to vector<8x128xf32>
      %629 = arith.subf %627, %628 : vector<8x128xf32>
      %630 = vector.broadcast %1 : f32 to vector<8x128xf32>
      %631 = arith.mulf %629, %630 : vector<8x128xf32>
      %cst_208 = arith.constant 0.000000e+00 : f32
      %632 = vector.broadcast %cst_208 : f32 to vector<8x128xf32>
      %633 = arith.maximumf %631, %632 : vector<8x128xf32>
      %cst_209 = arith.constant 0.000000e+00 : f32
      %634 = vector.broadcast %cst_209 : f32 to vector<8x128xf32>
      %635 = arith.subf %634, %633 : vector<8x128xf32>
      %636 = vector.broadcast %3 : f32 to vector<8x128xf32>
      %637 = arith.addf %635, %636 : vector<8x128xf32>
      %cst_210 = arith.constant 0.000000e+00 : f32
      %638 = vector.broadcast %cst_210 : f32 to vector<8x128xf32>
      %639 = arith.maximumf %637, %638 : vector<8x128xf32>
      %cst_211 = arith.constant 0.000000e+00 : f32
      %640 = vector.broadcast %cst_211 : f32 to vector<8x128xf32>
      %641 = arith.subf %640, %639 : vector<8x128xf32>
      %642 = vector.broadcast %4 : f32 to vector<8x128xf32>
      %643 = arith.addf %641, %642 : vector<8x128xf32>
      %644 = vector.broadcast %5 : f32 to vector<8x128xf32>
      %645 = arith.subf %627, %644 : vector<8x128xf32>
      %646 = vector.broadcast %1 : f32 to vector<8x128xf32>
      %647 = arith.mulf %645, %646 : vector<8x128xf32>
      %cst_212 = arith.constant 0.000000e+00 : f32
      %648 = vector.broadcast %cst_212 : f32 to vector<8x128xf32>
      %649 = arith.maximumf %647, %648 : vector<8x128xf32>
      %cst_213 = arith.constant 0.000000e+00 : f32
      %650 = vector.broadcast %cst_213 : f32 to vector<8x128xf32>
      %651 = arith.subf %650, %649 : vector<8x128xf32>
      %652 = vector.broadcast %6 : f32 to vector<8x128xf32>
      %653 = arith.addf %651, %652 : vector<8x128xf32>
      %cst_214 = arith.constant 0.000000e+00 : f32
      %654 = vector.broadcast %cst_214 : f32 to vector<8x128xf32>
      %655 = arith.maximumf %653, %654 : vector<8x128xf32>
      %cst_215 = arith.constant 0.000000e+00 : f32
      %656 = vector.broadcast %cst_215 : f32 to vector<8x128xf32>
      %657 = arith.subf %656, %655 : vector<8x128xf32>
      %658 = vector.broadcast %7 : f32 to vector<8x128xf32>
      %659 = arith.addf %657, %658 : vector<8x128xf32>
      %660 = vector.broadcast %8 : f32 to vector<8x128xf32>
      %661 = arith.subf %625, %660 : vector<8x128xf32>
      %662 = vector.broadcast %0 : f32 to vector<8x128xf32>
      %663 = arith.mulf %661, %662 : vector<8x128xf32>
      %cst_216 = arith.constant 0.000000e+00 : f32
      %664 = vector.broadcast %cst_216 : f32 to vector<8x128xf32>
      %665 = arith.maximumf %663, %664 : vector<8x128xf32>
      %cst_217 = arith.constant 0.000000e+00 : f32
      %666 = vector.broadcast %cst_217 : f32 to vector<8x128xf32>
      %667 = arith.subf %666, %665 : vector<8x128xf32>
      %668 = vector.broadcast %9 : f32 to vector<8x128xf32>
      %669 = arith.addf %667, %668 : vector<8x128xf32>
      %cst_218 = arith.constant 0.000000e+00 : f32
      %670 = vector.broadcast %cst_218 : f32 to vector<8x128xf32>
      %671 = arith.maximumf %669, %670 : vector<8x128xf32>
      %cst_219 = arith.constant 0.000000e+00 : f32
      %672 = vector.broadcast %cst_219 : f32 to vector<8x128xf32>
      %673 = arith.subf %672, %671 : vector<8x128xf32>
      %674 = vector.broadcast %10 : f32 to vector<8x128xf32>
      %675 = arith.addf %673, %674 : vector<8x128xf32>
      %676 = vector.broadcast %11 : f32 to vector<8x128xf32>
      %677 = arith.subf %625, %676 : vector<8x128xf32>
      %678 = vector.broadcast %0 : f32 to vector<8x128xf32>
      %679 = arith.mulf %677, %678 : vector<8x128xf32>
      %cst_220 = arith.constant 0.000000e+00 : f32
      %680 = vector.broadcast %cst_220 : f32 to vector<8x128xf32>
      %681 = arith.maximumf %679, %680 : vector<8x128xf32>
      %cst_221 = arith.constant 0.000000e+00 : f32
      %682 = vector.broadcast %cst_221 : f32 to vector<8x128xf32>
      %683 = arith.subf %682, %681 : vector<8x128xf32>
      %684 = vector.broadcast %12 : f32 to vector<8x128xf32>
      %685 = arith.addf %683, %684 : vector<8x128xf32>
      %cst_222 = arith.constant 0.000000e+00 : f32
      %686 = vector.broadcast %cst_222 : f32 to vector<8x128xf32>
      %687 = arith.maximumf %685, %686 : vector<8x128xf32>
      %cst_223 = arith.constant 0.000000e+00 : f32
      %688 = vector.broadcast %cst_223 : f32 to vector<8x128xf32>
      %689 = arith.subf %688, %687 : vector<8x128xf32>
      %690 = vector.broadcast %13 : f32 to vector<8x128xf32>
      %691 = arith.addf %689, %690 : vector<8x128xf32>
      %692 = arith.subf %625, %643 : vector<8x128xf32>
      %cst_224 = arith.constant 0.000000e+00 : f32
      %693 = vector.broadcast %cst_224 : f32 to vector<8x128xf32>
      %694 = arith.maximumf %692, %693 : vector<8x128xf32>
      %cst_225 = arith.constant 0.000000e+00 : f32
      %695 = vector.broadcast %cst_225 : f32 to vector<8x128xf32>
      %696 = arith.subf %695, %694 : vector<8x128xf32>
      %697 = arith.addf %696, %659 : vector<8x128xf32>
      %698 = arith.subf %697, %643 : vector<8x128xf32>
      %cst_226 = arith.constant 0.000000e+00 : f32
      %699 = vector.broadcast %cst_226 : f32 to vector<8x128xf32>
      %700 = arith.maximumf %698, %699 : vector<8x128xf32>
      %cst_227 = arith.constant 0.000000e+00 : f32
      %701 = vector.broadcast %cst_227 : f32 to vector<8x128xf32>
      %702 = arith.subf %701, %700 : vector<8x128xf32>
      %703 = arith.addf %702, %659 : vector<8x128xf32>
      %704 = arith.subf %627, %675 : vector<8x128xf32>
      %cst_228 = arith.constant 0.000000e+00 : f32
      %705 = vector.broadcast %cst_228 : f32 to vector<8x128xf32>
      %706 = arith.maximumf %704, %705 : vector<8x128xf32>
      %cst_229 = arith.constant 0.000000e+00 : f32
      %707 = vector.broadcast %cst_229 : f32 to vector<8x128xf32>
      %708 = arith.subf %707, %706 : vector<8x128xf32>
      %709 = arith.addf %708, %691 : vector<8x128xf32>
      %710 = arith.subf %709, %675 : vector<8x128xf32>
      %cst_230 = arith.constant 0.000000e+00 : f32
      %711 = vector.broadcast %cst_230 : f32 to vector<8x128xf32>
      %712 = arith.maximumf %710, %711 : vector<8x128xf32>
      %cst_231 = arith.constant 0.000000e+00 : f32
      %713 = vector.broadcast %cst_231 : f32 to vector<8x128xf32>
      %714 = arith.subf %713, %712 : vector<8x128xf32>
      %715 = arith.addf %714, %691 : vector<8x128xf32>
      %c0_232 = arith.constant 0 : index
      %716 = arith.index_cast %c6_i32 : i32 to index
      %c0_233 = arith.constant 0 : index
      %c0_234 = arith.constant 0 : index
      %717 = vector.load %arg5[%c0_232, %716, %c0_233, %c0_234] : memref<2x8x8x128xf32, #tpu.memory_space<vmem>>, vector<1x1x8x128xf32>
      %718 = vector.shape_cast %717 : vector<1x1x8x128xf32> to vector<8x128xf32>
      %719 = vector.shape_cast %703 : vector<8x128xf32> to vector<1x1x8x128xf32>
      tpu.vector_store %arg5[%c0_232, %716, %c0_233, %c0_234], %719 {strides = array<i32>} : memref<2x8x8x128xf32, #tpu.memory_space<vmem>>, vector<1x1x8x128xf32>,
      %c1_235 = arith.constant 1 : index
      %720 = arith.index_cast %c6_i32 : i32 to index
      %c0_236 = arith.constant 0 : index
      %c0_237 = arith.constant 0 : index
      %721 = vector.load %arg5[%c1_235, %720, %c0_236, %c0_237] : memref<2x8x8x128xf32, #tpu.memory_space<vmem>>, vector<1x1x8x128xf32>
      %722 = vector.shape_cast %721 : vector<1x1x8x128xf32> to vector<8x128xf32>
      %723 = vector.shape_cast %715 : vector<8x128xf32> to vector<1x1x8x128xf32>
      tpu.vector_store %arg5[%c1_235, %720, %c0_236, %c0_237], %723 {strides = array<i32>} : memref<2x8x8x128xf32, #tpu.memory_space<vmem>>, vector<1x1x8x128xf32>,
      %c0_238 = arith.constant 0 : index
      %724 = arith.index_cast %c6_i32 : i32 to index
      %c0_239 = arith.constant 0 : index
      %c0_240 = arith.constant 0 : index
      %725 = vector.load %arg4[%c0_238, %724, %c0_239, %c0_240] : memref<2x8x8x128xf32, #tpu.memory_space<vmem>>, vector<1x1x8x128xf32>
      %726 = vector.shape_cast %725 : vector<1x1x8x128xf32> to vector<8x128xf32>
      %c1_241 = arith.constant 1 : index
      %727 = arith.index_cast %c6_i32 : i32 to index
      %c0_242 = arith.constant 0 : index
      %c0_243 = arith.constant 0 : index
      %728 = vector.load %arg4[%c1_241, %727, %c0_242, %c0_243] : memref<2x8x8x128xf32, #tpu.memory_space<vmem>>, vector<1x1x8x128xf32>
      %729 = vector.shape_cast %728 : vector<1x1x8x128xf32> to vector<8x128xf32>
      %c7_i32 = arith.constant 7 : i32
      %730 = arith.mulf %703, %726 : vector<8x128xf32>
      %731 = arith.mulf %715, %729 : vector<8x128xf32>
      %732 = vector.broadcast %cst : f32 to vector<8x128xf32>
      %733 = arith.addf %732, %730 : vector<8x128xf32>
      %734 = arith.addf %733, %731 : vector<8x128xf32>
      %735 = tpu.reciprocal %734 {approx = true} : vector<8x128xf32> -> vector<8x128xf32>
      %736 = arith.mulf %734, %735 : vector<8x128xf32>
      %737 = vector.broadcast %cst_0 : f32 to vector<8x128xf32>
      %738 = arith.subf %737, %736 : vector<8x128xf32>
      %739 = arith.mulf %735, %738 : vector<8x128xf32>
      %740 = arith.addf %703, %730 : vector<8x128xf32>
      %741 = arith.mulf %740, %739 : vector<8x128xf32>
      %742 = arith.addf %715, %731 : vector<8x128xf32>
      %743 = arith.mulf %742, %739 : vector<8x128xf32>
      %744 = vector.broadcast %2 : f32 to vector<8x128xf32>
      %745 = arith.subf %743, %744 : vector<8x128xf32>
      %746 = vector.broadcast %1 : f32 to vector<8x128xf32>
      %747 = arith.mulf %745, %746 : vector<8x128xf32>
      %cst_244 = arith.constant 0.000000e+00 : f32
      %748 = vector.broadcast %cst_244 : f32 to vector<8x128xf32>
      %749 = arith.maximumf %747, %748 : vector<8x128xf32>
      %cst_245 = arith.constant 0.000000e+00 : f32
      %750 = vector.broadcast %cst_245 : f32 to vector<8x128xf32>
      %751 = arith.subf %750, %749 : vector<8x128xf32>
      %752 = vector.broadcast %3 : f32 to vector<8x128xf32>
      %753 = arith.addf %751, %752 : vector<8x128xf32>
      %cst_246 = arith.constant 0.000000e+00 : f32
      %754 = vector.broadcast %cst_246 : f32 to vector<8x128xf32>
      %755 = arith.maximumf %753, %754 : vector<8x128xf32>
      %cst_247 = arith.constant 0.000000e+00 : f32
      %756 = vector.broadcast %cst_247 : f32 to vector<8x128xf32>
      %757 = arith.subf %756, %755 : vector<8x128xf32>
      %758 = vector.broadcast %4 : f32 to vector<8x128xf32>
      %759 = arith.addf %757, %758 : vector<8x128xf32>
      %760 = vector.broadcast %5 : f32 to vector<8x128xf32>
      %761 = arith.subf %743, %760 : vector<8x128xf32>
      %762 = vector.broadcast %1 : f32 to vector<8x128xf32>
      %763 = arith.mulf %761, %762 : vector<8x128xf32>
      %cst_248 = arith.constant 0.000000e+00 : f32
      %764 = vector.broadcast %cst_248 : f32 to vector<8x128xf32>
      %765 = arith.maximumf %763, %764 : vector<8x128xf32>
      %cst_249 = arith.constant 0.000000e+00 : f32
      %766 = vector.broadcast %cst_249 : f32 to vector<8x128xf32>
      %767 = arith.subf %766, %765 : vector<8x128xf32>
      %768 = vector.broadcast %6 : f32 to vector<8x128xf32>
      %769 = arith.addf %767, %768 : vector<8x128xf32>
      %cst_250 = arith.constant 0.000000e+00 : f32
      %770 = vector.broadcast %cst_250 : f32 to vector<8x128xf32>
      %771 = arith.maximumf %769, %770 : vector<8x128xf32>
      %cst_251 = arith.constant 0.000000e+00 : f32
      %772 = vector.broadcast %cst_251 : f32 to vector<8x128xf32>
      %773 = arith.subf %772, %771 : vector<8x128xf32>
      %774 = vector.broadcast %7 : f32 to vector<8x128xf32>
      %775 = arith.addf %773, %774 : vector<8x128xf32>
      %776 = vector.broadcast %8 : f32 to vector<8x128xf32>
      %777 = arith.subf %741, %776 : vector<8x128xf32>
      %778 = vector.broadcast %0 : f32 to vector<8x128xf32>
      %779 = arith.mulf %777, %778 : vector<8x128xf32>
      %cst_252 = arith.constant 0.000000e+00 : f32
      %780 = vector.broadcast %cst_252 : f32 to vector<8x128xf32>
      %781 = arith.maximumf %779, %780 : vector<8x128xf32>
      %cst_253 = arith.constant 0.000000e+00 : f32
      %782 = vector.broadcast %cst_253 : f32 to vector<8x128xf32>
      %783 = arith.subf %782, %781 : vector<8x128xf32>
      %784 = vector.broadcast %9 : f32 to vector<8x128xf32>
      %785 = arith.addf %783, %784 : vector<8x128xf32>
      %cst_254 = arith.constant 0.000000e+00 : f32
      %786 = vector.broadcast %cst_254 : f32 to vector<8x128xf32>
      %787 = arith.maximumf %785, %786 : vector<8x128xf32>
      %cst_255 = arith.constant 0.000000e+00 : f32
      %788 = vector.broadcast %cst_255 : f32 to vector<8x128xf32>
      %789 = arith.subf %788, %787 : vector<8x128xf32>
      %790 = vector.broadcast %10 : f32 to vector<8x128xf32>
      %791 = arith.addf %789, %790 : vector<8x128xf32>
      %792 = vector.broadcast %11 : f32 to vector<8x128xf32>
      %793 = arith.subf %741, %792 : vector<8x128xf32>
      %794 = vector.broadcast %0 : f32 to vector<8x128xf32>
      %795 = arith.mulf %793, %794 : vector<8x128xf32>
      %cst_256 = arith.constant 0.000000e+00 : f32
      %796 = vector.broadcast %cst_256 : f32 to vector<8x128xf32>
      %797 = arith.maximumf %795, %796 : vector<8x128xf32>
      %cst_257 = arith.constant 0.000000e+00 : f32
      %798 = vector.broadcast %cst_257 : f32 to vector<8x128xf32>
      %799 = arith.subf %798, %797 : vector<8x128xf32>
      %800 = vector.broadcast %12 : f32 to vector<8x128xf32>
      %801 = arith.addf %799, %800 : vector<8x128xf32>
      %cst_258 = arith.constant 0.000000e+00 : f32
      %802 = vector.broadcast %cst_258 : f32 to vector<8x128xf32>
      %803 = arith.maximumf %801, %802 : vector<8x128xf32>
      %cst_259 = arith.constant 0.000000e+00 : f32
      %804 = vector.broadcast %cst_259 : f32 to vector<8x128xf32>
      %805 = arith.subf %804, %803 : vector<8x128xf32>
      %806 = vector.broadcast %13 : f32 to vector<8x128xf32>
      %807 = arith.addf %805, %806 : vector<8x128xf32>
      %808 = arith.subf %741, %759 : vector<8x128xf32>
      %cst_260 = arith.constant 0.000000e+00 : f32
      %809 = vector.broadcast %cst_260 : f32 to vector<8x128xf32>
      %810 = arith.maximumf %808, %809 : vector<8x128xf32>
      %cst_261 = arith.constant 0.000000e+00 : f32
      %811 = vector.broadcast %cst_261 : f32 to vector<8x128xf32>
      %812 = arith.subf %811, %810 : vector<8x128xf32>
      %813 = arith.addf %812, %775 : vector<8x128xf32>
      %814 = arith.subf %813, %759 : vector<8x128xf32>
      %cst_262 = arith.constant 0.000000e+00 : f32
      %815 = vector.broadcast %cst_262 : f32 to vector<8x128xf32>
      %816 = arith.maximumf %814, %815 : vector<8x128xf32>
      %cst_263 = arith.constant 0.000000e+00 : f32
      %817 = vector.broadcast %cst_263 : f32 to vector<8x128xf32>
      %818 = arith.subf %817, %816 : vector<8x128xf32>
      %819 = arith.addf %818, %775 : vector<8x128xf32>
      %820 = arith.subf %743, %791 : vector<8x128xf32>
      %cst_264 = arith.constant 0.000000e+00 : f32
      %821 = vector.broadcast %cst_264 : f32 to vector<8x128xf32>
      %822 = arith.maximumf %820, %821 : vector<8x128xf32>
      %cst_265 = arith.constant 0.000000e+00 : f32
      %823 = vector.broadcast %cst_265 : f32 to vector<8x128xf32>
      %824 = arith.subf %823, %822 : vector<8x128xf32>
      %825 = arith.addf %824, %807 : vector<8x128xf32>
      %826 = arith.subf %825, %791 : vector<8x128xf32>
      %cst_266 = arith.constant 0.000000e+00 : f32
      %827 = vector.broadcast %cst_266 : f32 to vector<8x128xf32>
      %828 = arith.maximumf %826, %827 : vector<8x128xf32>
      %cst_267 = arith.constant 0.000000e+00 : f32
      %829 = vector.broadcast %cst_267 : f32 to vector<8x128xf32>
      %830 = arith.subf %829, %828 : vector<8x128xf32>
      %831 = arith.addf %830, %807 : vector<8x128xf32>
      %c0_268 = arith.constant 0 : index
      %832 = arith.index_cast %c7_i32 : i32 to index
      %c0_269 = arith.constant 0 : index
      %c0_270 = arith.constant 0 : index
      %833 = vector.load %arg5[%c0_268, %832, %c0_269, %c0_270] : memref<2x8x8x128xf32, #tpu.memory_space<vmem>>, vector<1x1x8x128xf32>
      %834 = vector.shape_cast %833 : vector<1x1x8x128xf32> to vector<8x128xf32>
      %835 = vector.shape_cast %819 : vector<8x128xf32> to vector<1x1x8x128xf32>
      tpu.vector_store %arg5[%c0_268, %832, %c0_269, %c0_270], %835 {strides = array<i32>} : memref<2x8x8x128xf32, #tpu.memory_space<vmem>>, vector<1x1x8x128xf32>,
      %c1_271 = arith.constant 1 : index
      %836 = arith.index_cast %c7_i32 : i32 to index
      %c0_272 = arith.constant 0 : index
      %c0_273 = arith.constant 0 : index
      %837 = vector.load %arg5[%c1_271, %836, %c0_272, %c0_273] : memref<2x8x8x128xf32, #tpu.memory_space<vmem>>, vector<1x1x8x128xf32>
      %838 = vector.shape_cast %837 : vector<1x1x8x128xf32> to vector<8x128xf32>
      %839 = vector.shape_cast %831 : vector<8x128xf32> to vector<1x1x8x128xf32>
      tpu.vector_store %arg5[%c1_271, %836, %c0_272, %c0_273], %839 {strides = array<i32>} : memref<2x8x8x128xf32, #tpu.memory_space<vmem>>, vector<1x1x8x128xf32>,
      %c0_274 = arith.constant 0 : index
      %840 = arith.index_cast %c7_i32 : i32 to index
      %c0_275 = arith.constant 0 : index
      %c0_276 = arith.constant 0 : index
      %841 = vector.load %arg4[%c0_274, %840, %c0_275, %c0_276] : memref<2x8x8x128xf32, #tpu.memory_space<vmem>>, vector<1x1x8x128xf32>
      %842 = vector.shape_cast %841 : vector<1x1x8x128xf32> to vector<8x128xf32>
      %c1_277 = arith.constant 1 : index
      %843 = arith.index_cast %c7_i32 : i32 to index
      %c0_278 = arith.constant 0 : index
      %c0_279 = arith.constant 0 : index
      %844 = vector.load %arg4[%c1_277, %843, %c0_278, %c0_279] : memref<2x8x8x128xf32, #tpu.memory_space<vmem>>, vector<1x1x8x128xf32>
      %845 = vector.shape_cast %844 : vector<1x1x8x128xf32> to vector<8x128xf32>
      %c7_i32_280 = arith.constant 7 : i32
      %c0_281 = arith.constant 0 : index
      %c0_282 = arith.constant 0 : index
      %846 = vector.load %arg6[%c0_281, %c0_282] : memref<8x128xf32, #tpu.memory_space<vmem>>, vector<8x128xf32>
      tpu.vector_store %arg6[%c0_281, %c0_282], %819 {strides = array<i32>} : memref<8x128xf32, #tpu.memory_space<vmem>>, vector<8x128xf32>,
      %c0_283 = arith.constant 0 : index
      %c0_284 = arith.constant 0 : index
      %847 = vector.load %arg7[%c0_283, %c0_284] : memref<8x128xf32, #tpu.memory_space<vmem>>, vector<8x128xf32>
      tpu.vector_store %arg7[%c0_283, %c0_284], %831 {strides = array<i32>} : memref<8x128xf32, #tpu.memory_space<vmem>>, vector<8x128xf32>,
      %c0_285 = arith.constant 0 : index
      %c0_286 = arith.constant 0 : index
      %848 = vector.load %arg8[%c0_285, %c0_286] : memref<8x128xf32, #tpu.memory_space<vmem>>, vector<8x128xf32>
      tpu.vector_store %arg8[%c0_285, %c0_286], %842 {strides = array<i32>} : memref<8x128xf32, #tpu.memory_space<vmem>>, vector<8x128xf32>,
      %c0_287 = arith.constant 0 : index
      %c0_288 = arith.constant 0 : index
      %849 = vector.load %arg9[%c0_287, %c0_288] : memref<8x128xf32, #tpu.memory_space<vmem>>, vector<8x128xf32>
      tpu.vector_store %arg9[%c0_287, %c0_288], %845 {strides = array<i32>} : memref<8x128xf32, #tpu.memory_space<vmem>>, vector<8x128xf32>,
    } else {
    }
    %c0_i32_2 = arith.constant 0 : i32
    %17 = arith.cmpi ne, %arg1, %c0_i32_2 : i32
    %18 = arith.extui %17 : i1 to i32
    %cst_3 = arith.constant 1.000000e+00 : f32
    %cst_4 = arith.constant 2.000000e+00 : f32
    %c0_i32_5 = arith.constant 0 : i32
    %19 = arith.cmpi ne, %18, %c0_i32_5 : i32
    scf.if %19 {
      %c0_6 = arith.constant 0 : index
      %c0_7 = arith.constant 0 : index
      %20 = vector.load %arg6[%c0_6, %c0_7] : memref<8x128xf32, #tpu.memory_space<vmem>>, vector<8x128xf32>
      %c0_8 = arith.constant 0 : index
      %c0_9 = arith.constant 0 : index
      %21 = vector.load %arg7[%c0_8, %c0_9] : memref<8x128xf32, #tpu.memory_space<vmem>>, vector<8x128xf32>
      %c0_10 = arith.constant 0 : index
      %c0_11 = arith.constant 0 : index
      %22 = vector.load %arg8[%c0_10, %c0_11] : memref<8x128xf32, #tpu.memory_space<vmem>>, vector<8x128xf32>
      %c0_12 = arith.constant 0 : index
      %c0_13 = arith.constant 0 : index
      %23 = vector.load %arg9[%c0_12, %c0_13] : memref<8x128xf32, #tpu.memory_space<vmem>>, vector<8x128xf32>
      %c0_i32_14 = arith.constant 0 : i32
      %24 = arith.mulf %20, %22 : vector<8x128xf32>
      %25 = arith.mulf %21, %23 : vector<8x128xf32>
      %26 = vector.broadcast %cst_3 : f32 to vector<8x128xf32>
      %27 = arith.addf %26, %24 : vector<8x128xf32>
      %28 = arith.addf %27, %25 : vector<8x128xf32>
      %29 = tpu.reciprocal %28 {approx = true} : vector<8x128xf32> -> vector<8x128xf32>
      %30 = arith.mulf %28, %29 : vector<8x128xf32>
      %31 = vector.broadcast %cst_4 : f32 to vector<8x128xf32>
      %32 = arith.subf %31, %30 : vector<8x128xf32>
      %33 = arith.mulf %29, %32 : vector<8x128xf32>
      %34 = arith.addf %20, %24 : vector<8x128xf32>
      %35 = arith.mulf %34, %33 : vector<8x128xf32>
      %36 = arith.addf %21, %25 : vector<8x128xf32>
      %37 = arith.mulf %36, %33 : vector<8x128xf32>
      %38 = vector.broadcast %2 : f32 to vector<8x128xf32>
      %39 = arith.subf %37, %38 : vector<8x128xf32>
      %40 = vector.broadcast %1 : f32 to vector<8x128xf32>
      %41 = arith.mulf %39, %40 : vector<8x128xf32>
      %cst_15 = arith.constant 0.000000e+00 : f32
      %42 = vector.broadcast %cst_15 : f32 to vector<8x128xf32>
      %43 = arith.maximumf %41, %42 : vector<8x128xf32>
      %cst_16 = arith.constant 0.000000e+00 : f32
      %44 = vector.broadcast %cst_16 : f32 to vector<8x128xf32>
      %45 = arith.subf %44, %43 : vector<8x128xf32>
      %46 = vector.broadcast %3 : f32 to vector<8x128xf32>
      %47 = arith.addf %45, %46 : vector<8x128xf32>
      %cst_17 = arith.constant 0.000000e+00 : f32
      %48 = vector.broadcast %cst_17 : f32 to vector<8x128xf32>
      %49 = arith.maximumf %47, %48 : vector<8x128xf32>
      %cst_18 = arith.constant 0.000000e+00 : f32
      %50 = vector.broadcast %cst_18 : f32 to vector<8x128xf32>
      %51 = arith.subf %50, %49 : vector<8x128xf32>
      %52 = vector.broadcast %4 : f32 to vector<8x128xf32>
      %53 = arith.addf %51, %52 : vector<8x128xf32>
      %54 = vector.broadcast %5 : f32 to vector<8x128xf32>
      %55 = arith.subf %37, %54 : vector<8x128xf32>
      %56 = vector.broadcast %1 : f32 to vector<8x128xf32>
      %57 = arith.mulf %55, %56 : vector<8x128xf32>
      %cst_19 = arith.constant 0.000000e+00 : f32
      %58 = vector.broadcast %cst_19 : f32 to vector<8x128xf32>
      %59 = arith.maximumf %57, %58 : vector<8x128xf32>
      %cst_20 = arith.constant 0.000000e+00 : f32
      %60 = vector.broadcast %cst_20 : f32 to vector<8x128xf32>
      %61 = arith.subf %60, %59 : vector<8x128xf32>
      %62 = vector.broadcast %6 : f32 to vector<8x128xf32>
      %63 = arith.addf %61, %62 : vector<8x128xf32>
      %cst_21 = arith.constant 0.000000e+00 : f32
      %64 = vector.broadcast %cst_21 : f32 to vector<8x128xf32>
      %65 = arith.maximumf %63, %64 : vector<8x128xf32>
      %cst_22 = arith.constant 0.000000e+00 : f32
      %66 = vector.broadcast %cst_22 : f32 to vector<8x128xf32>
      %67 = arith.subf %66, %65 : vector<8x128xf32>
      %68 = vector.broadcast %7 : f32 to vector<8x128xf32>
      %69 = arith.addf %67, %68 : vector<8x128xf32>
      %70 = vector.broadcast %8 : f32 to vector<8x128xf32>
      %71 = arith.subf %35, %70 : vector<8x128xf32>
      %72 = vector.broadcast %0 : f32 to vector<8x128xf32>
      %73 = arith.mulf %71, %72 : vector<8x128xf32>
      %cst_23 = arith.constant 0.000000e+00 : f32
      %74 = vector.broadcast %cst_23 : f32 to vector<8x128xf32>
      %75 = arith.maximumf %73, %74 : vector<8x128xf32>
      %cst_24 = arith.constant 0.000000e+00 : f32
      %76 = vector.broadcast %cst_24 : f32 to vector<8x128xf32>
      %77 = arith.subf %76, %75 : vector<8x128xf32>
      %78 = vector.broadcast %9 : f32 to vector<8x128xf32>
      %79 = arith.addf %77, %78 : vector<8x128xf32>
      %cst_25 = arith.constant 0.000000e+00 : f32
      %80 = vector.broadcast %cst_25 : f32 to vector<8x128xf32>
      %81 = arith.maximumf %79, %80 : vector<8x128xf32>
      %cst_26 = arith.constant 0.000000e+00 : f32
      %82 = vector.broadcast %cst_26 : f32 to vector<8x128xf32>
      %83 = arith.subf %82, %81 : vector<8x128xf32>
      %84 = vector.broadcast %10 : f32 to vector<8x128xf32>
      %85 = arith.addf %83, %84 : vector<8x128xf32>
      %86 = vector.broadcast %11 : f32 to vector<8x128xf32>
      %87 = arith.subf %35, %86 : vector<8x128xf32>
      %88 = vector.broadcast %0 : f32 to vector<8x128xf32>
      %89 = arith.mulf %87, %88 : vector<8x128xf32>
      %cst_27 = arith.constant 0.000000e+00 : f32
      %90 = vector.broadcast %cst_27 : f32 to vector<8x128xf32>
      %91 = arith.maximumf %89, %90 : vector<8x128xf32>
      %cst_28 = arith.constant 0.000000e+00 : f32
      %92 = vector.broadcast %cst_28 : f32 to vector<8x128xf32>
      %93 = arith.subf %92, %91 : vector<8x128xf32>
      %94 = vector.broadcast %12 : f32 to vector<8x128xf32>
      %95 = arith.addf %93, %94 : vector<8x128xf32>
      %cst_29 = arith.constant 0.000000e+00 : f32
      %96 = vector.broadcast %cst_29 : f32 to vector<8x128xf32>
      %97 = arith.maximumf %95, %96 : vector<8x128xf32>
      %cst_30 = arith.constant 0.000000e+00 : f32
      %98 = vector.broadcast %cst_30 : f32 to vector<8x128xf32>
      %99 = arith.subf %98, %97 : vector<8x128xf32>
      %100 = vector.broadcast %13 : f32 to vector<8x128xf32>
      %101 = arith.addf %99, %100 : vector<8x128xf32>
      %102 = arith.subf %35, %53 : vector<8x128xf32>
      %cst_31 = arith.constant 0.000000e+00 : f32
      %103 = vector.broadcast %cst_31 : f32 to vector<8x128xf32>
      %104 = arith.maximumf %102, %103 : vector<8x128xf32>
      %cst_32 = arith.constant 0.000000e+00 : f32
      %105 = vector.broadcast %cst_32 : f32 to vector<8x128xf32>
      %106 = arith.subf %105, %104 : vector<8x128xf32>
      %107 = arith.addf %106, %69 : vector<8x128xf32>
      %108 = arith.subf %107, %53 : vector<8x128xf32>
      %cst_33 = arith.constant 0.000000e+00 : f32
      %109 = vector.broadcast %cst_33 : f32 to vector<8x128xf32>
      %110 = arith.maximumf %108, %109 : vector<8x128xf32>
      %cst_34 = arith.constant 0.000000e+00 : f32
      %111 = vector.broadcast %cst_34 : f32 to vector<8x128xf32>
      %112 = arith.subf %111, %110 : vector<8x128xf32>
      %113 = arith.addf %112, %69 : vector<8x128xf32>
      %114 = arith.subf %37, %85 : vector<8x128xf32>
      %cst_35 = arith.constant 0.000000e+00 : f32
      %115 = vector.broadcast %cst_35 : f32 to vector<8x128xf32>
      %116 = arith.maximumf %114, %115 : vector<8x128xf32>
      %cst_36 = arith.constant 0.000000e+00 : f32
      %117 = vector.broadcast %cst_36 : f32 to vector<8x128xf32>
      %118 = arith.subf %117, %116 : vector<8x128xf32>
      %119 = arith.addf %118, %101 : vector<8x128xf32>
      %120 = arith.subf %119, %85 : vector<8x128xf32>
      %cst_37 = arith.constant 0.000000e+00 : f32
      %121 = vector.broadcast %cst_37 : f32 to vector<8x128xf32>
      %122 = arith.maximumf %120, %121 : vector<8x128xf32>
      %cst_38 = arith.constant 0.000000e+00 : f32
      %123 = vector.broadcast %cst_38 : f32 to vector<8x128xf32>
      %124 = arith.subf %123, %122 : vector<8x128xf32>
      %125 = arith.addf %124, %101 : vector<8x128xf32>
      %c0_39 = arith.constant 0 : index
      %126 = arith.index_cast %c0_i32_14 : i32 to index
      %c0_40 = arith.constant 0 : index
      %c0_41 = arith.constant 0 : index
      %127 = vector.load %arg5[%c0_39, %126, %c0_40, %c0_41] : memref<2x8x8x128xf32, #tpu.memory_space<vmem>>, vector<1x1x8x128xf32>
      %128 = vector.shape_cast %127 : vector<1x1x8x128xf32> to vector<8x128xf32>
      %129 = vector.shape_cast %113 : vector<8x128xf32> to vector<1x1x8x128xf32>
      tpu.vector_store %arg5[%c0_39, %126, %c0_40, %c0_41], %129 {strides = array<i32>} : memref<2x8x8x128xf32, #tpu.memory_space<vmem>>, vector<1x1x8x128xf32>,
      %c1_42 = arith.constant 1 : index
      %130 = arith.index_cast %c0_i32_14 : i32 to index
      %c0_43 = arith.constant 0 : index
      %c0_44 = arith.constant 0 : index
      %131 = vector.load %arg5[%c1_42, %130, %c0_43, %c0_44] : memref<2x8x8x128xf32, #tpu.memory_space<vmem>>, vector<1x1x8x128xf32>
      %132 = vector.shape_cast %131 : vector<1x1x8x128xf32> to vector<8x128xf32>
      %133 = vector.shape_cast %125 : vector<8x128xf32> to vector<1x1x8x128xf32>
      tpu.vector_store %arg5[%c1_42, %130, %c0_43, %c0_44], %133 {strides = array<i32>} : memref<2x8x8x128xf32, #tpu.memory_space<vmem>>, vector<1x1x8x128xf32>,
      %c0_45 = arith.constant 0 : index
      %134 = arith.index_cast %c0_i32_14 : i32 to index
      %c0_46 = arith.constant 0 : index
      %c0_47 = arith.constant 0 : index
      %135 = vector.load %arg4[%c0_45, %134, %c0_46, %c0_47] : memref<2x8x8x128xf32, #tpu.memory_space<vmem>>, vector<1x1x8x128xf32>
      %136 = vector.shape_cast %135 : vector<1x1x8x128xf32> to vector<8x128xf32>
      %c1_48 = arith.constant 1 : index
      %137 = arith.index_cast %c0_i32_14 : i32 to index
      %c0_49 = arith.constant 0 : index
      %c0_50 = arith.constant 0 : index
      %138 = vector.load %arg4[%c1_48, %137, %c0_49, %c0_50] : memref<2x8x8x128xf32, #tpu.memory_space<vmem>>, vector<1x1x8x128xf32>
      %139 = vector.shape_cast %138 : vector<1x1x8x128xf32> to vector<8x128xf32>
      %c1_i32 = arith.constant 1 : i32
      %140 = arith.mulf %113, %136 : vector<8x128xf32>
      %141 = arith.mulf %125, %139 : vector<8x128xf32>
      %142 = vector.broadcast %cst_3 : f32 to vector<8x128xf32>
      %143 = arith.addf %142, %140 : vector<8x128xf32>
      %144 = arith.addf %143, %141 : vector<8x128xf32>
      %145 = tpu.reciprocal %144 {approx = true} : vector<8x128xf32> -> vector<8x128xf32>
      %146 = arith.mulf %144, %145 : vector<8x128xf32>
      %147 = vector.broadcast %cst_4 : f32 to vector<8x128xf32>
      %148 = arith.subf %147, %146 : vector<8x128xf32>
      %149 = arith.mulf %145, %148 : vector<8x128xf32>
      %150 = arith.addf %113, %140 : vector<8x128xf32>
      %151 = arith.mulf %150, %149 : vector<8x128xf32>
      %152 = arith.addf %125, %141 : vector<8x128xf32>
      %153 = arith.mulf %152, %149 : vector<8x128xf32>
      %154 = vector.broadcast %2 : f32 to vector<8x128xf32>
      %155 = arith.subf %153, %154 : vector<8x128xf32>
      %156 = vector.broadcast %1 : f32 to vector<8x128xf32>
      %157 = arith.mulf %155, %156 : vector<8x128xf32>
      %cst_51 = arith.constant 0.000000e+00 : f32
      %158 = vector.broadcast %cst_51 : f32 to vector<8x128xf32>
      %159 = arith.maximumf %157, %158 : vector<8x128xf32>
      %cst_52 = arith.constant 0.000000e+00 : f32
      %160 = vector.broadcast %cst_52 : f32 to vector<8x128xf32>
      %161 = arith.subf %160, %159 : vector<8x128xf32>
      %162 = vector.broadcast %3 : f32 to vector<8x128xf32>
      %163 = arith.addf %161, %162 : vector<8x128xf32>
      %cst_53 = arith.constant 0.000000e+00 : f32
      %164 = vector.broadcast %cst_53 : f32 to vector<8x128xf32>
      %165 = arith.maximumf %163, %164 : vector<8x128xf32>
      %cst_54 = arith.constant 0.000000e+00 : f32
      %166 = vector.broadcast %cst_54 : f32 to vector<8x128xf32>
      %167 = arith.subf %166, %165 : vector<8x128xf32>
      %168 = vector.broadcast %4 : f32 to vector<8x128xf32>
      %169 = arith.addf %167, %168 : vector<8x128xf32>
      %170 = vector.broadcast %5 : f32 to vector<8x128xf32>
      %171 = arith.subf %153, %170 : vector<8x128xf32>
      %172 = vector.broadcast %1 : f32 to vector<8x128xf32>
      %173 = arith.mulf %171, %172 : vector<8x128xf32>
      %cst_55 = arith.constant 0.000000e+00 : f32
      %174 = vector.broadcast %cst_55 : f32 to vector<8x128xf32>
      %175 = arith.maximumf %173, %174 : vector<8x128xf32>
      %cst_56 = arith.constant 0.000000e+00 : f32
      %176 = vector.broadcast %cst_56 : f32 to vector<8x128xf32>
      %177 = arith.subf %176, %175 : vector<8x128xf32>
      %178 = vector.broadcast %6 : f32 to vector<8x128xf32>
      %179 = arith.addf %177, %178 : vector<8x128xf32>
      %cst_57 = arith.constant 0.000000e+00 : f32
      %180 = vector.broadcast %cst_57 : f32 to vector<8x128xf32>
      %181 = arith.maximumf %179, %180 : vector<8x128xf32>
      %cst_58 = arith.constant 0.000000e+00 : f32
      %182 = vector.broadcast %cst_58 : f32 to vector<8x128xf32>
      %183 = arith.subf %182, %181 : vector<8x128xf32>
      %184 = vector.broadcast %7 : f32 to vector<8x128xf32>
      %185 = arith.addf %183, %184 : vector<8x128xf32>
      %186 = vector.broadcast %8 : f32 to vector<8x128xf32>
      %187 = arith.subf %151, %186 : vector<8x128xf32>
      %188 = vector.broadcast %0 : f32 to vector<8x128xf32>
      %189 = arith.mulf %187, %188 : vector<8x128xf32>
      %cst_59 = arith.constant 0.000000e+00 : f32
      %190 = vector.broadcast %cst_59 : f32 to vector<8x128xf32>
      %191 = arith.maximumf %189, %190 : vector<8x128xf32>
      %cst_60 = arith.constant 0.000000e+00 : f32
      %192 = vector.broadcast %cst_60 : f32 to vector<8x128xf32>
      %193 = arith.subf %192, %191 : vector<8x128xf32>
      %194 = vector.broadcast %9 : f32 to vector<8x128xf32>
      %195 = arith.addf %193, %194 : vector<8x128xf32>
      %cst_61 = arith.constant 0.000000e+00 : f32
      %196 = vector.broadcast %cst_61 : f32 to vector<8x128xf32>
      %197 = arith.maximumf %195, %196 : vector<8x128xf32>
      %cst_62 = arith.constant 0.000000e+00 : f32
      %198 = vector.broadcast %cst_62 : f32 to vector<8x128xf32>
      %199 = arith.subf %198, %197 : vector<8x128xf32>
      %200 = vector.broadcast %10 : f32 to vector<8x128xf32>
      %201 = arith.addf %199, %200 : vector<8x128xf32>
      %202 = vector.broadcast %11 : f32 to vector<8x128xf32>
      %203 = arith.subf %151, %202 : vector<8x128xf32>
      %204 = vector.broadcast %0 : f32 to vector<8x128xf32>
      %205 = arith.mulf %203, %204 : vector<8x128xf32>
      %cst_63 = arith.constant 0.000000e+00 : f32
      %206 = vector.broadcast %cst_63 : f32 to vector<8x128xf32>
      %207 = arith.maximumf %205, %206 : vector<8x128xf32>
      %cst_64 = arith.constant 0.000000e+00 : f32
      %208 = vector.broadcast %cst_64 : f32 to vector<8x128xf32>
      %209 = arith.subf %208, %207 : vector<8x128xf32>
      %210 = vector.broadcast %12 : f32 to vector<8x128xf32>
      %211 = arith.addf %209, %210 : vector<8x128xf32>
      %cst_65 = arith.constant 0.000000e+00 : f32
      %212 = vector.broadcast %cst_65 : f32 to vector<8x128xf32>
      %213 = arith.maximumf %211, %212 : vector<8x128xf32>
      %cst_66 = arith.constant 0.000000e+00 : f32
      %214 = vector.broadcast %cst_66 : f32 to vector<8x128xf32>
      %215 = arith.subf %214, %213 : vector<8x128xf32>
      %216 = vector.broadcast %13 : f32 to vector<8x128xf32>
      %217 = arith.addf %215, %216 : vector<8x128xf32>
      %218 = arith.subf %151, %169 : vector<8x128xf32>
      %cst_67 = arith.constant 0.000000e+00 : f32
      %219 = vector.broadcast %cst_67 : f32 to vector<8x128xf32>
      %220 = arith.maximumf %218, %219 : vector<8x128xf32>
      %cst_68 = arith.constant 0.000000e+00 : f32
      %221 = vector.broadcast %cst_68 : f32 to vector<8x128xf32>
      %222 = arith.subf %221, %220 : vector<8x128xf32>
      %223 = arith.addf %222, %185 : vector<8x128xf32>
      %224 = arith.subf %223, %169 : vector<8x128xf32>
      %cst_69 = arith.constant 0.000000e+00 : f32
      %225 = vector.broadcast %cst_69 : f32 to vector<8x128xf32>
      %226 = arith.maximumf %224, %225 : vector<8x128xf32>
      %cst_70 = arith.constant 0.000000e+00 : f32
      %227 = vector.broadcast %cst_70 : f32 to vector<8x128xf32>
      %228 = arith.subf %227, %226 : vector<8x128xf32>
      %229 = arith.addf %228, %185 : vector<8x128xf32>
      %230 = arith.subf %153, %201 : vector<8x128xf32>
      %cst_71 = arith.constant 0.000000e+00 : f32
      %231 = vector.broadcast %cst_71 : f32 to vector<8x128xf32>
      %232 = arith.maximumf %230, %231 : vector<8x128xf32>
      %cst_72 = arith.constant 0.000000e+00 : f32
      %233 = vector.broadcast %cst_72 : f32 to vector<8x128xf32>
      %234 = arith.subf %233, %232 : vector<8x128xf32>
      %235 = arith.addf %234, %217 : vector<8x128xf32>
      %236 = arith.subf %235, %201 : vector<8x128xf32>
      %cst_73 = arith.constant 0.000000e+00 : f32
      %237 = vector.broadcast %cst_73 : f32 to vector<8x128xf32>
      %238 = arith.maximumf %236, %237 : vector<8x128xf32>
      %cst_74 = arith.constant 0.000000e+00 : f32
      %239 = vector.broadcast %cst_74 : f32 to vector<8x128xf32>
      %240 = arith.subf %239, %238 : vector<8x128xf32>
      %241 = arith.addf %240, %217 : vector<8x128xf32>
      %c0_75 = arith.constant 0 : index
      %242 = arith.index_cast %c1_i32 : i32 to index
      %c0_76 = arith.constant 0 : index
      %c0_77 = arith.constant 0 : index
      %243 = vector.load %arg5[%c0_75, %242, %c0_76, %c0_77] : memref<2x8x8x128xf32, #tpu.memory_space<vmem>>, vector<1x1x8x128xf32>
      %244 = vector.shape_cast %243 : vector<1x1x8x128xf32> to vector<8x128xf32>
      %245 = vector.shape_cast %229 : vector<8x128xf32> to vector<1x1x8x128xf32>
      tpu.vector_store %arg5[%c0_75, %242, %c0_76, %c0_77], %245 {strides = array<i32>} : memref<2x8x8x128xf32, #tpu.memory_space<vmem>>, vector<1x1x8x128xf32>,
      %c1_78 = arith.constant 1 : index
      %246 = arith.index_cast %c1_i32 : i32 to index
      %c0_79 = arith.constant 0 : index
      %c0_80 = arith.constant 0 : index
      %247 = vector.load %arg5[%c1_78, %246, %c0_79, %c0_80] : memref<2x8x8x128xf32, #tpu.memory_space<vmem>>, vector<1x1x8x128xf32>
      %248 = vector.shape_cast %247 : vector<1x1x8x128xf32> to vector<8x128xf32>
      %249 = vector.shape_cast %241 : vector<8x128xf32> to vector<1x1x8x128xf32>
      tpu.vector_store %arg5[%c1_78, %246, %c0_79, %c0_80], %249 {strides = array<i32>} : memref<2x8x8x128xf32, #tpu.memory_space<vmem>>, vector<1x1x8x128xf32>,
      %c0_81 = arith.constant 0 : index
      %250 = arith.index_cast %c1_i32 : i32 to index
      %c0_82 = arith.constant 0 : index
      %c0_83 = arith.constant 0 : index
      %251 = vector.load %arg4[%c0_81, %250, %c0_82, %c0_83] : memref<2x8x8x128xf32, #tpu.memory_space<vmem>>, vector<1x1x8x128xf32>
      %252 = vector.shape_cast %251 : vector<1x1x8x128xf32> to vector<8x128xf32>
      %c1_84 = arith.constant 1 : index
      %253 = arith.index_cast %c1_i32 : i32 to index
      %c0_85 = arith.constant 0 : index
      %c0_86 = arith.constant 0 : index
      %254 = vector.load %arg4[%c1_84, %253, %c0_85, %c0_86] : memref<2x8x8x128xf32, #tpu.memory_space<vmem>>, vector<1x1x8x128xf32>
      %255 = vector.shape_cast %254 : vector<1x1x8x128xf32> to vector<8x128xf32>
      %c2_i32 = arith.constant 2 : i32
      %256 = arith.mulf %229, %252 : vector<8x128xf32>
      %257 = arith.mulf %241, %255 : vector<8x128xf32>
      %258 = vector.broadcast %cst_3 : f32 to vector<8x128xf32>
      %259 = arith.addf %258, %256 : vector<8x128xf32>
      %260 = arith.addf %259, %257 : vector<8x128xf32>
      %261 = tpu.reciprocal %260 {approx = true} : vector<8x128xf32> -> vector<8x128xf32>
      %262 = arith.mulf %260, %261 : vector<8x128xf32>
      %263 = vector.broadcast %cst_4 : f32 to vector<8x128xf32>
      %264 = arith.subf %263, %262 : vector<8x128xf32>
      %265 = arith.mulf %261, %264 : vector<8x128xf32>
      %266 = arith.addf %229, %256 : vector<8x128xf32>
      %267 = arith.mulf %266, %265 : vector<8x128xf32>
      %268 = arith.addf %241, %257 : vector<8x128xf32>
      %269 = arith.mulf %268, %265 : vector<8x128xf32>
      %270 = vector.broadcast %2 : f32 to vector<8x128xf32>
      %271 = arith.subf %269, %270 : vector<8x128xf32>
      %272 = vector.broadcast %1 : f32 to vector<8x128xf32>
      %273 = arith.mulf %271, %272 : vector<8x128xf32>
      %cst_87 = arith.constant 0.000000e+00 : f32
      %274 = vector.broadcast %cst_87 : f32 to vector<8x128xf32>
      %275 = arith.maximumf %273, %274 : vector<8x128xf32>
      %cst_88 = arith.constant 0.000000e+00 : f32
      %276 = vector.broadcast %cst_88 : f32 to vector<8x128xf32>
      %277 = arith.subf %276, %275 : vector<8x128xf32>
      %278 = vector.broadcast %3 : f32 to vector<8x128xf32>
      %279 = arith.addf %277, %278 : vector<8x128xf32>
      %cst_89 = arith.constant 0.000000e+00 : f32
      %280 = vector.broadcast %cst_89 : f32 to vector<8x128xf32>
      %281 = arith.maximumf %279, %280 : vector<8x128xf32>
      %cst_90 = arith.constant 0.000000e+00 : f32
      %282 = vector.broadcast %cst_90 : f32 to vector<8x128xf32>
      %283 = arith.subf %282, %281 : vector<8x128xf32>
      %284 = vector.broadcast %4 : f32 to vector<8x128xf32>
      %285 = arith.addf %283, %284 : vector<8x128xf32>
      %286 = vector.broadcast %5 : f32 to vector<8x128xf32>
      %287 = arith.subf %269, %286 : vector<8x128xf32>
      %288 = vector.broadcast %1 : f32 to vector<8x128xf32>
      %289 = arith.mulf %287, %288 : vector<8x128xf32>
      %cst_91 = arith.constant 0.000000e+00 : f32
      %290 = vector.broadcast %cst_91 : f32 to vector<8x128xf32>
      %291 = arith.maximumf %289, %290 : vector<8x128xf32>
      %cst_92 = arith.constant 0.000000e+00 : f32
      %292 = vector.broadcast %cst_92 : f32 to vector<8x128xf32>
      %293 = arith.subf %292, %291 : vector<8x128xf32>
      %294 = vector.broadcast %6 : f32 to vector<8x128xf32>
      %295 = arith.addf %293, %294 : vector<8x128xf32>
      %cst_93 = arith.constant 0.000000e+00 : f32
      %296 = vector.broadcast %cst_93 : f32 to vector<8x128xf32>
      %297 = arith.maximumf %295, %296 : vector<8x128xf32>
      %cst_94 = arith.constant 0.000000e+00 : f32
      %298 = vector.broadcast %cst_94 : f32 to vector<8x128xf32>
      %299 = arith.subf %298, %297 : vector<8x128xf32>
      %300 = vector.broadcast %7 : f32 to vector<8x128xf32>
      %301 = arith.addf %299, %300 : vector<8x128xf32>
      %302 = vector.broadcast %8 : f32 to vector<8x128xf32>
      %303 = arith.subf %267, %302 : vector<8x128xf32>
      %304 = vector.broadcast %0 : f32 to vector<8x128xf32>
      %305 = arith.mulf %303, %304 : vector<8x128xf32>
      %cst_95 = arith.constant 0.000000e+00 : f32
      %306 = vector.broadcast %cst_95 : f32 to vector<8x128xf32>
      %307 = arith.maximumf %305, %306 : vector<8x128xf32>
      %cst_96 = arith.constant 0.000000e+00 : f32
      %308 = vector.broadcast %cst_96 : f32 to vector<8x128xf32>
      %309 = arith.subf %308, %307 : vector<8x128xf32>
      %310 = vector.broadcast %9 : f32 to vector<8x128xf32>
      %311 = arith.addf %309, %310 : vector<8x128xf32>
      %cst_97 = arith.constant 0.000000e+00 : f32
      %312 = vector.broadcast %cst_97 : f32 to vector<8x128xf32>
      %313 = arith.maximumf %311, %312 : vector<8x128xf32>
      %cst_98 = arith.constant 0.000000e+00 : f32
      %314 = vector.broadcast %cst_98 : f32 to vector<8x128xf32>
      %315 = arith.subf %314, %313 : vector<8x128xf32>
      %316 = vector.broadcast %10 : f32 to vector<8x128xf32>
      %317 = arith.addf %315, %316 : vector<8x128xf32>
      %318 = vector.broadcast %11 : f32 to vector<8x128xf32>
      %319 = arith.subf %267, %318 : vector<8x128xf32>
      %320 = vector.broadcast %0 : f32 to vector<8x128xf32>
      %321 = arith.mulf %319, %320 : vector<8x128xf32>
      %cst_99 = arith.constant 0.000000e+00 : f32
      %322 = vector.broadcast %cst_99 : f32 to vector<8x128xf32>
      %323 = arith.maximumf %321, %322 : vector<8x128xf32>
      %cst_100 = arith.constant 0.000000e+00 : f32
      %324 = vector.broadcast %cst_100 : f32 to vector<8x128xf32>
      %325 = arith.subf %324, %323 : vector<8x128xf32>
      %326 = vector.broadcast %12 : f32 to vector<8x128xf32>
      %327 = arith.addf %325, %326 : vector<8x128xf32>
      %cst_101 = arith.constant 0.000000e+00 : f32
      %328 = vector.broadcast %cst_101 : f32 to vector<8x128xf32>
      %329 = arith.maximumf %327, %328 : vector<8x128xf32>
      %cst_102 = arith.constant 0.000000e+00 : f32
      %330 = vector.broadcast %cst_102 : f32 to vector<8x128xf32>
      %331 = arith.subf %330, %329 : vector<8x128xf32>
      %332 = vector.broadcast %13 : f32 to vector<8x128xf32>
      %333 = arith.addf %331, %332 : vector<8x128xf32>
      %334 = arith.subf %267, %285 : vector<8x128xf32>
      %cst_103 = arith.constant 0.000000e+00 : f32
      %335 = vector.broadcast %cst_103 : f32 to vector<8x128xf32>
      %336 = arith.maximumf %334, %335 : vector<8x128xf32>
      %cst_104 = arith.constant 0.000000e+00 : f32
      %337 = vector.broadcast %cst_104 : f32 to vector<8x128xf32>
      %338 = arith.subf %337, %336 : vector<8x128xf32>
      %339 = arith.addf %338, %301 : vector<8x128xf32>
      %340 = arith.subf %339, %285 : vector<8x128xf32>
      %cst_105 = arith.constant 0.000000e+00 : f32
      %341 = vector.broadcast %cst_105 : f32 to vector<8x128xf32>
      %342 = arith.maximumf %340, %341 : vector<8x128xf32>
      %cst_106 = arith.constant 0.000000e+00 : f32
      %343 = vector.broadcast %cst_106 : f32 to vector<8x128xf32>
      %344 = arith.subf %343, %342 : vector<8x128xf32>
      %345 = arith.addf %344, %301 : vector<8x128xf32>
      %346 = arith.subf %269, %317 : vector<8x128xf32>
      %cst_107 = arith.constant 0.000000e+00 : f32
      %347 = vector.broadcast %cst_107 : f32 to vector<8x128xf32>
      %348 = arith.maximumf %346, %347 : vector<8x128xf32>
      %cst_108 = arith.constant 0.000000e+00 : f32
      %349 = vector.broadcast %cst_108 : f32 to vector<8x128xf32>
      %350 = arith.subf %349, %348 : vector<8x128xf32>
      %351 = arith.addf %350, %333 : vector<8x128xf32>
      %352 = arith.subf %351, %317 : vector<8x128xf32>
      %cst_109 = arith.constant 0.000000e+00 : f32
      %353 = vector.broadcast %cst_109 : f32 to vector<8x128xf32>
      %354 = arith.maximumf %352, %353 : vector<8x128xf32>
      %cst_110 = arith.constant 0.000000e+00 : f32
      %355 = vector.broadcast %cst_110 : f32 to vector<8x128xf32>
      %356 = arith.subf %355, %354 : vector<8x128xf32>
      %357 = arith.addf %356, %333 : vector<8x128xf32>
      %c0_111 = arith.constant 0 : index
      %358 = arith.index_cast %c2_i32 : i32 to index
      %c0_112 = arith.constant 0 : index
      %c0_113 = arith.constant 0 : index
      %359 = vector.load %arg5[%c0_111, %358, %c0_112, %c0_113] : memref<2x8x8x128xf32, #tpu.memory_space<vmem>>, vector<1x1x8x128xf32>
      %360 = vector.shape_cast %359 : vector<1x1x8x128xf32> to vector<8x128xf32>
      %361 = vector.shape_cast %345 : vector<8x128xf32> to vector<1x1x8x128xf32>
      tpu.vector_store %arg5[%c0_111, %358, %c0_112, %c0_113], %361 {strides = array<i32>} : memref<2x8x8x128xf32, #tpu.memory_space<vmem>>, vector<1x1x8x128xf32>,
      %c1_114 = arith.constant 1 : index
      %362 = arith.index_cast %c2_i32 : i32 to index
      %c0_115 = arith.constant 0 : index
      %c0_116 = arith.constant 0 : index
      %363 = vector.load %arg5[%c1_114, %362, %c0_115, %c0_116] : memref<2x8x8x128xf32, #tpu.memory_space<vmem>>, vector<1x1x8x128xf32>
      %364 = vector.shape_cast %363 : vector<1x1x8x128xf32> to vector<8x128xf32>
      %365 = vector.shape_cast %357 : vector<8x128xf32> to vector<1x1x8x128xf32>
      tpu.vector_store %arg5[%c1_114, %362, %c0_115, %c0_116], %365 {strides = array<i32>} : memref<2x8x8x128xf32, #tpu.memory_space<vmem>>, vector<1x1x8x128xf32>,
      %c0_117 = arith.constant 0 : index
      %366 = arith.index_cast %c2_i32 : i32 to index
      %c0_118 = arith.constant 0 : index
      %c0_119 = arith.constant 0 : index
      %367 = vector.load %arg4[%c0_117, %366, %c0_118, %c0_119] : memref<2x8x8x128xf32, #tpu.memory_space<vmem>>, vector<1x1x8x128xf32>
      %368 = vector.shape_cast %367 : vector<1x1x8x128xf32> to vector<8x128xf32>
      %c1_120 = arith.constant 1 : index
      %369 = arith.index_cast %c2_i32 : i32 to index
      %c0_121 = arith.constant 0 : index
      %c0_122 = arith.constant 0 : index
      %370 = vector.load %arg4[%c1_120, %369, %c0_121, %c0_122] : memref<2x8x8x128xf32, #tpu.memory_space<vmem>>, vector<1x1x8x128xf32>
      %371 = vector.shape_cast %370 : vector<1x1x8x128xf32> to vector<8x128xf32>
      %c3_i32 = arith.constant 3 : i32
      %372 = arith.mulf %345, %368 : vector<8x128xf32>
      %373 = arith.mulf %357, %371 : vector<8x128xf32>
      %374 = vector.broadcast %cst_3 : f32 to vector<8x128xf32>
      %375 = arith.addf %374, %372 : vector<8x128xf32>
      %376 = arith.addf %375, %373 : vector<8x128xf32>
      %377 = tpu.reciprocal %376 {approx = true} : vector<8x128xf32> -> vector<8x128xf32>
      %378 = arith.mulf %376, %377 : vector<8x128xf32>
      %379 = vector.broadcast %cst_4 : f32 to vector<8x128xf32>
      %380 = arith.subf %379, %378 : vector<8x128xf32>
      %381 = arith.mulf %377, %380 : vector<8x128xf32>
      %382 = arith.addf %345, %372 : vector<8x128xf32>
      %383 = arith.mulf %382, %381 : vector<8x128xf32>
      %384 = arith.addf %357, %373 : vector<8x128xf32>
      %385 = arith.mulf %384, %381 : vector<8x128xf32>
      %386 = vector.broadcast %2 : f32 to vector<8x128xf32>
      %387 = arith.subf %385, %386 : vector<8x128xf32>
      %388 = vector.broadcast %1 : f32 to vector<8x128xf32>
      %389 = arith.mulf %387, %388 : vector<8x128xf32>
      %cst_123 = arith.constant 0.000000e+00 : f32
      %390 = vector.broadcast %cst_123 : f32 to vector<8x128xf32>
      %391 = arith.maximumf %389, %390 : vector<8x128xf32>
      %cst_124 = arith.constant 0.000000e+00 : f32
      %392 = vector.broadcast %cst_124 : f32 to vector<8x128xf32>
      %393 = arith.subf %392, %391 : vector<8x128xf32>
      %394 = vector.broadcast %3 : f32 to vector<8x128xf32>
      %395 = arith.addf %393, %394 : vector<8x128xf32>
      %cst_125 = arith.constant 0.000000e+00 : f32
      %396 = vector.broadcast %cst_125 : f32 to vector<8x128xf32>
      %397 = arith.maximumf %395, %396 : vector<8x128xf32>
      %cst_126 = arith.constant 0.000000e+00 : f32
      %398 = vector.broadcast %cst_126 : f32 to vector<8x128xf32>
      %399 = arith.subf %398, %397 : vector<8x128xf32>
      %400 = vector.broadcast %4 : f32 to vector<8x128xf32>
      %401 = arith.addf %399, %400 : vector<8x128xf32>
      %402 = vector.broadcast %5 : f32 to vector<8x128xf32>
      %403 = arith.subf %385, %402 : vector<8x128xf32>
      %404 = vector.broadcast %1 : f32 to vector<8x128xf32>
      %405 = arith.mulf %403, %404 : vector<8x128xf32>
      %cst_127 = arith.constant 0.000000e+00 : f32
      %406 = vector.broadcast %cst_127 : f32 to vector<8x128xf32>
      %407 = arith.maximumf %405, %406 : vector<8x128xf32>
      %cst_128 = arith.constant 0.000000e+00 : f32
      %408 = vector.broadcast %cst_128 : f32 to vector<8x128xf32>
      %409 = arith.subf %408, %407 : vector<8x128xf32>
      %410 = vector.broadcast %6 : f32 to vector<8x128xf32>
      %411 = arith.addf %409, %410 : vector<8x128xf32>
      %cst_129 = arith.constant 0.000000e+00 : f32
      %412 = vector.broadcast %cst_129 : f32 to vector<8x128xf32>
      %413 = arith.maximumf %411, %412 : vector<8x128xf32>
      %cst_130 = arith.constant 0.000000e+00 : f32
      %414 = vector.broadcast %cst_130 : f32 to vector<8x128xf32>
      %415 = arith.subf %414, %413 : vector<8x128xf32>
      %416 = vector.broadcast %7 : f32 to vector<8x128xf32>
      %417 = arith.addf %415, %416 : vector<8x128xf32>
      %418 = vector.broadcast %8 : f32 to vector<8x128xf32>
      %419 = arith.subf %383, %418 : vector<8x128xf32>
      %420 = vector.broadcast %0 : f32 to vector<8x128xf32>
      %421 = arith.mulf %419, %420 : vector<8x128xf32>
      %cst_131 = arith.constant 0.000000e+00 : f32
      %422 = vector.broadcast %cst_131 : f32 to vector<8x128xf32>
      %423 = arith.maximumf %421, %422 : vector<8x128xf32>
      %cst_132 = arith.constant 0.000000e+00 : f32
      %424 = vector.broadcast %cst_132 : f32 to vector<8x128xf32>
      %425 = arith.subf %424, %423 : vector<8x128xf32>
      %426 = vector.broadcast %9 : f32 to vector<8x128xf32>
      %427 = arith.addf %425, %426 : vector<8x128xf32>
      %cst_133 = arith.constant 0.000000e+00 : f32
      %428 = vector.broadcast %cst_133 : f32 to vector<8x128xf32>
      %429 = arith.maximumf %427, %428 : vector<8x128xf32>
      %cst_134 = arith.constant 0.000000e+00 : f32
      %430 = vector.broadcast %cst_134 : f32 to vector<8x128xf32>
      %431 = arith.subf %430, %429 : vector<8x128xf32>
      %432 = vector.broadcast %10 : f32 to vector<8x128xf32>
      %433 = arith.addf %431, %432 : vector<8x128xf32>
      %434 = vector.broadcast %11 : f32 to vector<8x128xf32>
      %435 = arith.subf %383, %434 : vector<8x128xf32>
      %436 = vector.broadcast %0 : f32 to vector<8x128xf32>
      %437 = arith.mulf %435, %436 : vector<8x128xf32>
      %cst_135 = arith.constant 0.000000e+00 : f32
      %438 = vector.broadcast %cst_135 : f32 to vector<8x128xf32>
      %439 = arith.maximumf %437, %438 : vector<8x128xf32>
      %cst_136 = arith.constant 0.000000e+00 : f32
      %440 = vector.broadcast %cst_136 : f32 to vector<8x128xf32>
      %441 = arith.subf %440, %439 : vector<8x128xf32>
      %442 = vector.broadcast %12 : f32 to vector<8x128xf32>
      %443 = arith.addf %441, %442 : vector<8x128xf32>
      %cst_137 = arith.constant 0.000000e+00 : f32
      %444 = vector.broadcast %cst_137 : f32 to vector<8x128xf32>
      %445 = arith.maximumf %443, %444 : vector<8x128xf32>
      %cst_138 = arith.constant 0.000000e+00 : f32
      %446 = vector.broadcast %cst_138 : f32 to vector<8x128xf32>
      %447 = arith.subf %446, %445 : vector<8x128xf32>
      %448 = vector.broadcast %13 : f32 to vector<8x128xf32>
      %449 = arith.addf %447, %448 : vector<8x128xf32>
      %450 = arith.subf %383, %401 : vector<8x128xf32>
      %cst_139 = arith.constant 0.000000e+00 : f32
      %451 = vector.broadcast %cst_139 : f32 to vector<8x128xf32>
      %452 = arith.maximumf %450, %451 : vector<8x128xf32>
      %cst_140 = arith.constant 0.000000e+00 : f32
      %453 = vector.broadcast %cst_140 : f32 to vector<8x128xf32>
      %454 = arith.subf %453, %452 : vector<8x128xf32>
      %455 = arith.addf %454, %417 : vector<8x128xf32>
      %456 = arith.subf %455, %401 : vector<8x128xf32>
      %cst_141 = arith.constant 0.000000e+00 : f32
      %457 = vector.broadcast %cst_141 : f32 to vector<8x128xf32>
      %458 = arith.maximumf %456, %457 : vector<8x128xf32>
      %cst_142 = arith.constant 0.000000e+00 : f32
      %459 = vector.broadcast %cst_142 : f32 to vector<8x128xf32>
      %460 = arith.subf %459, %458 : vector<8x128xf32>
      %461 = arith.addf %460, %417 : vector<8x128xf32>
      %462 = arith.subf %385, %433 : vector<8x128xf32>
      %cst_143 = arith.constant 0.000000e+00 : f32
      %463 = vector.broadcast %cst_143 : f32 to vector<8x128xf32>
      %464 = arith.maximumf %462, %463 : vector<8x128xf32>
      %cst_144 = arith.constant 0.000000e+00 : f32
      %465 = vector.broadcast %cst_144 : f32 to vector<8x128xf32>
      %466 = arith.subf %465, %464 : vector<8x128xf32>
      %467 = arith.addf %466, %449 : vector<8x128xf32>
      %468 = arith.subf %467, %433 : vector<8x128xf32>
      %cst_145 = arith.constant 0.000000e+00 : f32
      %469 = vector.broadcast %cst_145 : f32 to vector<8x128xf32>
      %470 = arith.maximumf %468, %469 : vector<8x128xf32>
      %cst_146 = arith.constant 0.000000e+00 : f32
      %471 = vector.broadcast %cst_146 : f32 to vector<8x128xf32>
      %472 = arith.subf %471, %470 : vector<8x128xf32>
      %473 = arith.addf %472, %449 : vector<8x128xf32>
      %c0_147 = arith.constant 0 : index
      %474 = arith.index_cast %c3_i32 : i32 to index
      %c0_148 = arith.constant 0 : index
      %c0_149 = arith.constant 0 : index
      %475 = vector.load %arg5[%c0_147, %474, %c0_148, %c0_149] : memref<2x8x8x128xf32, #tpu.memory_space<vmem>>, vector<1x1x8x128xf32>
      %476 = vector.shape_cast %475 : vector<1x1x8x128xf32> to vector<8x128xf32>
      %477 = vector.shape_cast %461 : vector<8x128xf32> to vector<1x1x8x128xf32>
      tpu.vector_store %arg5[%c0_147, %474, %c0_148, %c0_149], %477 {strides = array<i32>} : memref<2x8x8x128xf32, #tpu.memory_space<vmem>>, vector<1x1x8x128xf32>,
      %c1_150 = arith.constant 1 : index
      %478 = arith.index_cast %c3_i32 : i32 to index
      %c0_151 = arith.constant 0 : index
      %c0_152 = arith.constant 0 : index
      %479 = vector.load %arg5[%c1_150, %478, %c0_151, %c0_152] : memref<2x8x8x128xf32, #tpu.memory_space<vmem>>, vector<1x1x8x128xf32>
      %480 = vector.shape_cast %479 : vector<1x1x8x128xf32> to vector<8x128xf32>
      %481 = vector.shape_cast %473 : vector<8x128xf32> to vector<1x1x8x128xf32>
      tpu.vector_store %arg5[%c1_150, %478, %c0_151, %c0_152], %481 {strides = array<i32>} : memref<2x8x8x128xf32, #tpu.memory_space<vmem>>, vector<1x1x8x128xf32>,
      %c0_153 = arith.constant 0 : index
      %482 = arith.index_cast %c3_i32 : i32 to index
      %c0_154 = arith.constant 0 : index
      %c0_155 = arith.constant 0 : index
      %483 = vector.load %arg4[%c0_153, %482, %c0_154, %c0_155] : memref<2x8x8x128xf32, #tpu.memory_space<vmem>>, vector<1x1x8x128xf32>
      %484 = vector.shape_cast %483 : vector<1x1x8x128xf32> to vector<8x128xf32>
      %c1_156 = arith.constant 1 : index
      %485 = arith.index_cast %c3_i32 : i32 to index
      %c0_157 = arith.constant 0 : index
      %c0_158 = arith.constant 0 : index
      %486 = vector.load %arg4[%c1_156, %485, %c0_157, %c0_158] : memref<2x8x8x128xf32, #tpu.memory_space<vmem>>, vector<1x1x8x128xf32>
      %487 = vector.shape_cast %486 : vector<1x1x8x128xf32> to vector<8x128xf32>
      %c4_i32 = arith.constant 4 : i32
      %488 = arith.mulf %461, %484 : vector<8x128xf32>
      %489 = arith.mulf %473, %487 : vector<8x128xf32>
      %490 = vector.broadcast %cst_3 : f32 to vector<8x128xf32>
      %491 = arith.addf %490, %488 : vector<8x128xf32>
      %492 = arith.addf %491, %489 : vector<8x128xf32>
      %493 = tpu.reciprocal %492 {approx = true} : vector<8x128xf32> -> vector<8x128xf32>
      %494 = arith.mulf %492, %493 : vector<8x128xf32>
      %495 = vector.broadcast %cst_4 : f32 to vector<8x128xf32>
      %496 = arith.subf %495, %494 : vector<8x128xf32>
      %497 = arith.mulf %493, %496 : vector<8x128xf32>
      %498 = arith.addf %461, %488 : vector<8x128xf32>
      %499 = arith.mulf %498, %497 : vector<8x128xf32>
      %500 = arith.addf %473, %489 : vector<8x128xf32>
      %501 = arith.mulf %500, %497 : vector<8x128xf32>
      %502 = vector.broadcast %2 : f32 to vector<8x128xf32>
      %503 = arith.subf %501, %502 : vector<8x128xf32>
      %504 = vector.broadcast %1 : f32 to vector<8x128xf32>
      %505 = arith.mulf %503, %504 : vector<8x128xf32>
      %cst_159 = arith.constant 0.000000e+00 : f32
      %506 = vector.broadcast %cst_159 : f32 to vector<8x128xf32>
      %507 = arith.maximumf %505, %506 : vector<8x128xf32>
      %cst_160 = arith.constant 0.000000e+00 : f32
      %508 = vector.broadcast %cst_160 : f32 to vector<8x128xf32>
      %509 = arith.subf %508, %507 : vector<8x128xf32>
      %510 = vector.broadcast %3 : f32 to vector<8x128xf32>
      %511 = arith.addf %509, %510 : vector<8x128xf32>
      %cst_161 = arith.constant 0.000000e+00 : f32
      %512 = vector.broadcast %cst_161 : f32 to vector<8x128xf32>
      %513 = arith.maximumf %511, %512 : vector<8x128xf32>
      %cst_162 = arith.constant 0.000000e+00 : f32
      %514 = vector.broadcast %cst_162 : f32 to vector<8x128xf32>
      %515 = arith.subf %514, %513 : vector<8x128xf32>
      %516 = vector.broadcast %4 : f32 to vector<8x128xf32>
      %517 = arith.addf %515, %516 : vector<8x128xf32>
      %518 = vector.broadcast %5 : f32 to vector<8x128xf32>
      %519 = arith.subf %501, %518 : vector<8x128xf32>
      %520 = vector.broadcast %1 : f32 to vector<8x128xf32>
      %521 = arith.mulf %519, %520 : vector<8x128xf32>
      %cst_163 = arith.constant 0.000000e+00 : f32
      %522 = vector.broadcast %cst_163 : f32 to vector<8x128xf32>
      %523 = arith.maximumf %521, %522 : vector<8x128xf32>
      %cst_164 = arith.constant 0.000000e+00 : f32
      %524 = vector.broadcast %cst_164 : f32 to vector<8x128xf32>
      %525 = arith.subf %524, %523 : vector<8x128xf32>
      %526 = vector.broadcast %6 : f32 to vector<8x128xf32>
      %527 = arith.addf %525, %526 : vector<8x128xf32>
      %cst_165 = arith.constant 0.000000e+00 : f32
      %528 = vector.broadcast %cst_165 : f32 to vector<8x128xf32>
      %529 = arith.maximumf %527, %528 : vector<8x128xf32>
      %cst_166 = arith.constant 0.000000e+00 : f32
      %530 = vector.broadcast %cst_166 : f32 to vector<8x128xf32>
      %531 = arith.subf %530, %529 : vector<8x128xf32>
      %532 = vector.broadcast %7 : f32 to vector<8x128xf32>
      %533 = arith.addf %531, %532 : vector<8x128xf32>
      %534 = vector.broadcast %8 : f32 to vector<8x128xf32>
      %535 = arith.subf %499, %534 : vector<8x128xf32>
      %536 = vector.broadcast %0 : f32 to vector<8x128xf32>
      %537 = arith.mulf %535, %536 : vector<8x128xf32>
      %cst_167 = arith.constant 0.000000e+00 : f32
      %538 = vector.broadcast %cst_167 : f32 to vector<8x128xf32>
      %539 = arith.maximumf %537, %538 : vector<8x128xf32>
      %cst_168 = arith.constant 0.000000e+00 : f32
      %540 = vector.broadcast %cst_168 : f32 to vector<8x128xf32>
      %541 = arith.subf %540, %539 : vector<8x128xf32>
      %542 = vector.broadcast %9 : f32 to vector<8x128xf32>
      %543 = arith.addf %541, %542 : vector<8x128xf32>
      %cst_169 = arith.constant 0.000000e+00 : f32
      %544 = vector.broadcast %cst_169 : f32 to vector<8x128xf32>
      %545 = arith.maximumf %543, %544 : vector<8x128xf32>
      %cst_170 = arith.constant 0.000000e+00 : f32
      %546 = vector.broadcast %cst_170 : f32 to vector<8x128xf32>
      %547 = arith.subf %546, %545 : vector<8x128xf32>
      %548 = vector.broadcast %10 : f32 to vector<8x128xf32>
      %549 = arith.addf %547, %548 : vector<8x128xf32>
      %550 = vector.broadcast %11 : f32 to vector<8x128xf32>
      %551 = arith.subf %499, %550 : vector<8x128xf32>
      %552 = vector.broadcast %0 : f32 to vector<8x128xf32>
      %553 = arith.mulf %551, %552 : vector<8x128xf32>
      %cst_171 = arith.constant 0.000000e+00 : f32
      %554 = vector.broadcast %cst_171 : f32 to vector<8x128xf32>
      %555 = arith.maximumf %553, %554 : vector<8x128xf32>
      %cst_172 = arith.constant 0.000000e+00 : f32
      %556 = vector.broadcast %cst_172 : f32 to vector<8x128xf32>
      %557 = arith.subf %556, %555 : vector<8x128xf32>
      %558 = vector.broadcast %12 : f32 to vector<8x128xf32>
      %559 = arith.addf %557, %558 : vector<8x128xf32>
      %cst_173 = arith.constant 0.000000e+00 : f32
      %560 = vector.broadcast %cst_173 : f32 to vector<8x128xf32>
      %561 = arith.maximumf %559, %560 : vector<8x128xf32>
      %cst_174 = arith.constant 0.000000e+00 : f32
      %562 = vector.broadcast %cst_174 : f32 to vector<8x128xf32>
      %563 = arith.subf %562, %561 : vector<8x128xf32>
      %564 = vector.broadcast %13 : f32 to vector<8x128xf32>
      %565 = arith.addf %563, %564 : vector<8x128xf32>
      %566 = arith.subf %499, %517 : vector<8x128xf32>
      %cst_175 = arith.constant 0.000000e+00 : f32
      %567 = vector.broadcast %cst_175 : f32 to vector<8x128xf32>
      %568 = arith.maximumf %566, %567 : vector<8x128xf32>
      %cst_176 = arith.constant 0.000000e+00 : f32
      %569 = vector.broadcast %cst_176 : f32 to vector<8x128xf32>
      %570 = arith.subf %569, %568 : vector<8x128xf32>
      %571 = arith.addf %570, %533 : vector<8x128xf32>
      %572 = arith.subf %571, %517 : vector<8x128xf32>
      %cst_177 = arith.constant 0.000000e+00 : f32
      %573 = vector.broadcast %cst_177 : f32 to vector<8x128xf32>
      %574 = arith.maximumf %572, %573 : vector<8x128xf32>
      %cst_178 = arith.constant 0.000000e+00 : f32
      %575 = vector.broadcast %cst_178 : f32 to vector<8x128xf32>
      %576 = arith.subf %575, %574 : vector<8x128xf32>
      %577 = arith.addf %576, %533 : vector<8x128xf32>
      %578 = arith.subf %501, %549 : vector<8x128xf32>
      %cst_179 = arith.constant 0.000000e+00 : f32
      %579 = vector.broadcast %cst_179 : f32 to vector<8x128xf32>
      %580 = arith.maximumf %578, %579 : vector<8x128xf32>
      %cst_180 = arith.constant 0.000000e+00 : f32
      %581 = vector.broadcast %cst_180 : f32 to vector<8x128xf32>
      %582 = arith.subf %581, %580 : vector<8x128xf32>
      %583 = arith.addf %582, %565 : vector<8x128xf32>
      %584 = arith.subf %583, %549 : vector<8x128xf32>
      %cst_181 = arith.constant 0.000000e+00 : f32
      %585 = vector.broadcast %cst_181 : f32 to vector<8x128xf32>
      %586 = arith.maximumf %584, %585 : vector<8x128xf32>
      %cst_182 = arith.constant 0.000000e+00 : f32
      %587 = vector.broadcast %cst_182 : f32 to vector<8x128xf32>
      %588 = arith.subf %587, %586 : vector<8x128xf32>
      %589 = arith.addf %588, %565 : vector<8x128xf32>
      %c0_183 = arith.constant 0 : index
      %590 = arith.index_cast %c4_i32 : i32 to index
      %c0_184 = arith.constant 0 : index
      %c0_185 = arith.constant 0 : index
      %591 = vector.load %arg5[%c0_183, %590, %c0_184, %c0_185] : memref<2x8x8x128xf32, #tpu.memory_space<vmem>>, vector<1x1x8x128xf32>
      %592 = vector.shape_cast %591 : vector<1x1x8x128xf32> to vector<8x128xf32>
      %593 = vector.shape_cast %577 : vector<8x128xf32> to vector<1x1x8x128xf32>
      tpu.vector_store %arg5[%c0_183, %590, %c0_184, %c0_185], %593 {strides = array<i32>} : memref<2x8x8x128xf32, #tpu.memory_space<vmem>>, vector<1x1x8x128xf32>,
      %c1_186 = arith.constant 1 : index
      %594 = arith.index_cast %c4_i32 : i32 to index
      %c0_187 = arith.constant 0 : index
      %c0_188 = arith.constant 0 : index
      %595 = vector.load %arg5[%c1_186, %594, %c0_187, %c0_188] : memref<2x8x8x128xf32, #tpu.memory_space<vmem>>, vector<1x1x8x128xf32>
      %596 = vector.shape_cast %595 : vector<1x1x8x128xf32> to vector<8x128xf32>
      %597 = vector.shape_cast %589 : vector<8x128xf32> to vector<1x1x8x128xf32>
      tpu.vector_store %arg5[%c1_186, %594, %c0_187, %c0_188], %597 {strides = array<i32>} : memref<2x8x8x128xf32, #tpu.memory_space<vmem>>, vector<1x1x8x128xf32>,
      %c0_189 = arith.constant 0 : index
      %598 = arith.index_cast %c4_i32 : i32 to index
      %c0_190 = arith.constant 0 : index
      %c0_191 = arith.constant 0 : index
      %599 = vector.load %arg4[%c0_189, %598, %c0_190, %c0_191] : memref<2x8x8x128xf32, #tpu.memory_space<vmem>>, vector<1x1x8x128xf32>
      %600 = vector.shape_cast %599 : vector<1x1x8x128xf32> to vector<8x128xf32>
      %c1_192 = arith.constant 1 : index
      %601 = arith.index_cast %c4_i32 : i32 to index
      %c0_193 = arith.constant 0 : index
      %c0_194 = arith.constant 0 : index
      %602 = vector.load %arg4[%c1_192, %601, %c0_193, %c0_194] : memref<2x8x8x128xf32, #tpu.memory_space<vmem>>, vector<1x1x8x128xf32>
      %603 = vector.shape_cast %602 : vector<1x1x8x128xf32> to vector<8x128xf32>
      %c5_i32 = arith.constant 5 : i32
      %604 = arith.mulf %577, %600 : vector<8x128xf32>
      %605 = arith.mulf %589, %603 : vector<8x128xf32>
      %606 = vector.broadcast %cst_3 : f32 to vector<8x128xf32>
      %607 = arith.addf %606, %604 : vector<8x128xf32>
      %608 = arith.addf %607, %605 : vector<8x128xf32>
      %609 = tpu.reciprocal %608 {approx = true} : vector<8x128xf32> -> vector<8x128xf32>
      %610 = arith.mulf %608, %609 : vector<8x128xf32>
      %611 = vector.broadcast %cst_4 : f32 to vector<8x128xf32>
      %612 = arith.subf %611, %610 : vector<8x128xf32>
      %613 = arith.mulf %609, %612 : vector<8x128xf32>
      %614 = arith.addf %577, %604 : vector<8x128xf32>
      %615 = arith.mulf %614, %613 : vector<8x128xf32>
      %616 = arith.addf %589, %605 : vector<8x128xf32>
      %617 = arith.mulf %616, %613 : vector<8x128xf32>
      %618 = vector.broadcast %2 : f32 to vector<8x128xf32>
      %619 = arith.subf %617, %618 : vector<8x128xf32>
      %620 = vector.broadcast %1 : f32 to vector<8x128xf32>
      %621 = arith.mulf %619, %620 : vector<8x128xf32>
      %cst_195 = arith.constant 0.000000e+00 : f32
      %622 = vector.broadcast %cst_195 : f32 to vector<8x128xf32>
      %623 = arith.maximumf %621, %622 : vector<8x128xf32>
      %cst_196 = arith.constant 0.000000e+00 : f32
      %624 = vector.broadcast %cst_196 : f32 to vector<8x128xf32>
      %625 = arith.subf %624, %623 : vector<8x128xf32>
      %626 = vector.broadcast %3 : f32 to vector<8x128xf32>
      %627 = arith.addf %625, %626 : vector<8x128xf32>
      %cst_197 = arith.constant 0.000000e+00 : f32
      %628 = vector.broadcast %cst_197 : f32 to vector<8x128xf32>
      %629 = arith.maximumf %627, %628 : vector<8x128xf32>
      %cst_198 = arith.constant 0.000000e+00 : f32
      %630 = vector.broadcast %cst_198 : f32 to vector<8x128xf32>
      %631 = arith.subf %630, %629 : vector<8x128xf32>
      %632 = vector.broadcast %4 : f32 to vector<8x128xf32>
      %633 = arith.addf %631, %632 : vector<8x128xf32>
      %634 = vector.broadcast %5 : f32 to vector<8x128xf32>
      %635 = arith.subf %617, %634 : vector<8x128xf32>
      %636 = vector.broadcast %1 : f32 to vector<8x128xf32>
      %637 = arith.mulf %635, %636 : vector<8x128xf32>
      %cst_199 = arith.constant 0.000000e+00 : f32
      %638 = vector.broadcast %cst_199 : f32 to vector<8x128xf32>
      %639 = arith.maximumf %637, %638 : vector<8x128xf32>
      %cst_200 = arith.constant 0.000000e+00 : f32
      %640 = vector.broadcast %cst_200 : f32 to vector<8x128xf32>
      %641 = arith.subf %640, %639 : vector<8x128xf32>
      %642 = vector.broadcast %6 : f32 to vector<8x128xf32>
      %643 = arith.addf %641, %642 : vector<8x128xf32>
      %cst_201 = arith.constant 0.000000e+00 : f32
      %644 = vector.broadcast %cst_201 : f32 to vector<8x128xf32>
      %645 = arith.maximumf %643, %644 : vector<8x128xf32>
      %cst_202 = arith.constant 0.000000e+00 : f32
      %646 = vector.broadcast %cst_202 : f32 to vector<8x128xf32>
      %647 = arith.subf %646, %645 : vector<8x128xf32>
      %648 = vector.broadcast %7 : f32 to vector<8x128xf32>
      %649 = arith.addf %647, %648 : vector<8x128xf32>
      %650 = vector.broadcast %8 : f32 to vector<8x128xf32>
      %651 = arith.subf %615, %650 : vector<8x128xf32>
      %652 = vector.broadcast %0 : f32 to vector<8x128xf32>
      %653 = arith.mulf %651, %652 : vector<8x128xf32>
      %cst_203 = arith.constant 0.000000e+00 : f32
      %654 = vector.broadcast %cst_203 : f32 to vector<8x128xf32>
      %655 = arith.maximumf %653, %654 : vector<8x128xf32>
      %cst_204 = arith.constant 0.000000e+00 : f32
      %656 = vector.broadcast %cst_204 : f32 to vector<8x128xf32>
      %657 = arith.subf %656, %655 : vector<8x128xf32>
      %658 = vector.broadcast %9 : f32 to vector<8x128xf32>
      %659 = arith.addf %657, %658 : vector<8x128xf32>
      %cst_205 = arith.constant 0.000000e+00 : f32
      %660 = vector.broadcast %cst_205 : f32 to vector<8x128xf32>
      %661 = arith.maximumf %659, %660 : vector<8x128xf32>
      %cst_206 = arith.constant 0.000000e+00 : f32
      %662 = vector.broadcast %cst_206 : f32 to vector<8x128xf32>
      %663 = arith.subf %662, %661 : vector<8x128xf32>
      %664 = vector.broadcast %10 : f32 to vector<8x128xf32>
      %665 = arith.addf %663, %664 : vector<8x128xf32>
      %666 = vector.broadcast %11 : f32 to vector<8x128xf32>
      %667 = arith.subf %615, %666 : vector<8x128xf32>
      %668 = vector.broadcast %0 : f32 to vector<8x128xf32>
      %669 = arith.mulf %667, %668 : vector<8x128xf32>
      %cst_207 = arith.constant 0.000000e+00 : f32
      %670 = vector.broadcast %cst_207 : f32 to vector<8x128xf32>
      %671 = arith.maximumf %669, %670 : vector<8x128xf32>
      %cst_208 = arith.constant 0.000000e+00 : f32
      %672 = vector.broadcast %cst_208 : f32 to vector<8x128xf32>
      %673 = arith.subf %672, %671 : vector<8x128xf32>
      %674 = vector.broadcast %12 : f32 to vector<8x128xf32>
      %675 = arith.addf %673, %674 : vector<8x128xf32>
      %cst_209 = arith.constant 0.000000e+00 : f32
      %676 = vector.broadcast %cst_209 : f32 to vector<8x128xf32>
      %677 = arith.maximumf %675, %676 : vector<8x128xf32>
      %cst_210 = arith.constant 0.000000e+00 : f32
      %678 = vector.broadcast %cst_210 : f32 to vector<8x128xf32>
      %679 = arith.subf %678, %677 : vector<8x128xf32>
      %680 = vector.broadcast %13 : f32 to vector<8x128xf32>
      %681 = arith.addf %679, %680 : vector<8x128xf32>
      %682 = arith.subf %615, %633 : vector<8x128xf32>
      %cst_211 = arith.constant 0.000000e+00 : f32
      %683 = vector.broadcast %cst_211 : f32 to vector<8x128xf32>
      %684 = arith.maximumf %682, %683 : vector<8x128xf32>
      %cst_212 = arith.constant 0.000000e+00 : f32
      %685 = vector.broadcast %cst_212 : f32 to vector<8x128xf32>
      %686 = arith.subf %685, %684 : vector<8x128xf32>
      %687 = arith.addf %686, %649 : vector<8x128xf32>
      %688 = arith.subf %687, %633 : vector<8x128xf32>
      %cst_213 = arith.constant 0.000000e+00 : f32
      %689 = vector.broadcast %cst_213 : f32 to vector<8x128xf32>
      %690 = arith.maximumf %688, %689 : vector<8x128xf32>
      %cst_214 = arith.constant 0.000000e+00 : f32
      %691 = vector.broadcast %cst_214 : f32 to vector<8x128xf32>
      %692 = arith.subf %691, %690 : vector<8x128xf32>
      %693 = arith.addf %692, %649 : vector<8x128xf32>
      %694 = arith.subf %617, %665 : vector<8x128xf32>
      %cst_215 = arith.constant 0.000000e+00 : f32
      %695 = vector.broadcast %cst_215 : f32 to vector<8x128xf32>
      %696 = arith.maximumf %694, %695 : vector<8x128xf32>
      %cst_216 = arith.constant 0.000000e+00 : f32
      %697 = vector.broadcast %cst_216 : f32 to vector<8x128xf32>
      %698 = arith.subf %697, %696 : vector<8x128xf32>
      %699 = arith.addf %698, %681 : vector<8x128xf32>
      %700 = arith.subf %699, %665 : vector<8x128xf32>
      %cst_217 = arith.constant 0.000000e+00 : f32
      %701 = vector.broadcast %cst_217 : f32 to vector<8x128xf32>
      %702 = arith.maximumf %700, %701 : vector<8x128xf32>
      %cst_218 = arith.constant 0.000000e+00 : f32
      %703 = vector.broadcast %cst_218 : f32 to vector<8x128xf32>
      %704 = arith.subf %703, %702 : vector<8x128xf32>
      %705 = arith.addf %704, %681 : vector<8x128xf32>
      %c0_219 = arith.constant 0 : index
      %706 = arith.index_cast %c5_i32 : i32 to index
      %c0_220 = arith.constant 0 : index
      %c0_221 = arith.constant 0 : index
      %707 = vector.load %arg5[%c0_219, %706, %c0_220, %c0_221] : memref<2x8x8x128xf32, #tpu.memory_space<vmem>>, vector<1x1x8x128xf32>
      %708 = vector.shape_cast %707 : vector<1x1x8x128xf32> to vector<8x128xf32>
      %709 = vector.shape_cast %693 : vector<8x128xf32> to vector<1x1x8x128xf32>
      tpu.vector_store %arg5[%c0_219, %706, %c0_220, %c0_221], %709 {strides = array<i32>} : memref<2x8x8x128xf32, #tpu.memory_space<vmem>>, vector<1x1x8x128xf32>,
      %c1_222 = arith.constant 1 : index
      %710 = arith.index_cast %c5_i32 : i32 to index
      %c0_223 = arith.constant 0 : index
      %c0_224 = arith.constant 0 : index
      %711 = vector.load %arg5[%c1_222, %710, %c0_223, %c0_224] : memref<2x8x8x128xf32, #tpu.memory_space<vmem>>, vector<1x1x8x128xf32>
      %712 = vector.shape_cast %711 : vector<1x1x8x128xf32> to vector<8x128xf32>
      %713 = vector.shape_cast %705 : vector<8x128xf32> to vector<1x1x8x128xf32>
      tpu.vector_store %arg5[%c1_222, %710, %c0_223, %c0_224], %713 {strides = array<i32>} : memref<2x8x8x128xf32, #tpu.memory_space<vmem>>, vector<1x1x8x128xf32>,
      %c0_225 = arith.constant 0 : index
      %714 = arith.index_cast %c5_i32 : i32 to index
      %c0_226 = arith.constant 0 : index
      %c0_227 = arith.constant 0 : index
      %715 = vector.load %arg4[%c0_225, %714, %c0_226, %c0_227] : memref<2x8x8x128xf32, #tpu.memory_space<vmem>>, vector<1x1x8x128xf32>
      %716 = vector.shape_cast %715 : vector<1x1x8x128xf32> to vector<8x128xf32>
      %c1_228 = arith.constant 1 : index
      %717 = arith.index_cast %c5_i32 : i32 to index
      %c0_229 = arith.constant 0 : index
      %c0_230 = arith.constant 0 : index
      %718 = vector.load %arg4[%c1_228, %717, %c0_229, %c0_230] : memref<2x8x8x128xf32, #tpu.memory_space<vmem>>, vector<1x1x8x128xf32>
      %719 = vector.shape_cast %718 : vector<1x1x8x128xf32> to vector<8x128xf32>
      %c6_i32 = arith.constant 6 : i32
      %720 = arith.mulf %693, %716 : vector<8x128xf32>
      %721 = arith.mulf %705, %719 : vector<8x128xf32>
      %722 = vector.broadcast %cst_3 : f32 to vector<8x128xf32>
      %723 = arith.addf %722, %720 : vector<8x128xf32>
      %724 = arith.addf %723, %721 : vector<8x128xf32>
      %725 = tpu.reciprocal %724 {approx = true} : vector<8x128xf32> -> vector<8x128xf32>
      %726 = arith.mulf %724, %725 : vector<8x128xf32>
      %727 = vector.broadcast %cst_4 : f32 to vector<8x128xf32>
      %728 = arith.subf %727, %726 : vector<8x128xf32>
      %729 = arith.mulf %725, %728 : vector<8x128xf32>
      %730 = arith.addf %693, %720 : vector<8x128xf32>
      %731 = arith.mulf %730, %729 : vector<8x128xf32>
      %732 = arith.addf %705, %721 : vector<8x128xf32>
      %733 = arith.mulf %732, %729 : vector<8x128xf32>
      %734 = vector.broadcast %2 : f32 to vector<8x128xf32>
      %735 = arith.subf %733, %734 : vector<8x128xf32>
      %736 = vector.broadcast %1 : f32 to vector<8x128xf32>
      %737 = arith.mulf %735, %736 : vector<8x128xf32>
      %cst_231 = arith.constant 0.000000e+00 : f32
      %738 = vector.broadcast %cst_231 : f32 to vector<8x128xf32>
      %739 = arith.maximumf %737, %738 : vector<8x128xf32>
      %cst_232 = arith.constant 0.000000e+00 : f32
      %740 = vector.broadcast %cst_232 : f32 to vector<8x128xf32>
      %741 = arith.subf %740, %739 : vector<8x128xf32>
      %742 = vector.broadcast %3 : f32 to vector<8x128xf32>
      %743 = arith.addf %741, %742 : vector<8x128xf32>
      %cst_233 = arith.constant 0.000000e+00 : f32
      %744 = vector.broadcast %cst_233 : f32 to vector<8x128xf32>
      %745 = arith.maximumf %743, %744 : vector<8x128xf32>
      %cst_234 = arith.constant 0.000000e+00 : f32
      %746 = vector.broadcast %cst_234 : f32 to vector<8x128xf32>
      %747 = arith.subf %746, %745 : vector<8x128xf32>
      %748 = vector.broadcast %4 : f32 to vector<8x128xf32>
      %749 = arith.addf %747, %748 : vector<8x128xf32>
      %750 = vector.broadcast %5 : f32 to vector<8x128xf32>
      %751 = arith.subf %733, %750 : vector<8x128xf32>
      %752 = vector.broadcast %1 : f32 to vector<8x128xf32>
      %753 = arith.mulf %751, %752 : vector<8x128xf32>
      %cst_235 = arith.constant 0.000000e+00 : f32
      %754 = vector.broadcast %cst_235 : f32 to vector<8x128xf32>
      %755 = arith.maximumf %753, %754 : vector<8x128xf32>
      %cst_236 = arith.constant 0.000000e+00 : f32
      %756 = vector.broadcast %cst_236 : f32 to vector<8x128xf32>
      %757 = arith.subf %756, %755 : vector<8x128xf32>
      %758 = vector.broadcast %6 : f32 to vector<8x128xf32>
      %759 = arith.addf %757, %758 : vector<8x128xf32>
      %cst_237 = arith.constant 0.000000e+00 : f32
      %760 = vector.broadcast %cst_237 : f32 to vector<8x128xf32>
      %761 = arith.maximumf %759, %760 : vector<8x128xf32>
      %cst_238 = arith.constant 0.000000e+00 : f32
      %762 = vector.broadcast %cst_238 : f32 to vector<8x128xf32>
      %763 = arith.subf %762, %761 : vector<8x128xf32>
      %764 = vector.broadcast %7 : f32 to vector<8x128xf32>
      %765 = arith.addf %763, %764 : vector<8x128xf32>
      %766 = vector.broadcast %8 : f32 to vector<8x128xf32>
      %767 = arith.subf %731, %766 : vector<8x128xf32>
      %768 = vector.broadcast %0 : f32 to vector<8x128xf32>
      %769 = arith.mulf %767, %768 : vector<8x128xf32>
      %cst_239 = arith.constant 0.000000e+00 : f32
      %770 = vector.broadcast %cst_239 : f32 to vector<8x128xf32>
      %771 = arith.maximumf %769, %770 : vector<8x128xf32>
      %cst_240 = arith.constant 0.000000e+00 : f32
      %772 = vector.broadcast %cst_240 : f32 to vector<8x128xf32>
      %773 = arith.subf %772, %771 : vector<8x128xf32>
      %774 = vector.broadcast %9 : f32 to vector<8x128xf32>
      %775 = arith.addf %773, %774 : vector<8x128xf32>
      %cst_241 = arith.constant 0.000000e+00 : f32
      %776 = vector.broadcast %cst_241 : f32 to vector<8x128xf32>
      %777 = arith.maximumf %775, %776 : vector<8x128xf32>
      %cst_242 = arith.constant 0.000000e+00 : f32
      %778 = vector.broadcast %cst_242 : f32 to vector<8x128xf32>
      %779 = arith.subf %778, %777 : vector<8x128xf32>
      %780 = vector.broadcast %10 : f32 to vector<8x128xf32>
      %781 = arith.addf %779, %780 : vector<8x128xf32>
      %782 = vector.broadcast %11 : f32 to vector<8x128xf32>
      %783 = arith.subf %731, %782 : vector<8x128xf32>
      %784 = vector.broadcast %0 : f32 to vector<8x128xf32>
      %785 = arith.mulf %783, %784 : vector<8x128xf32>
      %cst_243 = arith.constant 0.000000e+00 : f32
      %786 = vector.broadcast %cst_243 : f32 to vector<8x128xf32>
      %787 = arith.maximumf %785, %786 : vector<8x128xf32>
      %cst_244 = arith.constant 0.000000e+00 : f32
      %788 = vector.broadcast %cst_244 : f32 to vector<8x128xf32>
      %789 = arith.subf %788, %787 : vector<8x128xf32>
      %790 = vector.broadcast %12 : f32 to vector<8x128xf32>
      %791 = arith.addf %789, %790 : vector<8x128xf32>
      %cst_245 = arith.constant 0.000000e+00 : f32
      %792 = vector.broadcast %cst_245 : f32 to vector<8x128xf32>
      %793 = arith.maximumf %791, %792 : vector<8x128xf32>
      %cst_246 = arith.constant 0.000000e+00 : f32
      %794 = vector.broadcast %cst_246 : f32 to vector<8x128xf32>
      %795 = arith.subf %794, %793 : vector<8x128xf32>
      %796 = vector.broadcast %13 : f32 to vector<8x128xf32>
      %797 = arith.addf %795, %796 : vector<8x128xf32>
      %798 = arith.subf %731, %749 : vector<8x128xf32>
      %cst_247 = arith.constant 0.000000e+00 : f32
      %799 = vector.broadcast %cst_247 : f32 to vector<8x128xf32>
      %800 = arith.maximumf %798, %799 : vector<8x128xf32>
      %cst_248 = arith.constant 0.000000e+00 : f32
      %801 = vector.broadcast %cst_248 : f32 to vector<8x128xf32>
      %802 = arith.subf %801, %800 : vector<8x128xf32>
      %803 = arith.addf %802, %765 : vector<8x128xf32>
      %804 = arith.subf %803, %749 : vector<8x128xf32>
      %cst_249 = arith.constant 0.000000e+00 : f32
      %805 = vector.broadcast %cst_249 : f32 to vector<8x128xf32>
      %806 = arith.maximumf %804, %805 : vector<8x128xf32>
      %cst_250 = arith.constant 0.000000e+00 : f32
      %807 = vector.broadcast %cst_250 : f32 to vector<8x128xf32>
      %808 = arith.subf %807, %806 : vector<8x128xf32>
      %809 = arith.addf %808, %765 : vector<8x128xf32>
      %810 = arith.subf %733, %781 : vector<8x128xf32>
      %cst_251 = arith.constant 0.000000e+00 : f32
      %811 = vector.broadcast %cst_251 : f32 to vector<8x128xf32>
      %812 = arith.maximumf %810, %811 : vector<8x128xf32>
      %cst_252 = arith.constant 0.000000e+00 : f32
      %813 = vector.broadcast %cst_252 : f32 to vector<8x128xf32>
      %814 = arith.subf %813, %812 : vector<8x128xf32>
      %815 = arith.addf %814, %797 : vector<8x128xf32>
      %816 = arith.subf %815, %781 : vector<8x128xf32>
      %cst_253 = arith.constant 0.000000e+00 : f32
      %817 = vector.broadcast %cst_253 : f32 to vector<8x128xf32>
      %818 = arith.maximumf %816, %817 : vector<8x128xf32>
      %cst_254 = arith.constant 0.000000e+00 : f32
      %819 = vector.broadcast %cst_254 : f32 to vector<8x128xf32>
      %820 = arith.subf %819, %818 : vector<8x128xf32>
      %821 = arith.addf %820, %797 : vector<8x128xf32>
      %c0_255 = arith.constant 0 : index
      %822 = arith.index_cast %c6_i32 : i32 to index
      %c0_256 = arith.constant 0 : index
      %c0_257 = arith.constant 0 : index
      %823 = vector.load %arg5[%c0_255, %822, %c0_256, %c0_257] : memref<2x8x8x128xf32, #tpu.memory_space<vmem>>, vector<1x1x8x128xf32>
      %824 = vector.shape_cast %823 : vector<1x1x8x128xf32> to vector<8x128xf32>
      %825 = vector.shape_cast %809 : vector<8x128xf32> to vector<1x1x8x128xf32>
      tpu.vector_store %arg5[%c0_255, %822, %c0_256, %c0_257], %825 {strides = array<i32>} : memref<2x8x8x128xf32, #tpu.memory_space<vmem>>, vector<1x1x8x128xf32>,
      %c1_258 = arith.constant 1 : index
      %826 = arith.index_cast %c6_i32 : i32 to index
      %c0_259 = arith.constant 0 : index
      %c0_260 = arith.constant 0 : index
      %827 = vector.load %arg5[%c1_258, %826, %c0_259, %c0_260] : memref<2x8x8x128xf32, #tpu.memory_space<vmem>>, vector<1x1x8x128xf32>
      %828 = vector.shape_cast %827 : vector<1x1x8x128xf32> to vector<8x128xf32>
      %829 = vector.shape_cast %821 : vector<8x128xf32> to vector<1x1x8x128xf32>
      tpu.vector_store %arg5[%c1_258, %826, %c0_259, %c0_260], %829 {strides = array<i32>} : memref<2x8x8x128xf32, #tpu.memory_space<vmem>>, vector<1x1x8x128xf32>,
      %c0_261 = arith.constant 0 : index
      %830 = arith.index_cast %c6_i32 : i32 to index
      %c0_262 = arith.constant 0 : index
      %c0_263 = arith.constant 0 : index
      %831 = vector.load %arg4[%c0_261, %830, %c0_262, %c0_263] : memref<2x8x8x128xf32, #tpu.memory_space<vmem>>, vector<1x1x8x128xf32>
      %832 = vector.shape_cast %831 : vector<1x1x8x128xf32> to vector<8x128xf32>
      %c1_264 = arith.constant 1 : index
      %833 = arith.index_cast %c6_i32 : i32 to index
      %c0_265 = arith.constant 0 : index
      %c0_266 = arith.constant 0 : index
      %834 = vector.load %arg4[%c1_264, %833, %c0_265, %c0_266] : memref<2x8x8x128xf32, #tpu.memory_space<vmem>>, vector<1x1x8x128xf32>
      %835 = vector.shape_cast %834 : vector<1x1x8x128xf32> to vector<8x128xf32>
      %c7_i32 = arith.constant 7 : i32
      %836 = arith.mulf %809, %832 : vector<8x128xf32>
      %837 = arith.mulf %821, %835 : vector<8x128xf32>
      %838 = vector.broadcast %cst_3 : f32 to vector<8x128xf32>
      %839 = arith.addf %838, %836 : vector<8x128xf32>
      %840 = arith.addf %839, %837 : vector<8x128xf32>
      %841 = tpu.reciprocal %840 {approx = true} : vector<8x128xf32> -> vector<8x128xf32>
      %842 = arith.mulf %840, %841 : vector<8x128xf32>
      %843 = vector.broadcast %cst_4 : f32 to vector<8x128xf32>
      %844 = arith.subf %843, %842 : vector<8x128xf32>
      %845 = arith.mulf %841, %844 : vector<8x128xf32>
      %846 = arith.addf %809, %836 : vector<8x128xf32>
      %847 = arith.mulf %846, %845 : vector<8x128xf32>
      %848 = arith.addf %821, %837 : vector<8x128xf32>
      %849 = arith.mulf %848, %845 : vector<8x128xf32>
      %850 = vector.broadcast %2 : f32 to vector<8x128xf32>
      %851 = arith.subf %849, %850 : vector<8x128xf32>
      %852 = vector.broadcast %1 : f32 to vector<8x128xf32>
      %853 = arith.mulf %851, %852 : vector<8x128xf32>
      %cst_267 = arith.constant 0.000000e+00 : f32
      %854 = vector.broadcast %cst_267 : f32 to vector<8x128xf32>
      %855 = arith.maximumf %853, %854 : vector<8x128xf32>
      %cst_268 = arith.constant 0.000000e+00 : f32
      %856 = vector.broadcast %cst_268 : f32 to vector<8x128xf32>
      %857 = arith.subf %856, %855 : vector<8x128xf32>
      %858 = vector.broadcast %3 : f32 to vector<8x128xf32>
      %859 = arith.addf %857, %858 : vector<8x128xf32>
      %cst_269 = arith.constant 0.000000e+00 : f32
      %860 = vector.broadcast %cst_269 : f32 to vector<8x128xf32>
      %861 = arith.maximumf %859, %860 : vector<8x128xf32>
      %cst_270 = arith.constant 0.000000e+00 : f32
      %862 = vector.broadcast %cst_270 : f32 to vector<8x128xf32>
      %863 = arith.subf %862, %861 : vector<8x128xf32>
      %864 = vector.broadcast %4 : f32 to vector<8x128xf32>
      %865 = arith.addf %863, %864 : vector<8x128xf32>
      %866 = vector.broadcast %5 : f32 to vector<8x128xf32>
      %867 = arith.subf %849, %866 : vector<8x128xf32>
      %868 = vector.broadcast %1 : f32 to vector<8x128xf32>
      %869 = arith.mulf %867, %868 : vector<8x128xf32>
      %cst_271 = arith.constant 0.000000e+00 : f32
      %870 = vector.broadcast %cst_271 : f32 to vector<8x128xf32>
      %871 = arith.maximumf %869, %870 : vector<8x128xf32>
      %cst_272 = arith.constant 0.000000e+00 : f32
      %872 = vector.broadcast %cst_272 : f32 to vector<8x128xf32>
      %873 = arith.subf %872, %871 : vector<8x128xf32>
      %874 = vector.broadcast %6 : f32 to vector<8x128xf32>
      %875 = arith.addf %873, %874 : vector<8x128xf32>
      %cst_273 = arith.constant 0.000000e+00 : f32
      %876 = vector.broadcast %cst_273 : f32 to vector<8x128xf32>
      %877 = arith.maximumf %875, %876 : vector<8x128xf32>
      %cst_274 = arith.constant 0.000000e+00 : f32
      %878 = vector.broadcast %cst_274 : f32 to vector<8x128xf32>
      %879 = arith.subf %878, %877 : vector<8x128xf32>
      %880 = vector.broadcast %7 : f32 to vector<8x128xf32>
      %881 = arith.addf %879, %880 : vector<8x128xf32>
      %882 = vector.broadcast %8 : f32 to vector<8x128xf32>
      %883 = arith.subf %847, %882 : vector<8x128xf32>
      %884 = vector.broadcast %0 : f32 to vector<8x128xf32>
      %885 = arith.mulf %883, %884 : vector<8x128xf32>
      %cst_275 = arith.constant 0.000000e+00 : f32
      %886 = vector.broadcast %cst_275 : f32 to vector<8x128xf32>
      %887 = arith.maximumf %885, %886 : vector<8x128xf32>
      %cst_276 = arith.constant 0.000000e+00 : f32
      %888 = vector.broadcast %cst_276 : f32 to vector<8x128xf32>
      %889 = arith.subf %888, %887 : vector<8x128xf32>
      %890 = vector.broadcast %9 : f32 to vector<8x128xf32>
      %891 = arith.addf %889, %890 : vector<8x128xf32>
      %cst_277 = arith.constant 0.000000e+00 : f32
      %892 = vector.broadcast %cst_277 : f32 to vector<8x128xf32>
      %893 = arith.maximumf %891, %892 : vector<8x128xf32>
      %cst_278 = arith.constant 0.000000e+00 : f32
      %894 = vector.broadcast %cst_278 : f32 to vector<8x128xf32>
      %895 = arith.subf %894, %893 : vector<8x128xf32>
      %896 = vector.broadcast %10 : f32 to vector<8x128xf32>
      %897 = arith.addf %895, %896 : vector<8x128xf32>
      %898 = vector.broadcast %11 : f32 to vector<8x128xf32>
      %899 = arith.subf %847, %898 : vector<8x128xf32>
      %900 = vector.broadcast %0 : f32 to vector<8x128xf32>
      %901 = arith.mulf %899, %900 : vector<8x128xf32>
      %cst_279 = arith.constant 0.000000e+00 : f32
      %902 = vector.broadcast %cst_279 : f32 to vector<8x128xf32>
      %903 = arith.maximumf %901, %902 : vector<8x128xf32>
      %cst_280 = arith.constant 0.000000e+00 : f32
      %904 = vector.broadcast %cst_280 : f32 to vector<8x128xf32>
      %905 = arith.subf %904, %903 : vector<8x128xf32>
      %906 = vector.broadcast %12 : f32 to vector<8x128xf32>
      %907 = arith.addf %905, %906 : vector<8x128xf32>
      %cst_281 = arith.constant 0.000000e+00 : f32
      %908 = vector.broadcast %cst_281 : f32 to vector<8x128xf32>
      %909 = arith.maximumf %907, %908 : vector<8x128xf32>
      %cst_282 = arith.constant 0.000000e+00 : f32
      %910 = vector.broadcast %cst_282 : f32 to vector<8x128xf32>
      %911 = arith.subf %910, %909 : vector<8x128xf32>
      %912 = vector.broadcast %13 : f32 to vector<8x128xf32>
      %913 = arith.addf %911, %912 : vector<8x128xf32>
      %914 = arith.subf %847, %865 : vector<8x128xf32>
      %cst_283 = arith.constant 0.000000e+00 : f32
      %915 = vector.broadcast %cst_283 : f32 to vector<8x128xf32>
      %916 = arith.maximumf %914, %915 : vector<8x128xf32>
      %cst_284 = arith.constant 0.000000e+00 : f32
      %917 = vector.broadcast %cst_284 : f32 to vector<8x128xf32>
      %918 = arith.subf %917, %916 : vector<8x128xf32>
      %919 = arith.addf %918, %881 : vector<8x128xf32>
      %920 = arith.subf %919, %865 : vector<8x128xf32>
      %cst_285 = arith.constant 0.000000e+00 : f32
      %921 = vector.broadcast %cst_285 : f32 to vector<8x128xf32>
      %922 = arith.maximumf %920, %921 : vector<8x128xf32>
      %cst_286 = arith.constant 0.000000e+00 : f32
      %923 = vector.broadcast %cst_286 : f32 to vector<8x128xf32>
      %924 = arith.subf %923, %922 : vector<8x128xf32>
      %925 = arith.addf %924, %881 : vector<8x128xf32>
      %926 = arith.subf %849, %897 : vector<8x128xf32>
      %cst_287 = arith.constant 0.000000e+00 : f32
      %927 = vector.broadcast %cst_287 : f32 to vector<8x128xf32>
      %928 = arith.maximumf %926, %927 : vector<8x128xf32>
      %cst_288 = arith.constant 0.000000e+00 : f32
      %929 = vector.broadcast %cst_288 : f32 to vector<8x128xf32>
      %930 = arith.subf %929, %928 : vector<8x128xf32>
      %931 = arith.addf %930, %913 : vector<8x128xf32>
      %932 = arith.subf %931, %897 : vector<8x128xf32>
      %cst_289 = arith.constant 0.000000e+00 : f32
      %933 = vector.broadcast %cst_289 : f32 to vector<8x128xf32>
      %934 = arith.maximumf %932, %933 : vector<8x128xf32>
      %cst_290 = arith.constant 0.000000e+00 : f32
      %935 = vector.broadcast %cst_290 : f32 to vector<8x128xf32>
      %936 = arith.subf %935, %934 : vector<8x128xf32>
      %937 = arith.addf %936, %913 : vector<8x128xf32>
      %c0_291 = arith.constant 0 : index
      %938 = arith.index_cast %c7_i32 : i32 to index
      %c0_292 = arith.constant 0 : index
      %c0_293 = arith.constant 0 : index
      %939 = vector.load %arg5[%c0_291, %938, %c0_292, %c0_293] : memref<2x8x8x128xf32, #tpu.memory_space<vmem>>, vector<1x1x8x128xf32>
      %940 = vector.shape_cast %939 : vector<1x1x8x128xf32> to vector<8x128xf32>
      %941 = vector.shape_cast %925 : vector<8x128xf32> to vector<1x1x8x128xf32>
      tpu.vector_store %arg5[%c0_291, %938, %c0_292, %c0_293], %941 {strides = array<i32>} : memref<2x8x8x128xf32, #tpu.memory_space<vmem>>, vector<1x1x8x128xf32>,
      %c1_294 = arith.constant 1 : index
      %942 = arith.index_cast %c7_i32 : i32 to index
      %c0_295 = arith.constant 0 : index
      %c0_296 = arith.constant 0 : index
      %943 = vector.load %arg5[%c1_294, %942, %c0_295, %c0_296] : memref<2x8x8x128xf32, #tpu.memory_space<vmem>>, vector<1x1x8x128xf32>
      %944 = vector.shape_cast %943 : vector<1x1x8x128xf32> to vector<8x128xf32>
      %945 = vector.shape_cast %937 : vector<8x128xf32> to vector<1x1x8x128xf32>
      tpu.vector_store %arg5[%c1_294, %942, %c0_295, %c0_296], %945 {strides = array<i32>} : memref<2x8x8x128xf32, #tpu.memory_space<vmem>>, vector<1x1x8x128xf32>,
      %c0_297 = arith.constant 0 : index
      %946 = arith.index_cast %c7_i32 : i32 to index
      %c0_298 = arith.constant 0 : index
      %c0_299 = arith.constant 0 : index
      %947 = vector.load %arg4[%c0_297, %946, %c0_298, %c0_299] : memref<2x8x8x128xf32, #tpu.memory_space<vmem>>, vector<1x1x8x128xf32>
      %948 = vector.shape_cast %947 : vector<1x1x8x128xf32> to vector<8x128xf32>
      %c1_300 = arith.constant 1 : index
      %949 = arith.index_cast %c7_i32 : i32 to index
      %c0_301 = arith.constant 0 : index
      %c0_302 = arith.constant 0 : index
      %950 = vector.load %arg4[%c1_300, %949, %c0_301, %c0_302] : memref<2x8x8x128xf32, #tpu.memory_space<vmem>>, vector<1x1x8x128xf32>
      %951 = vector.shape_cast %950 : vector<1x1x8x128xf32> to vector<8x128xf32>
      %c8_i32 = arith.constant 8 : i32
      %c0_303 = arith.constant 0 : index
      %c0_304 = arith.constant 0 : index
      %952 = vector.load %arg6[%c0_303, %c0_304] : memref<8x128xf32, #tpu.memory_space<vmem>>, vector<8x128xf32>
      tpu.vector_store %arg6[%c0_303, %c0_304], %925 {strides = array<i32>} : memref<8x128xf32, #tpu.memory_space<vmem>>, vector<8x128xf32>,
      %c0_305 = arith.constant 0 : index
      %c0_306 = arith.constant 0 : index
      %953 = vector.load %arg7[%c0_305, %c0_306] : memref<8x128xf32, #tpu.memory_space<vmem>>, vector<8x128xf32>
      tpu.vector_store %arg7[%c0_305, %c0_306], %937 {strides = array<i32>} : memref<8x128xf32, #tpu.memory_space<vmem>>, vector<8x128xf32>,
      %c0_307 = arith.constant 0 : index
      %c0_308 = arith.constant 0 : index
      %954 = vector.load %arg8[%c0_307, %c0_308] : memref<8x128xf32, #tpu.memory_space<vmem>>, vector<8x128xf32>
      tpu.vector_store %arg8[%c0_307, %c0_308], %948 {strides = array<i32>} : memref<8x128xf32, #tpu.memory_space<vmem>>, vector<8x128xf32>,
      %c0_309 = arith.constant 0 : index
      %c0_310 = arith.constant 0 : index
      %955 = vector.load %arg9[%c0_309, %c0_310] : memref<8x128xf32, #tpu.memory_space<vmem>>, vector<8x128xf32>
      tpu.vector_store %arg9[%c0_309, %c0_310], %951 {strides = array<i32>} : memref<8x128xf32, #tpu.memory_space<vmem>>, vector<8x128xf32>,
    } else {
    }
    return
  }
  func.func @transform_0(%arg0: i32, %arg1: i32, %arg2: memref<14xf32, #tpu.memory_space<smem>>) -> (i32, i32, i32) {
    %c0_i32 = arith.constant 0 : i32
    %c0_i32_0 = arith.constant 0 : i32
    %c0_i32_1 = arith.constant 0 : i32
    return %c0_i32, %arg0, %c0_i32_0 : i32, i32, i32
  }
  func.func @transform_1(%arg0: i32, %arg1: i32, %arg2: memref<14xf32, #tpu.memory_space<smem>>) -> (i32, i32, i32, i32) {
    %c0_i32 = arith.constant 0 : i32
    %c0_i32_0 = arith.constant 0 : i32
    %c0_i32_1 = arith.constant 0 : i32
    return %c0_i32, %arg1, %arg0, %c0_i32_0 : i32, i32, i32, i32
  }
  func.func @transform_2(%arg0: i32, %arg1: i32, %arg2: memref<14xf32, #tpu.memory_space<smem>>) -> (i32, i32, i32, i32) {
    %c0_i32 = arith.constant 0 : i32
    %c0_i32_0 = arith.constant 0 : i32
    %c0_i32_1 = arith.constant 0 : i32
    return %c0_i32, %arg1, %arg0, %c0_i32_0 : i32, i32, i32, i32
  }
}

</mosaic_0001>

<bundles_post_ra>
// kernel: tpu_custom_call.1
= control target key start
LH: loop header
LB: loop body
LE: loop exit
PB: predicated region body
PF: predicated region fallthrough
CT: control target
= control target key end

     0   :  { %s1287_s15 = smov [#allocation7]   ;;  %s1474_s0 = inlined_call_operand.hbm [shape: f32[14], index: 0, kind: input, shape index: {}]   ;;  %s1475_s1 = inlined_call_operand.hbm [shape: f32[2,8,128], index: 1, kind: input, shape index: {}]   ;;  %s1476_s2 = inlined_call_operand.hbm [shape: f32[2,8,8,128], index: 2, kind: input, shape index: {}]   ;;  %s1477_s3 = inlined_call_operand.hbm [shape: f32[2,8,8,128], index: 3, kind: output, shape index: {}]  }
   0x1   :  { %s9_s14 = sshll.u32 %s1474_s0, 4  ;;  %s10_s14 = int_to_ptr.hbm [resolvable:$true] %s9_s14 }
   0x2   :  { %12 = dma.hbm_to_smem %s10_s14, 16, %s1287_s15, [#allocation6] }
   0x3   :  { %1279 = dma.done.wait [#allocation6], 16 }
   0x4   :  { %1280 = vsyncadd [#allocation6], 4294967280 }
   0x5   :  { %15 = sfence }
   0x6   :  { %16 = vsyncpa [#allocation9], 0 }
   0x7   :  { %17 = vsyncpa [#allocation12], 0 }
   0x8   :  { %18 = vsyncpa [#allocation10], 0  ;;  %s23_s18 = sshll.u32 %s1475_s1, 4  ;;  %s1288_s19 = smov [#allocation8]   ;;  %s24_s18 = int_to_ptr.hbm [resolvable:$true] %s23_s18 }
   0x9   :  { %s25_s20 = sshll.u32 %s1288_s19, 4  ;;  %s36_s0 = sshll.u32 %s1476_s2, 4  ;;  %s26_s20 = int_to_ptr.vmem [resolvable:$true] %s25_s20  ;;  %s37_s0 = int_to_ptr.hbm [resolvable:$true] %s36_s0 }
   0xa   :  { %s1289_s23 = smov 128   ;;  %s1290_s24 = smov 8  }
   0xb   :  { %31 = dma.hbm_to_vmem [thread:$0]  %s24_s18, 256, %s26_s20, [#allocation9], %s1289_s23, %s1289_s23, %s1290_s24  }
   0xc   :  { %s1291_s25 = smov [#allocation11]  }
   0xd   :  { %s38_s26 = sshll.u32 %s1291_s25, 4  ;;  %s39_s26 = int_to_ptr.vmem [resolvable:$true] %s38_s26 }
   0xe   :  { %44 = dma.hbm_to_vmem [thread:$0]  %s37_s0, 2048, %s39_s26, [#allocation12], %s1289_s23, %s1289_s23, %s1290_s24  }
   0xf   :  { %1281 = dma.done.wait [#allocation9], 256  }
  0x10   :  { %1282 = vsyncadd [#allocation9], 4294967040 }
  0x11   :  { %1283 = dma.done.wait [#allocation12], 2048  }
  0x12   :  { %1284 = vsyncadd [#allocation12], 4294965248  ;;  %v71_v0 = vld [vmem:[#allocation8] sm:$0xff]  ;;  %v77_v1 = vld [vmem:[#allocation11] sm:$0xff]  ;;  %s1163_s1 = sld [smem:[#allocation7 + $0x2]]  ;;  %s1292_s12 = smov [#allocation13]  }
  0x13   :  { %v73_v2 = vld [vmem:[#allocation8 + $0x8] sm:$0xff]  ;;  %74 = vst [vmem:[#allocation13] sm:$0xff] %v71_v0  ;;  %v80_v3 = vmul.f32 %v77_v1, %v71_v0  ;;  %v79_v4 = vld [vmem:[#allocation11 + $0x40] sm:$0xff]  ;;  %s1166_s2 = sld [smem:[#allocation7 + $0x5]]  ;;  %s1146_s13 = sshll.u32 %s1292_s12, 4  ;;  %s1147_s13 = int_to_ptr.vmem [resolvable:$true] %s1146_s13 }
  0x14   :  { %76 = vst [vmem:[#allocation13 + $0x40] sm:$0xff] %v73_v2  ;;  %v81_v5 = vmul.f32 %v79_v4, %v73_v2  ;;  %s1169_s27 = sld [smem:[#allocation7 + $0x8]]  ;;  %s1148_s16 = sshll.u32 %s1477_s3, 4  ;;  %s1149_s16 = int_to_ptr.hbm [resolvable:$true] %s1148_s16 }
  0x15   :  { %v82_v6 = vadd.f32 1.0, %v80_v3  ;;  %s1172_s28 = sld [smem:[#allocation7 + $0xb]]  ;;  %v88_v10 = vadd.f32 %v80_v3, %v71_v0 }
  0x16   :  { %s1162_s29 = sld [smem:[#allocation7 + $0x1]]  ;;  %v90_v12 = vadd.f32 %v81_v5, %v73_v2 }
  0x17   :  { %v83_v7 = vadd.f32 %v82_v6, %v81_v5  ;;  %s53_s30 = sld [smem:[#allocation7]] }
  0x18   :  { %s1164_s4 = sld [smem:[#allocation7 + $0x3]]  ;;  %v1328_v14 = vstv %s1163_s1 }
  0x19   :  { %1181 = vrcp.f32 %v83_v7  ;;  %s1167_s5 = sld [smem:[#allocation7 + $0x6]]  ;;  %v1330_v15 = vstv %s1166_s2 }
  0x1a   :  { %s1170_s6 = sld [smem:[#allocation7 + $0x9]]  ;;  %v1332_v16 = vstv %s1169_s27 }
  0x1b   :  { %s1173_s7 = sld [smem:[#allocation7 + $0xc]]  ;;  %v1334_v17 = vstv %s1172_s28 }
  0x1c   :  { %v1336_v20 = vstv %s1162_s29  ;;  %s1165_s8 = sld [smem:[#allocation7 + $0x4]] }
  0x1d   :  { %v1338_v21 = vstv %s53_s30  ;;  %s1171_s9 = sld [smem:[#allocation7 + $0xa]] }
  0x1e   :  { %v1348_v34 = vstv %s1164_s4  ;;  %s1168_s10 = sld [smem:[#allocation7 + $0x7]] }
  0x1f   :  { %v1182_v8 = vpop.eup %1181  ;;  %v1350_v35 = vstv %s1167_s5  ;;  %s1174_s11 = sld [smem:[#allocation7 + $0xd]] }
  0x20   :  { %v85_v9 = vmul.f32 %v1182_v8, %v83_v7  ;;  %v1352_v36 = vstv %s1170_s6 }
  0x21   :  { %v1354_v37 = vstv %s1173_s7 }
  0x22   :  { %v86_v11 = vsub.f32 2.0, %v85_v9  ;;  %v1360_v50 = vstv %s1165_s8 }
  0x23   :  { %v1362_v51 = vstv %s1171_s9 }
  0x24   :  { %v87_v13 = vmul.f32 %v1182_v8, %v86_v11  ;;  %v1366_v58 = vstv %s1168_s10 }
  0x25   :  { %v1368_v59 = vstv %s1174_s11 }
  0x26   :  { %v89_v18 = vmul.f32 %v88_v10, %v87_v13  ;;  %v91_v19 = vmul.f32 %v90_v12, %v87_v13  ;;  %v159_v12 = vld [vmem:[#allocation11 + $0x8] sm:$0xff] }
  0x27   :  { %v161_v13 = vld [vmem:[#allocation11 + $0x48] sm:$0xff] }
  0x28   :  { %v93_v22 = vsub.f32 %v91_v19, %v1328_v14  ;;  %v105_v23 = vsub.f32 %v91_v19, %v1330_v15  ;;  %v116_v24 = vsub.f32 %v89_v18, %v1332_v16  ;;  %v128_v25 = vsub.f32 %v89_v18, %v1334_v17 }
  0x2a   :  { %v95_v26 = vmul.f32 %v1336_v20, %v93_v22  ;;  %v106_v27 = vmul.f32 %v105_v23, %v1336_v20  ;;  %v118_v28 = vmul.f32 %v1338_v21, %v116_v24  ;;  %v129_v29 = vmul.f32 %v128_v25, %v1338_v21 }
  0x2c   :  { %v96_v30 = vmax.f32 %v95_v26, 0.0  ;;  %v107_v31 = vmax.f32 %v106_v27, 0.0  ;;  %v119_v32 = vmax.f32 %v118_v28, 0.0  ;;  %v130_v33 = vmax.f32 %v129_v29, 0.0 }
  0x2e   :  { %v97_v38 = vsub.f32 0.0, %v96_v30  ;;  %v108_v39 = vsub.f32 0.0, %v107_v31  ;;  %v120_v40 = vsub.f32 0.0, %v119_v32  ;;  %v131_v41 = vsub.f32 0.0, %v130_v33 }
  0x30   :  { %v99_v42 = vadd.f32 %v1348_v34, %v97_v38  ;;  %v110_v43 = vadd.f32 %v1350_v35, %v108_v39  ;;  %v122_v44 = vadd.f32 %v1352_v36, %v120_v40  ;;  %v133_v45 = vadd.f32 %v1354_v37, %v131_v41 }
  0x32   :  { %v100_v46 = vmax.f32 %v99_v42, 0.0  ;;  %v111_v47 = vmax.f32 %v110_v43, 0.0  ;;  %v123_v48 = vmax.f32 %v122_v44, 0.0  ;;  %v134_v49 = vmax.f32 %v133_v45, 0.0 }
  0x34   :  { %v101_v52 = vsub.f32 0.0, %v100_v46  ;;  %v124_v53 = vsub.f32 0.0, %v123_v48  ;;  %v112_v55 = vsub.f32 0.0, %v111_v47  ;;  %v135_v57 = vsub.f32 0.0, %v134_v49 }
  0x36   :  { %v103_v54 = vadd.f32 %v1360_v50, %v101_v52  ;;  %v126_v56 = vadd.f32 %v1362_v51, %v124_v53  ;;  %v114_v62 = vadd.f32 %v1366_v58, %v112_v55  ;;  %v137_v0 = vadd.f32 %v1368_v59, %v135_v57 }
  0x38   :  { %v138_v60 = vsub.f32 %v89_v18, %v103_v54  ;;  %v146_v61 = vsub.f32 %v91_v19, %v126_v56 }
  0x3a   :  { %v139_v63 = vmax.f32 %v138_v60, 0.0  ;;  %v147_v1 = vmax.f32 %v146_v61, 0.0 }
  0x3c   :  { %v140_v2 = vsub.f32 0.0, %v139_v63  ;;  %v148_v3 = vsub.f32 0.0, %v147_v1 }
  0x3e   :  { %v141_v4 = vadd.f32 %v140_v2, %v114_v62  ;;  %v149_v5 = vadd.f32 %v148_v3, %v137_v0 }
  0x40   :  { %v142_v6 = vsub.f32 %v141_v4, %v103_v54  ;;  %v150_v7 = vsub.f32 %v149_v5, %v126_v56 }
  0x42   :  { %v143_v8 = vmax.f32 %v142_v6, 0.0  ;;  %v151_v9 = vmax.f32 %v150_v7, 0.0 }
  0x44   :  { %v144_v10 = vsub.f32 0.0, %v143_v8  ;;  %v152_v11 = vsub.f32 0.0, %v151_v9 }
  0x46   :  { %v145_v18 = vadd.f32 %v144_v10, %v114_v62  ;;  %v153_v19 = vadd.f32 %v152_v11, %v137_v0 }
  0x48   :  { %155 = vst [vmem:[#allocation13 + $0x8] sm:$0xff] %v145_v18  ;;  %v162_v22 = vmul.f32 %v159_v12, %v145_v18  ;;  %v163_v23 = vmul.f32 %v161_v13, %v153_v19 }
  0x49   :  { %157 = vst [vmem:[#allocation13 + $0x48] sm:$0xff] %v153_v19 }
  0x4a   :  { %v164_v24 = vadd.f32 1.0, %v162_v22  ;;  %v170_v28 = vadd.f32 %v162_v22, %v145_v18  ;;  %v172_v30 = vadd.f32 %v163_v23, %v153_v19 }
  0x4c   :  { %v165_v25 = vadd.f32 %v164_v24, %v163_v23 }
  0x4e   :  { %1183 = vrcp.f32 %v165_v25 }
  0x54   :  { %v1184_v26 = vpop.eup %1183 }
  0x55   :  { %v167_v27 = vmul.f32 %v1184_v26, %v165_v25 }
  0x57   :  { %v168_v29 = vsub.f32 2.0, %v167_v27 }
  0x59   :  { %v169_v31 = vmul.f32 %v1184_v26, %v168_v29 }
  0x5b   :  { %v171_v32 = vmul.f32 %v170_v28, %v169_v31  ;;  %v173_v33 = vmul.f32 %v172_v30, %v169_v31  ;;  %v227_v30 = vld [vmem:[#allocation11 + $0x10] sm:$0xff] }
  0x5c   :  { %v229_v31 = vld [vmem:[#allocation11 + $0x50] sm:$0xff] }
  0x5d   :  { %v174_v38 = vsub.f32 %v173_v33, %v1328_v14  ;;  %v182_v39 = vsub.f32 %v173_v33, %v1330_v15  ;;  %v190_v40 = vsub.f32 %v171_v32, %v1332_v16  ;;  %v198_v41 = vsub.f32 %v171_v32, %v1334_v17 }
  0x5f   :  { %v175_v42 = vmul.f32 %v174_v38, %v1336_v20  ;;  %v183_v43 = vmul.f32 %v182_v39, %v1336_v20  ;;  %v191_v44 = vmul.f32 %v190_v40, %v1338_v21  ;;  %v199_v45 = vmul.f32 %v198_v41, %v1338_v21 }
  0x61   :  { %v176_v46 = vmax.f32 %v175_v42, 0.0  ;;  %v184_v47 = vmax.f32 %v183_v43, 0.0  ;;  %v192_v48 = vmax.f32 %v191_v44, 0.0  ;;  %v200_v49 = vmax.f32 %v199_v45, 0.0 }
  0x63   :  { %v177_v52 = vsub.f32 0.0, %v176_v46  ;;  %v185_v53 = vsub.f32 0.0, %v184_v47  ;;  %v193_v54 = vsub.f32 0.0, %v192_v48  ;;  %v201_v55 = vsub.f32 0.0, %v200_v49 }
  0x65   :  { %v178_v56 = vadd.f32 %v177_v52, %v1348_v34  ;;  %v186_v57 = vadd.f32 %v185_v53, %v1350_v35  ;;  %v194_v60 = vadd.f32 %v193_v54, %v1352_v36  ;;  %v202_v61 = vadd.f32 %v201_v55, %v1354_v37 }
  0x67   :  { %v179_v62 = vmax.f32 %v178_v56, 0.0  ;;  %v187_v63 = vmax.f32 %v186_v57, 0.0  ;;  %v195_v0 = vmax.f32 %v194_v60, 0.0  ;;  %v203_v1 = vmax.f32 %v202_v61, 0.0 }
  0x69   :  { %v180_v2 = vsub.f32 0.0, %v179_v62  ;;  %v196_v3 = vsub.f32 0.0, %v195_v0  ;;  %v188_v5 = vsub.f32 0.0, %v187_v63  ;;  %v204_v7 = vsub.f32 0.0, %v203_v1 }
  0x6b   :  { %v181_v4 = vadd.f32 %v180_v2, %v1360_v50  ;;  %v197_v6 = vadd.f32 %v196_v3, %v1362_v51  ;;  %v189_v10 = vadd.f32 %v188_v5, %v1366_v58  ;;  %v205_v12 = vadd.f32 %v204_v7, %v1368_v59 }
  0x6d   :  { %v206_v8 = vsub.f32 %v171_v32, %v181_v4  ;;  %v214_v9 = vsub.f32 %v173_v33, %v197_v6 }
  0x6f   :  { %v207_v11 = vmax.f32 %v206_v8, 0.0  ;;  %v215_v13 = vmax.f32 %v214_v9, 0.0 }
  0x71   :  { %v208_v18 = vsub.f32 0.0, %v207_v11  ;;  %v216_v19 = vsub.f32 0.0, %v215_v13 }
  0x73   :  { %v209_v22 = vadd.f32 %v208_v18, %v189_v10  ;;  %v217_v23 = vadd.f32 %v216_v19, %v205_v12 }
  0x75   :  { %v210_v24 = vsub.f32 %v209_v22, %v181_v4  ;;  %v218_v25 = vsub.f32 %v217_v23, %v197_v6 }
  0x77   :  { %v211_v26 = vmax.f32 %v210_v24, 0.0  ;;  %v219_v27 = vmax.f32 %v218_v25, 0.0 }
  0x79   :  { %v212_v28 = vsub.f32 0.0, %v211_v26  ;;  %v220_v29 = vsub.f32 0.0, %v219_v27 }
  0x7b   :  { %v213_v32 = vadd.f32 %v212_v28, %v189_v10  ;;  %v221_v33 = vadd.f32 %v220_v29, %v205_v12 }
  0x7d   :  { %223 = vst [vmem:[#allocation13 + $0x10] sm:$0xff] %v213_v32  ;;  %v230_v38 = vmul.f32 %v227_v30, %v213_v32  ;;  %v231_v39 = vmul.f32 %v229_v31, %v221_v33 }
  0x7e   :  { %225 = vst [vmem:[#allocation13 + $0x50] sm:$0xff] %v221_v33 }
  0x7f   :  { %v232_v40 = vadd.f32 1.0, %v230_v38  ;;  %v238_v44 = vadd.f32 %v230_v38, %v213_v32  ;;  %v240_v46 = vadd.f32 %v231_v39, %v221_v33 }
  0x81   :  { %v233_v41 = vadd.f32 %v232_v40, %v231_v39 }
  0x83   :  { %1185 = vrcp.f32 %v233_v41 }
  0x89   :  { %v1186_v42 = vpop.eup %1185 }
  0x8a   :  { %v235_v43 = vmul.f32 %v1186_v42, %v233_v41 }
  0x8c   :  { %v236_v45 = vsub.f32 2.0, %v235_v43 }
  0x8e   :  { %v237_v47 = vmul.f32 %v1186_v42, %v236_v45 }
  0x90   :  { %v239_v48 = vmul.f32 %v238_v44, %v237_v47  ;;  %v241_v49 = vmul.f32 %v240_v46, %v237_v47  ;;  %v295_v46 = vld [vmem:[#allocation11 + $0x18] sm:$0xff] }
  0x91   :  { %v297_v47 = vld [vmem:[#allocation11 + $0x58] sm:$0xff] }
  0x92   :  { %v242_v52 = vsub.f32 %v241_v49, %v1328_v14  ;;  %v250_v53 = vsub.f32 %v241_v49, %v1330_v15  ;;  %v258_v54 = vsub.f32 %v239_v48, %v1332_v16  ;;  %v266_v55 = vsub.f32 %v239_v48, %v1334_v17 }
  0x94   :  { %v243_v56 = vmul.f32 %v242_v52, %v1336_v20  ;;  %v251_v57 = vmul.f32 %v250_v53, %v1336_v20  ;;  %v259_v60 = vmul.f32 %v258_v54, %v1338_v21  ;;  %v267_v61 = vmul.f32 %v266_v55, %v1338_v21 }
  0x96   :  { %v244_v62 = vmax.f32 %v243_v56, 0.0  ;;  %v252_v63 = vmax.f32 %v251_v57, 0.0  ;;  %v260_v0 = vmax.f32 %v259_v60, 0.0  ;;  %v268_v1 = vmax.f32 %v267_v61, 0.0 }
  0x98   :  { %v245_v2 = vsub.f32 0.0, %v244_v62  ;;  %v253_v3 = vsub.f32 0.0, %v252_v63  ;;  %v261_v4 = vsub.f32 0.0, %v260_v0  ;;  %v269_v5 = vsub.f32 0.0, %v268_v1 }
  0x9a   :  { %v246_v6 = vadd.f32 %v245_v2, %v1348_v34  ;;  %v254_v7 = vadd.f32 %v253_v3, %v1350_v35  ;;  %v262_v8 = vadd.f32 %v261_v4, %v1352_v36  ;;  %v270_v9 = vadd.f32 %v269_v5, %v1354_v37 }
  0x9c   :  { %v247_v10 = vmax.f32 %v246_v6, 0.0  ;;  %v255_v11 = vmax.f32 %v254_v7, 0.0  ;;  %v263_v12 = vmax.f32 %v262_v8, 0.0  ;;  %v271_v13 = vmax.f32 %v270_v9, 0.0 }
  0x9e   :  { %v248_v18 = vsub.f32 0.0, %v247_v10  ;;  %v264_v19 = vsub.f32 0.0, %v263_v12  ;;  %v256_v23 = vsub.f32 0.0, %v255_v11  ;;  %v272_v25 = vsub.f32 0.0, %v271_v13 }
  0xa0   :  { %v249_v22 = vadd.f32 %v248_v18, %v1360_v50  ;;  %v265_v24 = vadd.f32 %v264_v19, %v1362_v51  ;;  %v257_v28 = vadd.f32 %v256_v23, %v1366_v58  ;;  %v273_v30 = vadd.f32 %v272_v25, %v1368_v59 }
  0xa2   :  { %v274_v26 = vsub.f32 %v239_v48, %v249_v22  ;;  %v282_v27 = vsub.f32 %v241_v49, %v265_v24 }
  0xa4   :  { %v275_v29 = vmax.f32 %v274_v26, 0.0  ;;  %v283_v31 = vmax.f32 %v282_v27, 0.0 }
  0xa6   :  { %v276_v32 = vsub.f32 0.0, %v275_v29  ;;  %v284_v33 = vsub.f32 0.0, %v283_v31 }
  0xa8   :  { %v277_v38 = vadd.f32 %v276_v32, %v257_v28  ;;  %v285_v39 = vadd.f32 %v284_v33, %v273_v30 }
  0xaa   :  { %v278_v40 = vsub.f32 %v277_v38, %v249_v22  ;;  %v286_v41 = vsub.f32 %v285_v39, %v265_v24 }
  0xac   :  { %v279_v42 = vmax.f32 %v278_v40, 0.0  ;;  %v287_v43 = vmax.f32 %v286_v41, 0.0 }
  0xae   :  { %v280_v44 = vsub.f32 0.0, %v279_v42  ;;  %v288_v45 = vsub.f32 0.0, %v287_v43 }
  0xb0   :  { %v281_v48 = vadd.f32 %v280_v44, %v257_v28  ;;  %v289_v49 = vadd.f32 %v288_v45, %v273_v30 }
  0xb2   :  { %291 = vst [vmem:[#allocation13 + $0x18] sm:$0xff] %v281_v48  ;;  %v298_v52 = vmul.f32 %v295_v46, %v281_v48  ;;  %v299_v53 = vmul.f32 %v297_v47, %v289_v49 }
  0xb3   :  { %293 = vst [vmem:[#allocation13 + $0x58] sm:$0xff] %v289_v49 }
  0xb4   :  { %v300_v54 = vadd.f32 1.0, %v298_v52  ;;  %v306_v60 = vadd.f32 %v298_v52, %v281_v48  ;;  %v308_v62 = vadd.f32 %v299_v53, %v289_v49 }
  0xb6   :  { %v301_v55 = vadd.f32 %v300_v54, %v299_v53 }
  0xb8   :  { %1187 = vrcp.f32 %v301_v55 }
  0xbe   :  { %v1188_v56 = vpop.eup %1187 }
  0xbf   :  { %v303_v57 = vmul.f32 %v1188_v56, %v301_v55 }
  0xc1   :  { %v304_v61 = vsub.f32 2.0, %v303_v57 }
  0xc3   :  { %v305_v63 = vmul.f32 %v1188_v56, %v304_v61 }
  0xc5   :  { %v307_v0 = vmul.f32 %v306_v60, %v305_v63  ;;  %v309_v1 = vmul.f32 %v308_v62, %v305_v63  ;;  %v363_v62 = vld [vmem:[#allocation11 + $0x20] sm:$0xff] }
  0xc6   :  { %v365_v63 = vld [vmem:[#allocation11 + $0x60] sm:$0xff] }
  0xc7   :  { %v310_v2 = vsub.f32 %v309_v1, %v1328_v14  ;;  %v318_v3 = vsub.f32 %v309_v1, %v1330_v15  ;;  %v326_v4 = vsub.f32 %v307_v0, %v1332_v16  ;;  %v334_v5 = vsub.f32 %v307_v0, %v1334_v17 }
  0xc9   :  { %v311_v6 = vmul.f32 %v310_v2, %v1336_v20  ;;  %v319_v7 = vmul.f32 %v318_v3, %v1336_v20  ;;  %v327_v8 = vmul.f32 %v326_v4, %v1338_v21  ;;  %v335_v9 = vmul.f32 %v334_v5, %v1338_v21 }
  0xcb   :  { %v312_v10 = vmax.f32 %v311_v6, 0.0  ;;  %v320_v11 = vmax.f32 %v319_v7, 0.0  ;;  %v328_v12 = vmax.f32 %v327_v8, 0.0  ;;  %v336_v13 = vmax.f32 %v335_v9, 0.0 }
  0xcd   :  { %v313_v18 = vsub.f32 0.0, %v312_v10  ;;  %v321_v19 = vsub.f32 0.0, %v320_v11  ;;  %v329_v22 = vsub.f32 0.0, %v328_v12  ;;  %v337_v23 = vsub.f32 0.0, %v336_v13 }
  0xcf   :  { %v314_v24 = vadd.f32 %v313_v18, %v1348_v34  ;;  %v322_v25 = vadd.f32 %v321_v19, %v1350_v35  ;;  %v330_v26 = vadd.f32 %v329_v22, %v1352_v36  ;;  %v338_v27 = vadd.f32 %v337_v23, %v1354_v37 }
  0xd1   :  { %v315_v28 = vmax.f32 %v314_v24, 0.0  ;;  %v323_v29 = vmax.f32 %v322_v25, 0.0  ;;  %v331_v30 = vmax.f32 %v330_v26, 0.0  ;;  %v339_v31 = vmax.f32 %v338_v27, 0.0 }
  0xd3   :  { %v316_v32 = vsub.f32 0.0, %v315_v28  ;;  %v332_v33 = vsub.f32 0.0, %v331_v30  ;;  %v324_v39 = vsub.f32 0.0, %v323_v29  ;;  %v340_v41 = vsub.f32 0.0, %v339_v31 }
  0xd5   :  { %v317_v38 = vadd.f32 %v316_v32, %v1360_v50  ;;  %v333_v40 = vadd.f32 %v332_v33, %v1362_v51  ;;  %v325_v44 = vadd.f32 %v324_v39, %v1366_v58  ;;  %v341_v46 = vadd.f32 %v340_v41, %v1368_v59 }
  0xd7   :  { %v342_v42 = vsub.f32 %v307_v0, %v317_v38  ;;  %v350_v43 = vsub.f32 %v309_v1, %v333_v40 }
  0xd9   :  { %v343_v45 = vmax.f32 %v342_v42, 0.0  ;;  %v351_v47 = vmax.f32 %v350_v43, 0.0 }
  0xdb   :  { %v344_v48 = vsub.f32 0.0, %v343_v45  ;;  %v352_v49 = vsub.f32 0.0, %v351_v47 }
  0xdd   :  { %v345_v52 = vadd.f32 %v344_v48, %v325_v44  ;;  %v353_v53 = vadd.f32 %v352_v49, %v341_v46 }
  0xdf   :  { %v346_v54 = vsub.f32 %v345_v52, %v317_v38  ;;  %v354_v55 = vsub.f32 %v353_v53, %v333_v40 }
  0xe1   :  { %v347_v56 = vmax.f32 %v346_v54, 0.0  ;;  %v355_v57 = vmax.f32 %v354_v55, 0.0 }
  0xe3   :  { %v348_v60 = vsub.f32 0.0, %v347_v56  ;;  %v356_v61 = vsub.f32 0.0, %v355_v57 }
  0xe5   :  { %v349_v0 = vadd.f32 %v348_v60, %v325_v44  ;;  %v357_v1 = vadd.f32 %v356_v61, %v341_v46 }
  0xe7   :  { %359 = vst [vmem:[#allocation13 + $0x20] sm:$0xff] %v349_v0  ;;  %v366_v2 = vmul.f32 %v363_v62, %v349_v0  ;;  %v367_v3 = vmul.f32 %v365_v63, %v357_v1 }
  0xe8   :  { %361 = vst [vmem:[#allocation13 + $0x60] sm:$0xff] %v357_v1 }
  0xe9   :  { %v368_v4 = vadd.f32 1.0, %v366_v2  ;;  %v374_v8 = vadd.f32 %v366_v2, %v349_v0  ;;  %v376_v10 = vadd.f32 %v367_v3, %v357_v1 }
  0xeb   :  { %v369_v5 = vadd.f32 %v368_v4, %v367_v3 }
  0xed   :  { %1189 = vrcp.f32 %v369_v5 }
  0xf3   :  { %v1190_v6 = vpop.eup %1189 }
  0xf4   :  { %v371_v7 = vmul.f32 %v1190_v6, %v369_v5 }
  0xf6   :  { %v372_v9 = vsub.f32 2.0, %v371_v7 }
  0xf8   :  { %v373_v11 = vmul.f32 %v1190_v6, %v372_v9 }
  0xfa   :  { %v375_v12 = vmul.f32 %v374_v8, %v373_v11  ;;  %v377_v13 = vmul.f32 %v376_v10, %v373_v11  ;;  %v431_v10 = vld [vmem:[#allocation11 + $0x28] sm:$0xff] }
  0xfb   :  { %v433_v11 = vld [vmem:[#allocation11 + $0x68] sm:$0xff] }
  0xfc   :  { %v378_v18 = vsub.f32 %v377_v13, %v1328_v14  ;;  %v386_v19 = vsub.f32 %v377_v13, %v1330_v15  ;;  %v394_v22 = vsub.f32 %v375_v12, %v1332_v16  ;;  %v402_v23 = vsub.f32 %v375_v12, %v1334_v17 }
  0xfe   :  { %v379_v24 = vmul.f32 %v378_v18, %v1336_v20  ;;  %v387_v25 = vmul.f32 %v386_v19, %v1336_v20  ;;  %v395_v26 = vmul.f32 %v394_v22, %v1338_v21  ;;  %v403_v27 = vmul.f32 %v402_v23, %v1338_v21 }
 0x100   :  { %v380_v28 = vmax.f32 %v379_v24, 0.0  ;;  %v388_v29 = vmax.f32 %v387_v25, 0.0  ;;  %v396_v30 = vmax.f32 %v395_v26, 0.0  ;;  %v404_v31 = vmax.f32 %v403_v27, 0.0 }
 0x102   :  { %v381_v32 = vsub.f32 0.0, %v380_v28  ;;  %v389_v33 = vsub.f32 0.0, %v388_v29  ;;  %v397_v38 = vsub.f32 0.0, %v396_v30  ;;  %v405_v39 = vsub.f32 0.0, %v404_v31 }
 0x104   :  { %v382_v40 = vadd.f32 %v381_v32, %v1348_v34  ;;  %v390_v41 = vadd.f32 %v389_v33, %v1350_v35  ;;  %v398_v42 = vadd.f32 %v397_v38, %v1352_v36  ;;  %v406_v43 = vadd.f32 %v405_v39, %v1354_v37 }
 0x106   :  { %v383_v44 = vmax.f32 %v382_v40, 0.0  ;;  %v391_v45 = vmax.f32 %v390_v41, 0.0  ;;  %v399_v46 = vmax.f32 %v398_v42, 0.0  ;;  %v407_v47 = vmax.f32 %v406_v43, 0.0 }
 0x108   :  { %v384_v48 = vsub.f32 0.0, %v383_v44  ;;  %v400_v49 = vsub.f32 0.0, %v399_v46  ;;  %v392_v53 = vsub.f32 0.0, %v391_v45  ;;  %v408_v55 = vsub.f32 0.0, %v407_v47 }
 0x10a   :  { %v385_v52 = vadd.f32 %v384_v48, %v1360_v50  ;;  %v401_v54 = vadd.f32 %v400_v49, %v1362_v51  ;;  %v393_v60 = vadd.f32 %v392_v53, %v1366_v58  ;;  %v409_v62 = vadd.f32 %v408_v55, %v1368_v59 }
 0x10c   :  { %v410_v56 = vsub.f32 %v375_v12, %v385_v52  ;;  %v418_v57 = vsub.f32 %v377_v13, %v401_v54 }
 0x10e   :  { %v411_v61 = vmax.f32 %v410_v56, 0.0  ;;  %v419_v63 = vmax.f32 %v418_v57, 0.0 }
 0x110   :  { %v412_v0 = vsub.f32 0.0, %v411_v61  ;;  %v420_v1 = vsub.f32 0.0, %v419_v63 }
 0x112   :  { %v413_v2 = vadd.f32 %v412_v0, %v393_v60  ;;  %v421_v3 = vadd.f32 %v420_v1, %v409_v62 }
 0x114   :  { %v414_v4 = vsub.f32 %v413_v2, %v385_v52  ;;  %v422_v5 = vsub.f32 %v421_v3, %v401_v54 }
 0x116   :  { %v415_v6 = vmax.f32 %v414_v4, 0.0  ;;  %v423_v7 = vmax.f32 %v422_v5, 0.0 }
 0x118   :  { %v416_v8 = vsub.f32 0.0, %v415_v6  ;;  %v424_v9 = vsub.f32 0.0, %v423_v7 }
 0x11a   :  { %v417_v12 = vadd.f32 %v416_v8, %v393_v60  ;;  %v425_v13 = vadd.f32 %v424_v9, %v409_v62 }
 0x11c   :  { %427 = vst [vmem:[#allocation13 + $0x28] sm:$0xff] %v417_v12  ;;  %v434_v18 = vmul.f32 %v431_v10, %v417_v12  ;;  %v435_v19 = vmul.f32 %v433_v11, %v425_v13 }
 0x11d   :  { %429 = vst [vmem:[#allocation13 + $0x68] sm:$0xff] %v425_v13 }
 0x11e   :  { %v436_v22 = vadd.f32 1.0, %v434_v18  ;;  %v442_v26 = vadd.f32 %v434_v18, %v417_v12  ;;  %v444_v28 = vadd.f32 %v435_v19, %v425_v13 }
 0x120   :  { %v437_v23 = vadd.f32 %v436_v22, %v435_v19 }
 0x122   :  { %1191 = vrcp.f32 %v437_v23 }
 0x128   :  { %v1192_v24 = vpop.eup %1191 }
 0x129   :  { %v439_v25 = vmul.f32 %v1192_v24, %v437_v23 }
 0x12b   :  { %v440_v27 = vsub.f32 2.0, %v439_v25 }
 0x12d   :  { %v441_v29 = vmul.f32 %v1192_v24, %v440_v27 }
 0x12f   :  { %v443_v30 = vmul.f32 %v442_v26, %v441_v29  ;;  %v445_v31 = vmul.f32 %v444_v28, %v441_v29  ;;  %v499_v28 = vld [vmem:[#allocation11 + $0x30] sm:$0xff] }
 0x130   :  { %v501_v29 = vld [vmem:[#allocation11 + $0x70] sm:$0xff] }
 0x131   :  { %v446_v32 = vsub.f32 %v445_v31, %v1328_v14  ;;  %v454_v33 = vsub.f32 %v445_v31, %v1330_v15  ;;  %v462_v38 = vsub.f32 %v443_v30, %v1332_v16  ;;  %v470_v39 = vsub.f32 %v443_v30, %v1334_v17 }
 0x133   :  { %v447_v40 = vmul.f32 %v446_v32, %v1336_v20  ;;  %v455_v41 = vmul.f32 %v454_v33, %v1336_v20  ;;  %v463_v42 = vmul.f32 %v462_v38, %v1338_v21  ;;  %v471_v43 = vmul.f32 %v470_v39, %v1338_v21 }
 0x135   :  { %v448_v44 = vmax.f32 %v447_v40, 0.0  ;;  %v456_v45 = vmax.f32 %v455_v41, 0.0  ;;  %v464_v46 = vmax.f32 %v463_v42, 0.0  ;;  %v472_v47 = vmax.f32 %v471_v43, 0.0 }
 0x137   :  { %v449_v48 = vsub.f32 0.0, %v448_v44  ;;  %v457_v49 = vsub.f32 0.0, %v456_v45  ;;  %v465_v52 = vsub.f32 0.0, %v464_v46  ;;  %v473_v53 = vsub.f32 0.0, %v472_v47 }
 0x139   :  { %v450_v54 = vadd.f32 %v449_v48, %v1348_v34  ;;  %v458_v55 = vadd.f32 %v457_v49, %v1350_v35  ;;  %v466_v56 = vadd.f32 %v465_v52, %v1352_v36  ;;  %v474_v57 = vadd.f32 %v473_v53, %v1354_v37 }
 0x13b   :  { %v451_v60 = vmax.f32 %v450_v54, 0.0  ;;  %v459_v61 = vmax.f32 %v458_v55, 0.0  ;;  %v467_v62 = vmax.f32 %v466_v56, 0.0  ;;  %v475_v63 = vmax.f32 %v474_v57, 0.0 }
 0x13d   :  { %v452_v0 = vsub.f32 0.0, %v451_v60  ;;  %v468_v1 = vsub.f32 0.0, %v467_v62  ;;  %v460_v3 = vsub.f32 0.0, %v459_v61  ;;  %v476_v5 = vsub.f32 0.0, %v475_v63 }
 0x13f   :  { %v453_v2 = vadd.f32 %v452_v0, %v1360_v50  ;;  %v469_v4 = vadd.f32 %v468_v1, %v1362_v51  ;;  %v461_v8 = vadd.f32 %v460_v3, %v1366_v58  ;;  %v477_v10 = vadd.f32 %v476_v5, %v1368_v59 }
 0x141   :  { %v478_v6 = vsub.f32 %v443_v30, %v453_v2  ;;  %v486_v7 = vsub.f32 %v445_v31, %v469_v4 }
 0x143   :  { %v479_v9 = vmax.f32 %v478_v6, 0.0  ;;  %v487_v11 = vmax.f32 %v486_v7, 0.0 }
 0x145   :  { %v480_v12 = vsub.f32 0.0, %v479_v9  ;;  %v488_v13 = vsub.f32 0.0, %v487_v11 }
 0x147   :  { %v481_v18 = vadd.f32 %v480_v12, %v461_v8  ;;  %v489_v19 = vadd.f32 %v488_v13, %v477_v10 }
 0x149   :  { %v482_v22 = vsub.f32 %v481_v18, %v453_v2  ;;  %v490_v23 = vsub.f32 %v489_v19, %v469_v4 }
 0x14b   :  { %v483_v24 = vmax.f32 %v482_v22, 0.0  ;;  %v491_v25 = vmax.f32 %v490_v23, 0.0 }
 0x14d   :  { %v484_v26 = vsub.f32 0.0, %v483_v24  ;;  %v492_v27 = vsub.f32 0.0, %v491_v25 }
 0x14f   :  { %v485_v30 = vadd.f32 %v484_v26, %v461_v8  ;;  %v493_v31 = vadd.f32 %v492_v27, %v477_v10 }
 0x151   :  { %495 = vst [vmem:[#allocation13 + $0x30] sm:$0xff] %v485_v30  ;;  %v502_v32 = vmul.f32 %v499_v28, %v485_v30  ;;  %v503_v33 = vmul.f32 %v501_v29, %v493_v31 }
 0x152   :  { %497 = vst [vmem:[#allocation13 + $0x70] sm:$0xff] %v493_v31 }
 0x153   :  { %v504_v38 = vadd.f32 1.0, %v502_v32  ;;  %v510_v42 = vadd.f32 %v502_v32, %v485_v30  ;;  %v512_v44 = vadd.f32 %v503_v33, %v493_v31 }
 0x155   :  { %v505_v39 = vadd.f32 %v504_v38, %v503_v33 }
 0x157   :  { %1193 = vrcp.f32 %v505_v39 }
 0x15d   :  { %v1194_v40 = vpop.eup %1193 }
 0x15e   :  { %v507_v41 = vmul.f32 %v1194_v40, %v505_v39 }
 0x160   :  { %v508_v43 = vsub.f32 2.0, %v507_v41 }
 0x162   :  { %v509_v45 = vmul.f32 %v1194_v40, %v508_v43 }
 0x164   :  { %v513_v46 = vmul.f32 %v512_v44, %v509_v45  ;;  %v511_v47 = vmul.f32 %v510_v42, %v509_v45 }
 0x166   :  { %v514_v48 = vsub.f32 %v513_v46, %v1328_v14  ;;  %v522_v49 = vsub.f32 %v513_v46, %v1330_v15  ;;  %v530_v52 = vsub.f32 %v511_v47, %v1332_v16  ;;  %v538_v53 = vsub.f32 %v511_v47, %v1334_v17 }
 0x168   :  { %v515_v54 = vmul.f32 %v514_v48, %v1336_v20  ;;  %v523_v55 = vmul.f32 %v522_v49, %v1336_v20  ;;  %v531_v56 = vmul.f32 %v530_v52, %v1338_v21  ;;  %v539_v57 = vmul.f32 %v538_v53, %v1338_v21 }
 0x16a   :  { %v516_v60 = vmax.f32 %v515_v54, 0.0  ;;  %v524_v61 = vmax.f32 %v523_v55, 0.0  ;;  %v532_v62 = vmax.f32 %v531_v56, 0.0  ;;  %v540_v63 = vmax.f32 %v539_v57, 0.0 }
 0x16c   :  { %v517_v0 = vsub.f32 0.0, %v516_v60  ;;  %v525_v14 = vsub.f32 0.0, %v524_v61  ;;  %v533_v1 = vsub.f32 0.0, %v532_v62  ;;  %v541_v15 = vsub.f32 0.0, %v540_v63 }
 0x16e   :  { %v518_v16 = vadd.f32 %v517_v0, %v1348_v34  ;;  %v526_v17 = vadd.f32 %v525_v14, %v1350_v35  ;;  %v534_v2 = vadd.f32 %v533_v1, %v1352_v36  ;;  %v542_v20 = vadd.f32 %v541_v15, %v1354_v37 }
 0x170   :  { %v519_v3 = vmax.f32 %v518_v16, 0.0  ;;  %v527_v4 = vmax.f32 %v526_v17, 0.0  ;;  %v535_v5 = vmax.f32 %v534_v2, 0.0  ;;  %v543_v21 = vmax.f32 %v542_v20, 0.0 }
 0x172   :  { %v520_v6 = vsub.f32 0.0, %v519_v3  ;;  %v536_v7 = vsub.f32 0.0, %v535_v5  ;;  %v528_v9 = vsub.f32 0.0, %v527_v4  ;;  %v544_v11 = vsub.f32 0.0, %v543_v21 }
 0x174   :  { %v521_v8 = vadd.f32 %v520_v6, %v1360_v50  ;;  %v537_v10 = vadd.f32 %v536_v7, %v1362_v51  ;;  %v529_v35 = vadd.f32 %v528_v9, %v1366_v58  ;;  %v545_v36 = vadd.f32 %v544_v11, %v1368_v59 }
 0x176   :  { %v546_v12 = vsub.f32 %v511_v47, %v521_v8  ;;  %v554_v34 = vsub.f32 %v513_v46, %v537_v10 }
 0x178   :  { %v547_v13 = vmax.f32 %v546_v12, 0.0  ;;  %v555_v37 = vmax.f32 %v554_v34, 0.0 }
 0x17a   :  { %v548_v18 = vsub.f32 0.0, %v547_v13  ;;  %v556_v19 = vsub.f32 0.0, %v555_v37 }
 0x17c   :  { %v549_v22 = vadd.f32 %v548_v18, %v529_v35  ;;  %v557_v23 = vadd.f32 %v556_v19, %v545_v36 }
 0x17e   :  { %v550_v24 = vsub.f32 %v549_v22, %v521_v8  ;;  %v558_v25 = vsub.f32 %v557_v23, %v537_v10 }
 0x180   :  { %v551_v26 = vmax.f32 %v550_v24, 0.0  ;;  %v559_v50 = vmax.f32 %v558_v25, 0.0 }
 0x182   :  { %v552_v27 = vsub.f32 0.0, %v551_v26  ;;  %v560_v28 = vsub.f32 0.0, %v559_v50 }
 0x184   :  { %v553_v51 = vadd.f32 %v552_v27, %v529_v35  ;;  %v561_v58 = vadd.f32 %v560_v28, %v545_v36 }
 0x186   :  { %563 = vst [vmem:[#allocation13 + $0x38] sm:$0xff] %v553_v51 }
 0x187   :  { %565 = vst [vmem:[#allocation13 + $0x78] sm:$0xff] %v561_v58 }
 0x188   :  { %1154 = dma.vmem_to_hbm [thread:$0]  %s1147_s13, 2048, %s1149_s16, [#allocation10], %s1289_s23, %s1289_s23, %s1290_s24  }
 0x189   :  { %1285 = dma.done.wait [#allocation10], 2048  }
 0x18a   :  { %1286 = vsyncadd [#allocation10], 4294965248 }
 0x18b   :  { %1159 = vsyncpa [#allocation9], 1 }
 0x18c   :  { %1160 = vsyncpa [#allocation12], 1 }
 0x18d   :  { %1161 = vsyncpa [#allocation10], 1 }

</bundles_post_ra>
